<compile_context>
chip_gen: v7x
topology: tpu7x:2x2x1
jax: 0.10.0
libtpu: 0.0.40
codegen_flags: <defaults>
</compile_context>

<pallas_src>
import jax
import jax.numpy as jnp
from jax.experimental import pallas as pl
from jax.experimental.pallas import tpu as pltpu


def _leaky_relu(x):
    return jnp.where(x >= 0, x, 0.1 * x)          # nn.LeakyReLU(0.1)


def _gru_update(gi, gh, h):
    """PyTorch GRU / GRUCell update from precomputed gates.
    gi = x @ Wih + bih, gh = h @ Whh + bhh, gate order (r, z, n)."""
    H = h.shape[-1]
    r = jax.nn.sigmoid(gi[:, 0:H] + gh[:, 0:H])
    z = jax.nn.sigmoid(gi[:, H:2 * H] + gh[:, H:2 * H])
    n = jnp.tanh(gi[:, 2 * H:] + r * gh[:, 2 * H:])
    return (1.0 - z) * n + z * h


def _block_diag(blocks):
    """Host-side block-diagonal assembly of [in_i, out_i] matrices."""
    rows = sum(b.shape[0] for b in blocks)
    cols = sum(b.shape[1] for b in blocks)
    out = jnp.zeros((rows, cols), jnp.float32)
    r = c = 0
    for blk in blocks:
        out = out.at[r:r + blk.shape[0], c:c + blk.shape[1]].set(blk)
        r += blk.shape[0]
        c += blk.shape[1]
    return out


def init_params(args, key):
    """Deterministic synthetic parameters (shapes follow TrajGenerator.__init__)."""
    coord = args['coord_emb_size']
    traj_enc = args['traj_enc_size']
    W = args['waypt_enc_size']
    att = args['att_size']
    hist_in = 5 if args['use_motion_states'] else 2
    E = (coord + args['use_scene'] * args['scene_emb_size']
         + args['use_agents'] * args['agent_emb_size'])

    specs = []

    def lin(name, fin, fout):
        specs.append((name + '_w', (fin, fout)))   # pre-transposed [in, out]
        specs.append((name + '_b', (1, fout)))

    def gru(name, fin, H):
        specs.append((name + '_wih', (fin, 3 * H)))
        specs.append((name + '_whh', (H, 3 * H)))
        specs.append((name + '_bih', (1, 3 * H)))
        specs.append((name + '_bhh', (1, 3 * H)))

    lin('hist_emb', hist_in, coord)
    gru('hgru', coord, traj_enc)                       # hist_enc_gru
    lin('wc', 2, coord)                                # waypt_coord_emb
    if args['use_scene']:
        lin('ws', args['scene_feat_size'], args['scene_emb_size'])
    if args['use_agents']:
        lin('wa', args['agent_feat_size'], args['agent_emb_size'])
    gru('wgru_f', E, W)                                # waypt_enc_gru forward dir
    gru('wgru_b', E, W)                                # waypt_enc_gru reverse dir
    gru('dgru', 2 * W, traj_enc)                       # dec_gru (GRUCell)
    lin('attn1', traj_enc + 2 * W, att)
    lin('attn2', att, 1)
    lin('op', traj_enc, 2)                             # op_traj

    keys = jax.random.split(key, len(specs))
    params = {name: 0.2 * jax.random.normal(k, shape, dtype=jnp.float32)
              for (name, shape), k in zip(specs, keys)}
    return params


def _kernel_param_list(args, params):
    """Host-side weight plumbing: block-diagonal fusions + splits (zero per-step cost)."""
    He = args['traj_enc_size']

    # fused waypoint-feature embedding:  [waypt | scene | agent] -> [coord | scene | agent]
    emb_w_blocks, emb_b_blocks = [params['wc_w']], [params['wc_b']]
    if args['use_scene']:
        emb_w_blocks.append(params['ws_w'])
        emb_b_blocks.append(params['ws_b'])
    if args['use_agents']:
        emb_w_blocks.append(params['wa_w'])
        emb_b_blocks.append(params['wa_b'])

    items = [
        ('hist_emb_w', params['hist_emb_w']), ('hist_emb_b', params['hist_emb_b']),
        ('hgru_wih', params['hgru_wih']), ('hgru_bih', params['hgru_bih']),
        ('emb_w', _block_diag(emb_w_blocks)),
        ('emb_b', jnp.concatenate(emb_b_blocks, axis=1)),
        # fused fwd+bwd input projection for the bidirectional waypoint GRU: [E, 6W]
        ('wgru_wih', jnp.concatenate([params['wgru_f_wih'], params['wgru_b_wih']], axis=1)),
        ('wgru_bih', jnp.concatenate([params['wgru_f_bih'], params['wgru_b_bih']], axis=1)),
        # block-diagonal recurrent weights: ONE matmul/step drives hist + fwd + bwd chains
        ('rec_whh', _block_diag([params['hgru_whh'], params['wgru_f_whh'],
                                 params['wgru_b_whh']])),
        ('rec_bhh', jnp.concatenate([params['hgru_bhh'], params['wgru_f_bhh'],
                                     params['wgru_b_bhh']], axis=1)),
        ('dgru_wih', params['dgru_wih']), ('dgru_bih', params['dgru_bih']),
        ('dgru_bhh', params['dgru_bhh']),
        # fused per-decoder-step projection of h: attn1 (h half, no bias) | dec_gru Whh
        ('hproj_w', jnp.concatenate([params['attn1_w'][:He, :], params['dgru_whh']], axis=1)),
        ('attn1_ww', params['attn1_w'][He:, :]),           # acts on h_waypt
        ('attn1_b', params['attn1_b']),
        ('attn2_w', params['attn2_w'].reshape(1, -1)),     # [1, att] row vector
        ('attn2_b', params['attn2_b']),
        ('op_w', params['op_w']), ('op_b', params['op_b']),
    ]
    return [n for n, _ in items], [v for _, v in items]


def _make_kernel(args, kparam_names, B, Lh, T):
    op_length = args['op_length']
    He = args['traj_enc_size']            # history / decoder hidden size
    W = args['waypt_enc_size']
    att = args['att_size']
    D = He + 2 * W                        # fused encoder state width
    n_steps = max(Lh, T)
    nP = len(kparam_names)

    def kernel(*refs):
        hist_ref, feats_ref, valid_ref, attm_ref = refs[0:4]
        pr = {name: refs[4 + i] for i, name in enumerate(kparam_names)}
        out_ref = refs[4 + nP]            # [op_length*B, 2]
        hwb_ref = refs[5 + nP]            # [B*T, 2W]   batch-major packed waypoint encodings
        dec_ref = refs[6 + nP]            # [op_length*B, He] decoder hidden states

        f32 = jnp.float32

        # -------- batched, loop-invariant projections (all bulk MXU work up front) --------
        x_hist = _leaky_relu(jnp.dot(hist_ref[...], pr['hist_emb_w'][...],
                                     preferred_element_type=f32) + pr['hist_emb_b'][...])
        gi_hist = (jnp.dot(x_hist, pr['hgru_wih'][...], preferred_element_type=f32)
                   + pr['hgru_bih'][...])                                   # [Lh*B, 3He]

        emb = _leaky_relu(jnp.dot(feats_ref[...], pr['emb_w'][...],
                                  preferred_element_type=f32) + pr['emb_b'][...])
        gi_bi = (jnp.dot(emb, pr['wgru_wih'][...], preferred_element_type=f32)
                 + pr['wgru_bih'][...])                                     # [T*B, 6W]
        gi_f = gi_bi[:, 0:3 * W]
        gi_b = gi_bi[:, 3 * W:]

        valid = valid_ref[...]                                              # [T*B, 1]
        rec_whh = pr['rec_whh'][...]                                        # [D, 3He+6W]
        rec_bhh = pr['rec_bhh'][...]

        # -------- one fused recurrence for the three independent GRU chains --------
        # state = [h_hist | h_fwd | h_bwd]; block-diagonal Whh => a single recurrent
        # matmul per step instead of Lh + 2T dependent ones.
        # TODO(synk): for production-sized hist_len / mdp_horizon switch these unrolled
        #             Python loops to lax.fori_loop(..., unroll=k) over flat scratches to
        #             bound vreg live ranges (at these trip counts full unroll is optimal).
        o1, o2 = 3 * He, 3 * He + 3 * W
        h_all = jnp.zeros((B, D), f32)
        for s in range(n_steps):
            gh = jnp.dot(h_all, rec_whh, preferred_element_type=f32) + rec_bhh
            h_h = h_all[:, 0:He]
            h_f = h_all[:, He:He + W]
            h_b = h_all[:, He + W:]
            if s < Lh:
                h_h = _gru_update(gi_hist[s * B:(s + 1) * B, :], gh[:, 0:o1], h_h)
            if s < T:
                tf, tb = s, T - 1 - s
                h_f = _gru_update(gi_f[tf * B:(tf + 1) * B, :], gh[:, o1:o2], h_f)
                h_b = _gru_update(gi_b[tb * B:(tb + 1) * B, :], gh[:, o2:], h_b)
                # pack_padded_sequence semantics: backward hidden stays zero until
                # t < len[b]; forward outputs zeroed past len[b] (its state keeps running).
                h_b = h_b * valid[tb * B:(tb + 1) * B, :]
                hf_o = h_f * valid[tf * B:(tf + 1) * B, :]
                for b in range(B):      # batch-major packed store (one row per element)
                    hwb_ref[b * T + tf:b * T + tf + 1, 0:W] = hf_o[b:b + 1, :]
                    hwb_ref[b * T + tb:b * T + tb + 1, W:2 * W] = h_b[b:b + 1, :]
            h_all = jnp.concatenate([h_h, h_f, h_b], axis=1)

        h = h_all[:, 0:He]               # final history hidden -> decoder init

        # -------- attention precompute: loop-invariant (h_waypt) half of attn1 --------
        hw_flat = hwb_ref[...]                                              # [B*T, 2W]
        hw3 = hw_flat.reshape(B, T, 2 * W)
        p3 = (jnp.dot(hw_flat, pr['attn1_ww'][...], preferred_element_type=f32)
              + pr['attn1_b'][...]).reshape(B, T, att)

        hproj_w = pr['hproj_w'][...]      # [He, att+3He] fused: attn1(h) | dec_gru Whh
        dw_ih = pr['dgru_wih'][...]
        db_ih = pr['dgru_bih'][...]
        db_hh = pr['dgru_bhh'][...]
        w2 = pr['attn2_w'][...][None]     # [1, 1, att]
        b2 = pr['attn2_b'][...]           # [1, 1]
        attm = attm_ref[...]              # [1, T]  (t < max_len)

        # -------- autoregressive decoder with soft attention over waypoint encodings ------
        # TODO(synk): on v6e/v7x, cast matmul operands (weights, hw_flat, p3 inputs) to
        #             bf16 with f32 accumulation for vreg headroom at production sizes.
        for k in range(op_length):
            hp = jnp.dot(h, hproj_w, preferred_element_type=f32)           # [B, att+3He]
            q = hp[:, 0:att]
            gh = hp[:, att:] + db_hh
            a = jnp.tanh(p3 + q[:, None, :])                                # [B, T, att]
            sc = jnp.sum(a * w2, axis=2) + b2                               # [B, T]
            mx = jnp.max(sc, axis=1, keepdims=True)
            e = jnp.exp(sc - mx) * attm                                     # softmax over t
            wav = e * pl.reciprocal(jnp.sum(e, axis=1, keepdims=True), approx=True)
            ip = jnp.sum(wav[:, :, None] * hw3, axis=1)                     # [B, 2W]
            gi = jnp.dot(ip, dw_ih, preferred_element_type=f32) + db_ih
            h = _gru_update(gi, gh, h)
            dec_ref[k * B:(k + 1) * B, :] = h

        # single batched output projection + a single store (no per-step 2-lane stores)
        out_ref[...] = (jnp.dot(dec_ref[...], pr['op_w'][...],
                                preferred_element_type=f32) + pr['op_b'][...])

    return kernel


def traj_generator_forward(args, params, hist, waypts, scene_feats, agent_feats):
    """One pallas_call, whole problem resident in VMEM (no grid).

    hist: [hist_len, B, 2|5]; waypts/scene_feats/agent_feats: [T, B, .] (seq-first)
    returns traj: [B, op_length, 2]  (== traj.permute(1, 0, 2) in the PyTorch module)
    """
    Lh, B = hist.shape[0], hist.shape[1]
    T = waypts.shape[0]
    He = args['traj_enc_size']
    W = args['waypt_enc_size']
    op_length = args['op_length']

    names, vals = _kernel_param_list(args, params)
    kernel = _make_kernel(args, names, B, Lh, T)

    # ---- wrapper-side (plain XLA) prep: flatten inputs, fuse features, lengths/masks ----
    hist_flat = hist.reshape(Lh * B, hist.shape[2])
    feat_list = [waypts]
    if args['use_scene']:
        feat_list.append(scene_feats)
    if args['use_agents']:
        feat_list.append(agent_feats)
    feats_flat = jnp.concatenate(feat_list, axis=2).reshape(T * B, -1)

    # waypoint "lengths" exactly as in the PyTorch forward (pack_padded_sequence equiv.)
    tmp = jnp.sum(jnp.abs(waypts), axis=2)                                  # [T, B]
    lengths = jnp.sum((tmp[1:, :] != 0.0).astype(jnp.int32), axis=0) + 1    # [B]
    max_len = jnp.max(lengths)
    t_iota = jnp.arange(T, dtype=jnp.int32)
    valid_flat = (t_iota[:, None] < lengths[None, :]).astype(jnp.float32).reshape(T * B, 1)
    attm = (t_iota[None, :] < max_len).astype(jnp.float32)                  # [1, T]

    # TODO(synk): for production batch sizes add a grid over B-tiles with
    #             dimension_semantics=("parallel",) so both v7x TensorCores get work,
    #             and re-size the resident footprint against v7x's 64 MiB VMEM.
    n_in = 4 + len(vals)
    out = pl.pallas_call(
        kernel,
        out_shape=jax.ShapeDtypeStruct((op_length * B, 2), jnp.float32),
        in_specs=[pl.BlockSpec(memory_space=pltpu.MemorySpace.VMEM)] * n_in,
        out_specs=pl.BlockSpec(memory_space=pltpu.MemorySpace.VMEM),
        scratch_shapes=[pltpu.VMEM((B * T, 2 * W), jnp.float32),
                        pltpu.VMEM((op_length * B, He), jnp.float32)],
        compiler_params=pltpu.CompilerParams(vmem_limit_bytes=32 * 1024 * 1024),
    )(hist_flat, feats_flat, valid_flat, attm, *vals)
    # [op_length*B, 2] (step-major) -> [B, op_length, 2]
    return out.reshape(op_length, B, 2).transpose(1, 0, 2)


if __name__ == "__main__":
    args = dict(
        coord_emb_size=16,
        traj_enc_size=32,
        waypt_enc_size=16,
        att_size=32,
        op_length=6,
        use_agents=1,
        use_scene=1,
        use_motion_states=1,
        scene_feat_size=8,
        scene_emb_size=8,
        agent_feat_size=8,
        agent_emb_size=8,
    )
    key = jax.random.PRNGKey(0)
    kp, kh, kw, ks, ka = jax.random.split(key, 5)
    params = init_params(args, kp)

    B, hist_len, T = 2, 8, 8
    hist = jax.random.normal(kh, (hist_len, B, 5), jnp.float32)
    waypts = jax.random.normal(kw, (T, B, 2), jnp.float32)
    # make batch element 1 a shorter (zero-padded) plan to exercise the packing/masking path
    waypts = waypts.at[5:, 1, :].set(0.0)
    scene_feats = jax.random.normal(ks, (T, B, args['scene_feat_size']), jnp.float32)
    agent_feats = jax.random.normal(ka, (T, B, args['agent_feat_size']), jnp.float32)

    traj = traj_generator_forward(args, params, hist, waypts, scene_feats, agent_feats)
    traj = jax.block_until_ready(traj)
    assert traj.shape == (B, args['op_length'], 2)
    assert bool(jnp.all(jnp.isfinite(traj)))
    print("KERNEL_OK")
</pallas_src>

<mosaic_0001>
module attributes {stable_mosaic.version = 11 : i64} {
  func.func @kernel(%arg0: memref<16x5xf32, #tpu.memory_space<vmem>>, %arg1: memref<16x18xf32, #tpu.memory_space<vmem>>, %arg2: memref<16x1xf32, #tpu.memory_space<vmem>>, %arg3: memref<1x8xf32, #tpu.memory_space<vmem>>, %arg4: memref<5x16xf32, #tpu.memory_space<vmem>>, %arg5: memref<1x16xf32, #tpu.memory_space<vmem>>, %arg6: memref<16x96xf32, #tpu.memory_space<vmem>>, %arg7: memref<1x96xf32, #tpu.memory_space<vmem>>, %arg8: memref<18x32xf32, #tpu.memory_space<vmem>>, %arg9: memref<1x32xf32, #tpu.memory_space<vmem>>, %arg10: memref<32x96xf32, #tpu.memory_space<vmem>>, %arg11: memref<1x96xf32, #tpu.memory_space<vmem>>, %arg12: memref<64x192xf32, #tpu.memory_space<vmem>>, %arg13: memref<1x192xf32, #tpu.memory_space<vmem>>, %arg14: memref<32x96xf32, #tpu.memory_space<vmem>>, %arg15: memref<1x96xf32, #tpu.memory_space<vmem>>, %arg16: memref<1x96xf32, #tpu.memory_space<vmem>>, %arg17: memref<32x128xf32, #tpu.memory_space<vmem>>, %arg18: memref<32x32xf32, #tpu.memory_space<vmem>>, %arg19: memref<1x32xf32, #tpu.memory_space<vmem>>, %arg20: memref<1x32xf32, #tpu.memory_space<vmem>>, %arg21: memref<1x1xf32, #tpu.memory_space<vmem>>, %arg22: memref<32x2xf32, #tpu.memory_space<vmem>>, %arg23: memref<1x2xf32, #tpu.memory_space<vmem>>, %arg24: memref<12x2xf32, #tpu.memory_space<vmem>>, %arg25: memref<16x32xf32, #tpu.memory_space<vmem>>, %arg26: memref<12x32xf32, #tpu.memory_space<vmem>>) attributes {dimension_semantics = [], scalar_prefetch = 0 : i64, scratch_operands = 2 : i64, tpu.core_type = #tpu.core_type<tc>} {
    %c0 = arith.constant 0 : index
    %c0_0 = arith.constant 0 : index
    %0 = vector.load %arg0[%c0, %c0_0] : memref<16x5xf32, #tpu.memory_space<vmem>>, vector<16x5xf32>
    %c0_1 = arith.constant 0 : index
    %c0_2 = arith.constant 0 : index
    %1 = vector.load %arg4[%c0_1, %c0_2] : memref<5x16xf32, #tpu.memory_space<vmem>>, vector<5x16xf32>
    %cst = arith.constant dense<0.000000e+00> : vector<16x16xf32>
    %2 = tpu.matmul %0, %1, %cst {dimension_numbers = #tpu.dot_dimension_numbers<[1], [0], [0], [1], [0, 0, 1, 1], [], []>} : vector<16x5xf32>, vector<5x16xf32>, vector<16x16xf32> -> vector<16x16xf32>
    %c0_3 = arith.constant 0 : index
    %c0_4 = arith.constant 0 : index
    %3 = vector.load %arg5[%c0_3, %c0_4] : memref<1x16xf32, #tpu.memory_space<vmem>>, vector<1x16xf32>
    %4 = vector.broadcast %3 : vector<1x16xf32> to vector<16x16xf32>
    %5 = arith.addf %2, %4 : vector<16x16xf32>
    %cst_5 = arith.constant 0.000000e+00 : f32
    %6 = vector.broadcast %cst_5 : f32 to vector<16x16xf32>
    %7 = arith.cmpf oge, %5, %6 : vector<16x16xf32>
    %cst_6 = arith.constant 1.000000e-01 : f32
    %8 = vector.broadcast %cst_6 : f32 to vector<16x16xf32>
    %9 = arith.mulf %8, %5 : vector<16x16xf32>
    %10 = arith.select %7, %5, %9 : vector<16x16xi1>, vector<16x16xf32>
    %c0_7 = arith.constant 0 : index
    %c0_8 = arith.constant 0 : index
    %11 = vector.load %arg6[%c0_7, %c0_8] : memref<16x96xf32, #tpu.memory_space<vmem>>, vector<16x96xf32>
    %cst_9 = arith.constant dense<0.000000e+00> : vector<16x96xf32>
    %12 = tpu.matmul %10, %11, %cst_9 {dimension_numbers = #tpu.dot_dimension_numbers<[1], [0], [0], [1], [0, 0, 1, 1], [], []>} : vector<16x16xf32>, vector<16x96xf32>, vector<16x96xf32> -> vector<16x96xf32>
    %c0_10 = arith.constant 0 : index
    %c0_11 = arith.constant 0 : index
    %13 = vector.load %arg7[%c0_10, %c0_11] : memref<1x96xf32, #tpu.memory_space<vmem>>, vector<1x96xf32>
    %14 = vector.broadcast %13 : vector<1x96xf32> to vector<16x96xf32>
    %15 = arith.addf %12, %14 : vector<16x96xf32>
    %c0_12 = arith.constant 0 : index
    %c0_13 = arith.constant 0 : index
    %16 = vector.load %arg1[%c0_12, %c0_13] : memref<16x18xf32, #tpu.memory_space<vmem>>, vector<16x18xf32>
    %c0_14 = arith.constant 0 : index
    %c0_15 = arith.constant 0 : index
    %17 = vector.load %arg8[%c0_14, %c0_15] : memref<18x32xf32, #tpu.memory_space<vmem>>, vector<18x32xf32>
    %cst_16 = arith.constant dense<0.000000e+00> : vector<16x32xf32>
    %18 = tpu.matmul %16, %17, %cst_16 {dimension_numbers = #tpu.dot_dimension_numbers<[1], [0], [0], [1], [0, 0, 1, 1], [], []>} : vector<16x18xf32>, vector<18x32xf32>, vector<16x32xf32> -> vector<16x32xf32>
    %c0_17 = arith.constant 0 : index
    %c0_18 = arith.constant 0 : index
    %19 = vector.load %arg9[%c0_17, %c0_18] : memref<1x32xf32, #tpu.memory_space<vmem>>, vector<1x32xf32>
    %20 = vector.broadcast %19 : vector<1x32xf32> to vector<16x32xf32>
    %21 = arith.addf %18, %20 : vector<16x32xf32>
    %cst_19 = arith.constant 0.000000e+00 : f32
    %22 = vector.broadcast %cst_19 : f32 to vector<16x32xf32>
    %23 = arith.cmpf oge, %21, %22 : vector<16x32xf32>
    %cst_20 = arith.constant 1.000000e-01 : f32
    %24 = vector.broadcast %cst_20 : f32 to vector<16x32xf32>
    %25 = arith.mulf %24, %21 : vector<16x32xf32>
    %26 = arith.select %23, %21, %25 : vector<16x32xi1>, vector<16x32xf32>
    %c0_21 = arith.constant 0 : index
    %c0_22 = arith.constant 0 : index
    %27 = vector.load %arg10[%c0_21, %c0_22] : memref<32x96xf32, #tpu.memory_space<vmem>>, vector<32x96xf32>
    %cst_23 = arith.constant dense<0.000000e+00> : vector<16x96xf32>
    %28 = tpu.matmul %26, %27, %cst_23 {dimension_numbers = #tpu.dot_dimension_numbers<[1], [0], [0], [1], [0, 0, 1, 1], [], []>} : vector<16x32xf32>, vector<32x96xf32>, vector<16x96xf32> -> vector<16x96xf32>
    %c0_24 = arith.constant 0 : index
    %c0_25 = arith.constant 0 : index
    %29 = vector.load %arg11[%c0_24, %c0_25] : memref<1x96xf32, #tpu.memory_space<vmem>>, vector<1x96xf32>
    %30 = vector.broadcast %29 : vector<1x96xf32> to vector<16x96xf32>
    %31 = arith.addf %28, %30 : vector<16x96xf32>
    %32 = vector.extract_strided_slice %31 {offsets = [0, 0], sizes = [16, 48], strides = [1, 1]} : vector<16x96xf32> to vector<16x48xf32>
    %33 = vector.extract_strided_slice %31 {offsets = [0, 48], sizes = [16, 48], strides = [1, 1]} : vector<16x96xf32> to vector<16x48xf32>
    %c0_26 = arith.constant 0 : index
    %c0_27 = arith.constant 0 : index
    %34 = vector.load %arg2[%c0_26, %c0_27] : memref<16x1xf32, #tpu.memory_space<vmem>>, vector<16x1xf32>
    %c0_28 = arith.constant 0 : index
    %c0_29 = arith.constant 0 : index
    %35 = vector.load %arg12[%c0_28, %c0_29] : memref<64x192xf32, #tpu.memory_space<vmem>>, vector<64x192xf32>
    %c0_30 = arith.constant 0 : index
    %c0_31 = arith.constant 0 : index
    %36 = vector.load %arg13[%c0_30, %c0_31] : memref<1x192xf32, #tpu.memory_space<vmem>>, vector<1x192xf32>
    %cst_32 = arith.constant 0.000000e+00 : f32
    %37 = vector.broadcast %cst_32 : f32 to vector<2x64xf32>
    %cst_33 = arith.constant dense<0.000000e+00> : vector<2x192xf32>
    %38 = tpu.matmul %37, %35, %cst_33 {dimension_numbers = #tpu.dot_dimension_numbers<[1], [0], [0], [1], [0, 0, 1, 1], [], []>} : vector<2x64xf32>, vector<64x192xf32>, vector<2x192xf32> -> vector<2x192xf32>
    %39 = vector.broadcast %36 : vector<1x192xf32> to vector<2x192xf32>
    %40 = arith.addf %38, %39 : vector<2x192xf32>
    %41 = vector.extract_strided_slice %37 {offsets = [0, 0], sizes = [2, 32], strides = [1, 1]} : vector<2x64xf32> to vector<2x32xf32>
    %42 = vector.extract_strided_slice %37 {offsets = [0, 32], sizes = [2, 16], strides = [1, 1]} : vector<2x64xf32> to vector<2x16xf32>
    %43 = vector.extract_strided_slice %37 {offsets = [0, 48], sizes = [2, 16], strides = [1, 1]} : vector<2x64xf32> to vector<2x16xf32>
    %44 = vector.extract_strided_slice %15 {offsets = [0, 0], sizes = [2, 96], strides = [1, 1]} : vector<16x96xf32> to vector<2x96xf32>
    %45 = vector.extract_strided_slice %40 {offsets = [0, 0], sizes = [2, 96], strides = [1, 1]} : vector<2x192xf32> to vector<2x96xf32>
    %46 = vector.extract_strided_slice %44 {offsets = [0, 0], sizes = [2, 32], strides = [1, 1]} : vector<2x96xf32> to vector<2x32xf32>
    %47 = vector.extract_strided_slice %45 {offsets = [0, 0], sizes = [2, 32], strides = [1, 1]} : vector<2x96xf32> to vector<2x32xf32>
    %48 = arith.addf %46, %47 : vector<2x32xf32>
    %49 = arith.negf %48 : vector<2x32xf32>
    %50 = math.exp %49 : vector<2x32xf32>
    %cst_34 = arith.constant 1.000000e+00 : f32
    %51 = vector.broadcast %cst_34 : f32 to vector<2x32xf32>
    %52 = arith.addf %51, %50 : vector<2x32xf32>
    %53 = arith.divf %51, %52 : vector<2x32xf32>
    %54 = vector.extract_strided_slice %44 {offsets = [0, 32], sizes = [2, 32], strides = [1, 1]} : vector<2x96xf32> to vector<2x32xf32>
    %55 = vector.extract_strided_slice %45 {offsets = [0, 32], sizes = [2, 32], strides = [1, 1]} : vector<2x96xf32> to vector<2x32xf32>
    %56 = arith.addf %54, %55 : vector<2x32xf32>
    %57 = arith.negf %56 : vector<2x32xf32>
    %58 = math.exp %57 : vector<2x32xf32>
    %cst_35 = arith.constant 1.000000e+00 : f32
    %59 = vector.broadcast %cst_35 : f32 to vector<2x32xf32>
    %60 = arith.addf %59, %58 : vector<2x32xf32>
    %61 = arith.divf %59, %60 : vector<2x32xf32>
    %62 = vector.extract_strided_slice %44 {offsets = [0, 64], sizes = [2, 32], strides = [1, 1]} : vector<2x96xf32> to vector<2x32xf32>
    %63 = vector.extract_strided_slice %45 {offsets = [0, 64], sizes = [2, 32], strides = [1, 1]} : vector<2x96xf32> to vector<2x32xf32>
    %64 = arith.mulf %53, %63 : vector<2x32xf32>
    %65 = arith.addf %62, %64 : vector<2x32xf32>
    %66 = math.tanh %65 : vector<2x32xf32>
    %cst_36 = arith.constant 1.000000e+00 : f32
    %67 = vector.broadcast %cst_36 : f32 to vector<2x32xf32>
    %68 = arith.subf %67, %61 : vector<2x32xf32>
    %69 = arith.mulf %68, %66 : vector<2x32xf32>
    %70 = arith.mulf %61, %41 : vector<2x32xf32>
    %71 = arith.addf %69, %70 : vector<2x32xf32>
    %72 = vector.extract_strided_slice %32 {offsets = [0, 0], sizes = [2, 48], strides = [1, 1]} : vector<16x48xf32> to vector<2x48xf32>
    %73 = vector.extract_strided_slice %40 {offsets = [0, 96], sizes = [2, 48], strides = [1, 1]} : vector<2x192xf32> to vector<2x48xf32>
    %74 = vector.extract_strided_slice %72 {offsets = [0, 0], sizes = [2, 16], strides = [1, 1]} : vector<2x48xf32> to vector<2x16xf32>
    %75 = vector.extract_strided_slice %73 {offsets = [0, 0], sizes = [2, 16], strides = [1, 1]} : vector<2x48xf32> to vector<2x16xf32>
    %76 = arith.addf %74, %75 : vector<2x16xf32>
    %77 = arith.negf %76 : vector<2x16xf32>
    %78 = math.exp %77 : vector<2x16xf32>
    %cst_37 = arith.constant 1.000000e+00 : f32
    %79 = vector.broadcast %cst_37 : f32 to vector<2x16xf32>
    %80 = arith.addf %79, %78 : vector<2x16xf32>
    %81 = arith.divf %79, %80 : vector<2x16xf32>
    %82 = vector.extract_strided_slice %72 {offsets = [0, 16], sizes = [2, 16], strides = [1, 1]} : vector<2x48xf32> to vector<2x16xf32>
    %83 = vector.extract_strided_slice %73 {offsets = [0, 16], sizes = [2, 16], strides = [1, 1]} : vector<2x48xf32> to vector<2x16xf32>
    %84 = arith.addf %82, %83 : vector<2x16xf32>
    %85 = arith.negf %84 : vector<2x16xf32>
    %86 = math.exp %85 : vector<2x16xf32>
    %cst_38 = arith.constant 1.000000e+00 : f32
    %87 = vector.broadcast %cst_38 : f32 to vector<2x16xf32>
    %88 = arith.addf %87, %86 : vector<2x16xf32>
    %89 = arith.divf %87, %88 : vector<2x16xf32>
    %90 = vector.extract_strided_slice %72 {offsets = [0, 32], sizes = [2, 16], strides = [1, 1]} : vector<2x48xf32> to vector<2x16xf32>
    %91 = vector.extract_strided_slice %73 {offsets = [0, 32], sizes = [2, 16], strides = [1, 1]} : vector<2x48xf32> to vector<2x16xf32>
    %92 = arith.mulf %81, %91 : vector<2x16xf32>
    %93 = arith.addf %90, %92 : vector<2x16xf32>
    %94 = math.tanh %93 : vector<2x16xf32>
    %cst_39 = arith.constant 1.000000e+00 : f32
    %95 = vector.broadcast %cst_39 : f32 to vector<2x16xf32>
    %96 = arith.subf %95, %89 : vector<2x16xf32>
    %97 = arith.mulf %96, %94 : vector<2x16xf32>
    %98 = arith.mulf %89, %42 : vector<2x16xf32>
    %99 = arith.addf %97, %98 : vector<2x16xf32>
    %100 = vector.extract_strided_slice %33 {offsets = [14, 0], sizes = [2, 48], strides = [1, 1]} : vector<16x48xf32> to vector<2x48xf32>
    %101 = vector.extract_strided_slice %40 {offsets = [0, 144], sizes = [2, 48], strides = [1, 1]} : vector<2x192xf32> to vector<2x48xf32>
    %102 = vector.extract_strided_slice %100 {offsets = [0, 0], sizes = [2, 16], strides = [1, 1]} : vector<2x48xf32> to vector<2x16xf32>
    %103 = vector.extract_strided_slice %101 {offsets = [0, 0], sizes = [2, 16], strides = [1, 1]} : vector<2x48xf32> to vector<2x16xf32>
    %104 = arith.addf %102, %103 : vector<2x16xf32>
    %105 = arith.negf %104 : vector<2x16xf32>
    %106 = math.exp %105 : vector<2x16xf32>
    %cst_40 = arith.constant 1.000000e+00 : f32
    %107 = vector.broadcast %cst_40 : f32 to vector<2x16xf32>
    %108 = arith.addf %107, %106 : vector<2x16xf32>
    %109 = arith.divf %107, %108 : vector<2x16xf32>
    %110 = vector.extract_strided_slice %100 {offsets = [0, 16], sizes = [2, 16], strides = [1, 1]} : vector<2x48xf32> to vector<2x16xf32>
    %111 = vector.extract_strided_slice %101 {offsets = [0, 16], sizes = [2, 16], strides = [1, 1]} : vector<2x48xf32> to vector<2x16xf32>
    %112 = arith.addf %110, %111 : vector<2x16xf32>
    %113 = arith.negf %112 : vector<2x16xf32>
    %114 = math.exp %113 : vector<2x16xf32>
    %cst_41 = arith.constant 1.000000e+00 : f32
    %115 = vector.broadcast %cst_41 : f32 to vector<2x16xf32>
    %116 = arith.addf %115, %114 : vector<2x16xf32>
    %117 = arith.divf %115, %116 : vector<2x16xf32>
    %118 = vector.extract_strided_slice %100 {offsets = [0, 32], sizes = [2, 16], strides = [1, 1]} : vector<2x48xf32> to vector<2x16xf32>
    %119 = vector.extract_strided_slice %101 {offsets = [0, 32], sizes = [2, 16], strides = [1, 1]} : vector<2x48xf32> to vector<2x16xf32>
    %120 = arith.mulf %109, %119 : vector<2x16xf32>
    %121 = arith.addf %118, %120 : vector<2x16xf32>
    %122 = math.tanh %121 : vector<2x16xf32>
    %cst_42 = arith.constant 1.000000e+00 : f32
    %123 = vector.broadcast %cst_42 : f32 to vector<2x16xf32>
    %124 = arith.subf %123, %117 : vector<2x16xf32>
    %125 = arith.mulf %124, %122 : vector<2x16xf32>
    %126 = arith.mulf %117, %43 : vector<2x16xf32>
    %127 = arith.addf %125, %126 : vector<2x16xf32>
    %128 = vector.extract_strided_slice %34 {offsets = [14, 0], sizes = [2, 1], strides = [1, 1]} : vector<16x1xf32> to vector<2x1xf32>
    %129 = vector.broadcast %128 : vector<2x1xf32> to vector<2x16xf32>
    %130 = arith.mulf %127, %129 : vector<2x16xf32>
    %131 = vector.extract_strided_slice %34 {offsets = [0, 0], sizes = [2, 1], strides = [1, 1]} : vector<16x1xf32> to vector<2x1xf32>
    %132 = vector.broadcast %131 : vector<2x1xf32> to vector<2x16xf32>
    %133 = arith.mulf %99, %132 : vector<2x16xf32>
    %134 = vector.extract_strided_slice %133 {offsets = [0, 0], sizes = [1, 16], strides = [1, 1]} : vector<2x16xf32> to vector<1x16xf32>
    %c0_43 = arith.constant 0 : index
    %c0_44 = arith.constant 0 : index
    %135 = vector.load %arg25[%c0_43, %c0_44] : memref<16x32xf32, #tpu.memory_space<vmem>>, vector<1x16xf32>
    tpu.vector_store %arg25[%c0_43, %c0_44], %134 {strides = array<i32>} : memref<16x32xf32, #tpu.memory_space<vmem>>, vector<1x16xf32>,
    %136 = vector.extract_strided_slice %130 {offsets = [0, 0], sizes = [1, 16], strides = [1, 1]} : vector<2x16xf32> to vector<1x16xf32>
    %c7 = arith.constant 7 : index
    %c16 = arith.constant 16 : index
    %137 = vector.load %arg25[%c7, %c16] : memref<16x32xf32, #tpu.memory_space<vmem>>, vector<1x16xf32>
    tpu.vector_store %arg25[%c7, %c16], %136 {strides = array<i32>} : memref<16x32xf32, #tpu.memory_space<vmem>>, vector<1x16xf32>,
    %138 = vector.extract_strided_slice %133 {offsets = [1, 0], sizes = [1, 16], strides = [1, 1]} : vector<2x16xf32> to vector<1x16xf32>
    %c8 = arith.constant 8 : index
    %c0_45 = arith.constant 0 : index
    %139 = vector.load %arg25[%c8, %c0_45] : memref<16x32xf32, #tpu.memory_space<vmem>>, vector<1x16xf32>
    tpu.vector_store %arg25[%c8, %c0_45], %138 {strides = array<i32>} : memref<16x32xf32, #tpu.memory_space<vmem>>, vector<1x16xf32>,
    %140 = vector.extract_strided_slice %130 {offsets = [1, 0], sizes = [1, 16], strides = [1, 1]} : vector<2x16xf32> to vector<1x16xf32>
    %c15 = arith.constant 15 : index
    %c16_46 = arith.constant 16 : index
    %141 = vector.load %arg25[%c15, %c16_46] : memref<16x32xf32, #tpu.memory_space<vmem>>, vector<1x16xf32>
    tpu.vector_store %arg25[%c15, %c16_46], %140 {strides = array<i32>} : memref<16x32xf32, #tpu.memory_space<vmem>>, vector<1x16xf32>,
    %142 = tpu.concatenate %71, %99, %130 in 1 : vector<2x32xf32>, vector<2x16xf32>, vector<2x16xf32> -> vector<2x64xf32>
    %cst_47 = arith.constant dense<0.000000e+00> : vector<2x192xf32>
    %143 = tpu.matmul %142, %35, %cst_47 {dimension_numbers = #tpu.dot_dimension_numbers<[1], [0], [0], [1], [0, 0, 1, 1], [], []>} : vector<2x64xf32>, vector<64x192xf32>, vector<2x192xf32> -> vector<2x192xf32>
    %144 = vector.broadcast %36 : vector<1x192xf32> to vector<2x192xf32>
    %145 = arith.addf %143, %144 : vector<2x192xf32>
    %146 = vector.extract_strided_slice %142 {offsets = [0, 0], sizes = [2, 32], strides = [1, 1]} : vector<2x64xf32> to vector<2x32xf32>
    %147 = vector.extract_strided_slice %142 {offsets = [0, 32], sizes = [2, 16], strides = [1, 1]} : vector<2x64xf32> to vector<2x16xf32>
    %148 = vector.extract_strided_slice %142 {offsets = [0, 48], sizes = [2, 16], strides = [1, 1]} : vector<2x64xf32> to vector<2x16xf32>
    %149 = vector.extract_strided_slice %15 {offsets = [2, 0], sizes = [2, 96], strides = [1, 1]} : vector<16x96xf32> to vector<2x96xf32>
    %150 = vector.extract_strided_slice %145 {offsets = [0, 0], sizes = [2, 96], strides = [1, 1]} : vector<2x192xf32> to vector<2x96xf32>
    %151 = vector.extract_strided_slice %149 {offsets = [0, 0], sizes = [2, 32], strides = [1, 1]} : vector<2x96xf32> to vector<2x32xf32>
    %152 = vector.extract_strided_slice %150 {offsets = [0, 0], sizes = [2, 32], strides = [1, 1]} : vector<2x96xf32> to vector<2x32xf32>
    %153 = arith.addf %151, %152 : vector<2x32xf32>
    %154 = arith.negf %153 : vector<2x32xf32>
    %155 = math.exp %154 : vector<2x32xf32>
    %cst_48 = arith.constant 1.000000e+00 : f32
    %156 = vector.broadcast %cst_48 : f32 to vector<2x32xf32>
    %157 = arith.addf %156, %155 : vector<2x32xf32>
    %158 = arith.divf %156, %157 : vector<2x32xf32>
    %159 = vector.extract_strided_slice %149 {offsets = [0, 32], sizes = [2, 32], strides = [1, 1]} : vector<2x96xf32> to vector<2x32xf32>
    %160 = vector.extract_strided_slice %150 {offsets = [0, 32], sizes = [2, 32], strides = [1, 1]} : vector<2x96xf32> to vector<2x32xf32>
    %161 = arith.addf %159, %160 : vector<2x32xf32>
    %162 = arith.negf %161 : vector<2x32xf32>
    %163 = math.exp %162 : vector<2x32xf32>
    %cst_49 = arith.constant 1.000000e+00 : f32
    %164 = vector.broadcast %cst_49 : f32 to vector<2x32xf32>
    %165 = arith.addf %164, %163 : vector<2x32xf32>
    %166 = arith.divf %164, %165 : vector<2x32xf32>
    %167 = vector.extract_strided_slice %149 {offsets = [0, 64], sizes = [2, 32], strides = [1, 1]} : vector<2x96xf32> to vector<2x32xf32>
    %168 = vector.extract_strided_slice %150 {offsets = [0, 64], sizes = [2, 32], strides = [1, 1]} : vector<2x96xf32> to vector<2x32xf32>
    %169 = arith.mulf %158, %168 : vector<2x32xf32>
    %170 = arith.addf %167, %169 : vector<2x32xf32>
    %171 = math.tanh %170 : vector<2x32xf32>
    %cst_50 = arith.constant 1.000000e+00 : f32
    %172 = vector.broadcast %cst_50 : f32 to vector<2x32xf32>
    %173 = arith.subf %172, %166 : vector<2x32xf32>
    %174 = arith.mulf %173, %171 : vector<2x32xf32>
    %175 = arith.mulf %166, %146 : vector<2x32xf32>
    %176 = arith.addf %174, %175 : vector<2x32xf32>
    %177 = vector.extract_strided_slice %32 {offsets = [2, 0], sizes = [2, 48], strides = [1, 1]} : vector<16x48xf32> to vector<2x48xf32>
    %178 = vector.extract_strided_slice %145 {offsets = [0, 96], sizes = [2, 48], strides = [1, 1]} : vector<2x192xf32> to vector<2x48xf32>
    %179 = vector.extract_strided_slice %177 {offsets = [0, 0], sizes = [2, 16], strides = [1, 1]} : vector<2x48xf32> to vector<2x16xf32>
    %180 = vector.extract_strided_slice %178 {offsets = [0, 0], sizes = [2, 16], strides = [1, 1]} : vector<2x48xf32> to vector<2x16xf32>
    %181 = arith.addf %179, %180 : vector<2x16xf32>
    %182 = arith.negf %181 : vector<2x16xf32>
    %183 = math.exp %182 : vector<2x16xf32>
    %cst_51 = arith.constant 1.000000e+00 : f32
    %184 = vector.broadcast %cst_51 : f32 to vector<2x16xf32>
    %185 = arith.addf %184, %183 : vector<2x16xf32>
    %186 = arith.divf %184, %185 : vector<2x16xf32>
    %187 = vector.extract_strided_slice %177 {offsets = [0, 16], sizes = [2, 16], strides = [1, 1]} : vector<2x48xf32> to vector<2x16xf32>
    %188 = vector.extract_strided_slice %178 {offsets = [0, 16], sizes = [2, 16], strides = [1, 1]} : vector<2x48xf32> to vector<2x16xf32>
    %189 = arith.addf %187, %188 : vector<2x16xf32>
    %190 = arith.negf %189 : vector<2x16xf32>
    %191 = math.exp %190 : vector<2x16xf32>
    %cst_52 = arith.constant 1.000000e+00 : f32
    %192 = vector.broadcast %cst_52 : f32 to vector<2x16xf32>
    %193 = arith.addf %192, %191 : vector<2x16xf32>
    %194 = arith.divf %192, %193 : vector<2x16xf32>
    %195 = vector.extract_strided_slice %177 {offsets = [0, 32], sizes = [2, 16], strides = [1, 1]} : vector<2x48xf32> to vector<2x16xf32>
    %196 = vector.extract_strided_slice %178 {offsets = [0, 32], sizes = [2, 16], strides = [1, 1]} : vector<2x48xf32> to vector<2x16xf32>
    %197 = arith.mulf %186, %196 : vector<2x16xf32>
    %198 = arith.addf %195, %197 : vector<2x16xf32>
    %199 = math.tanh %198 : vector<2x16xf32>
    %cst_53 = arith.constant 1.000000e+00 : f32
    %200 = vector.broadcast %cst_53 : f32 to vector<2x16xf32>
    %201 = arith.subf %200, %194 : vector<2x16xf32>
    %202 = arith.mulf %201, %199 : vector<2x16xf32>
    %203 = arith.mulf %194, %147 : vector<2x16xf32>
    %204 = arith.addf %202, %203 : vector<2x16xf32>
    %205 = vector.extract_strided_slice %33 {offsets = [12, 0], sizes = [2, 48], strides = [1, 1]} : vector<16x48xf32> to vector<2x48xf32>
    %206 = vector.extract_strided_slice %145 {offsets = [0, 144], sizes = [2, 48], strides = [1, 1]} : vector<2x192xf32> to vector<2x48xf32>
    %207 = vector.extract_strided_slice %205 {offsets = [0, 0], sizes = [2, 16], strides = [1, 1]} : vector<2x48xf32> to vector<2x16xf32>
    %208 = vector.extract_strided_slice %206 {offsets = [0, 0], sizes = [2, 16], strides = [1, 1]} : vector<2x48xf32> to vector<2x16xf32>
    %209 = arith.addf %207, %208 : vector<2x16xf32>
    %210 = arith.negf %209 : vector<2x16xf32>
    %211 = math.exp %210 : vector<2x16xf32>
    %cst_54 = arith.constant 1.000000e+00 : f32
    %212 = vector.broadcast %cst_54 : f32 to vector<2x16xf32>
    %213 = arith.addf %212, %211 : vector<2x16xf32>
    %214 = arith.divf %212, %213 : vector<2x16xf32>
    %215 = vector.extract_strided_slice %205 {offsets = [0, 16], sizes = [2, 16], strides = [1, 1]} : vector<2x48xf32> to vector<2x16xf32>
    %216 = vector.extract_strided_slice %206 {offsets = [0, 16], sizes = [2, 16], strides = [1, 1]} : vector<2x48xf32> to vector<2x16xf32>
    %217 = arith.addf %215, %216 : vector<2x16xf32>
    %218 = arith.negf %217 : vector<2x16xf32>
    %219 = math.exp %218 : vector<2x16xf32>
    %cst_55 = arith.constant 1.000000e+00 : f32
    %220 = vector.broadcast %cst_55 : f32 to vector<2x16xf32>
    %221 = arith.addf %220, %219 : vector<2x16xf32>
    %222 = arith.divf %220, %221 : vector<2x16xf32>
    %223 = vector.extract_strided_slice %205 {offsets = [0, 32], sizes = [2, 16], strides = [1, 1]} : vector<2x48xf32> to vector<2x16xf32>
    %224 = vector.extract_strided_slice %206 {offsets = [0, 32], sizes = [2, 16], strides = [1, 1]} : vector<2x48xf32> to vector<2x16xf32>
    %225 = arith.mulf %214, %224 : vector<2x16xf32>
    %226 = arith.addf %223, %225 : vector<2x16xf32>
    %227 = math.tanh %226 : vector<2x16xf32>
    %cst_56 = arith.constant 1.000000e+00 : f32
    %228 = vector.broadcast %cst_56 : f32 to vector<2x16xf32>
    %229 = arith.subf %228, %222 : vector<2x16xf32>
    %230 = arith.mulf %229, %227 : vector<2x16xf32>
    %231 = arith.mulf %222, %148 : vector<2x16xf32>
    %232 = arith.addf %230, %231 : vector<2x16xf32>
    %233 = vector.extract_strided_slice %34 {offsets = [12, 0], sizes = [2, 1], strides = [1, 1]} : vector<16x1xf32> to vector<2x1xf32>
    %234 = vector.broadcast %233 : vector<2x1xf32> to vector<2x16xf32>
    %235 = arith.mulf %232, %234 : vector<2x16xf32>
    %236 = vector.extract_strided_slice %34 {offsets = [2, 0], sizes = [2, 1], strides = [1, 1]} : vector<16x1xf32> to vector<2x1xf32>
    %237 = vector.broadcast %236 : vector<2x1xf32> to vector<2x16xf32>
    %238 = arith.mulf %204, %237 : vector<2x16xf32>
    %239 = vector.extract_strided_slice %238 {offsets = [0, 0], sizes = [1, 16], strides = [1, 1]} : vector<2x16xf32> to vector<1x16xf32>
    %c1 = arith.constant 1 : index
    %c0_57 = arith.constant 0 : index
    %240 = vector.load %arg25[%c1, %c0_57] : memref<16x32xf32, #tpu.memory_space<vmem>>, vector<1x16xf32>
    tpu.vector_store %arg25[%c1, %c0_57], %239 {strides = array<i32>} : memref<16x32xf32, #tpu.memory_space<vmem>>, vector<1x16xf32>,
    %241 = vector.extract_strided_slice %235 {offsets = [0, 0], sizes = [1, 16], strides = [1, 1]} : vector<2x16xf32> to vector<1x16xf32>
    %c6 = arith.constant 6 : index
    %c16_58 = arith.constant 16 : index
    %242 = vector.load %arg25[%c6, %c16_58] : memref<16x32xf32, #tpu.memory_space<vmem>>, vector<1x16xf32>
    tpu.vector_store %arg25[%c6, %c16_58], %241 {strides = array<i32>} : memref<16x32xf32, #tpu.memory_space<vmem>>, vector<1x16xf32>,
    %243 = vector.extract_strided_slice %238 {offsets = [1, 0], sizes = [1, 16], strides = [1, 1]} : vector<2x16xf32> to vector<1x16xf32>
    %c9 = arith.constant 9 : index
    %c0_59 = arith.constant 0 : index
    %244 = vector.load %arg25[%c9, %c0_59] : memref<16x32xf32, #tpu.memory_space<vmem>>, vector<1x16xf32>
    tpu.vector_store %arg25[%c9, %c0_59], %243 {strides = array<i32>} : memref<16x32xf32, #tpu.memory_space<vmem>>, vector<1x16xf32>,
    %245 = vector.extract_strided_slice %235 {offsets = [1, 0], sizes = [1, 16], strides = [1, 1]} : vector<2x16xf32> to vector<1x16xf32>
    %c14 = arith.constant 14 : index
    %c16_60 = arith.constant 16 : index
    %246 = vector.load %arg25[%c14, %c16_60] : memref<16x32xf32, #tpu.memory_space<vmem>>, vector<1x16xf32>
    tpu.vector_store %arg25[%c14, %c16_60], %245 {strides = array<i32>} : memref<16x32xf32, #tpu.memory_space<vmem>>, vector<1x16xf32>,
    %247 = tpu.concatenate %176, %204, %235 in 1 : vector<2x32xf32>, vector<2x16xf32>, vector<2x16xf32> -> vector<2x64xf32>
    %cst_61 = arith.constant dense<0.000000e+00> : vector<2x192xf32>
    %248 = tpu.matmul %247, %35, %cst_61 {dimension_numbers = #tpu.dot_dimension_numbers<[1], [0], [0], [1], [0, 0, 1, 1], [], []>} : vector<2x64xf32>, vector<64x192xf32>, vector<2x192xf32> -> vector<2x192xf32>
    %249 = vector.broadcast %36 : vector<1x192xf32> to vector<2x192xf32>
    %250 = arith.addf %248, %249 : vector<2x192xf32>
    %251 = vector.extract_strided_slice %247 {offsets = [0, 0], sizes = [2, 32], strides = [1, 1]} : vector<2x64xf32> to vector<2x32xf32>
    %252 = vector.extract_strided_slice %247 {offsets = [0, 32], sizes = [2, 16], strides = [1, 1]} : vector<2x64xf32> to vector<2x16xf32>
    %253 = vector.extract_strided_slice %247 {offsets = [0, 48], sizes = [2, 16], strides = [1, 1]} : vector<2x64xf32> to vector<2x16xf32>
    %254 = vector.extract_strided_slice %15 {offsets = [4, 0], sizes = [2, 96], strides = [1, 1]} : vector<16x96xf32> to vector<2x96xf32>
    %255 = vector.extract_strided_slice %250 {offsets = [0, 0], sizes = [2, 96], strides = [1, 1]} : vector<2x192xf32> to vector<2x96xf32>
    %256 = vector.extract_strided_slice %254 {offsets = [0, 0], sizes = [2, 32], strides = [1, 1]} : vector<2x96xf32> to vector<2x32xf32>
    %257 = vector.extract_strided_slice %255 {offsets = [0, 0], sizes = [2, 32], strides = [1, 1]} : vector<2x96xf32> to vector<2x32xf32>
    %258 = arith.addf %256, %257 : vector<2x32xf32>
    %259 = arith.negf %258 : vector<2x32xf32>
    %260 = math.exp %259 : vector<2x32xf32>
    %cst_62 = arith.constant 1.000000e+00 : f32
    %261 = vector.broadcast %cst_62 : f32 to vector<2x32xf32>
    %262 = arith.addf %261, %260 : vector<2x32xf32>
    %263 = arith.divf %261, %262 : vector<2x32xf32>
    %264 = vector.extract_strided_slice %254 {offsets = [0, 32], sizes = [2, 32], strides = [1, 1]} : vector<2x96xf32> to vector<2x32xf32>
    %265 = vector.extract_strided_slice %255 {offsets = [0, 32], sizes = [2, 32], strides = [1, 1]} : vector<2x96xf32> to vector<2x32xf32>
    %266 = arith.addf %264, %265 : vector<2x32xf32>
    %267 = arith.negf %266 : vector<2x32xf32>
    %268 = math.exp %267 : vector<2x32xf32>
    %cst_63 = arith.constant 1.000000e+00 : f32
    %269 = vector.broadcast %cst_63 : f32 to vector<2x32xf32>
    %270 = arith.addf %269, %268 : vector<2x32xf32>
    %271 = arith.divf %269, %270 : vector<2x32xf32>
    %272 = vector.extract_strided_slice %254 {offsets = [0, 64], sizes = [2, 32], strides = [1, 1]} : vector<2x96xf32> to vector<2x32xf32>
    %273 = vector.extract_strided_slice %255 {offsets = [0, 64], sizes = [2, 32], strides = [1, 1]} : vector<2x96xf32> to vector<2x32xf32>
    %274 = arith.mulf %263, %273 : vector<2x32xf32>
    %275 = arith.addf %272, %274 : vector<2x32xf32>
    %276 = math.tanh %275 : vector<2x32xf32>
    %cst_64 = arith.constant 1.000000e+00 : f32
    %277 = vector.broadcast %cst_64 : f32 to vector<2x32xf32>
    %278 = arith.subf %277, %271 : vector<2x32xf32>
    %279 = arith.mulf %278, %276 : vector<2x32xf32>
    %280 = arith.mulf %271, %251 : vector<2x32xf32>
    %281 = arith.addf %279, %280 : vector<2x32xf32>
    %282 = vector.extract_strided_slice %32 {offsets = [4, 0], sizes = [2, 48], strides = [1, 1]} : vector<16x48xf32> to vector<2x48xf32>
    %283 = vector.extract_strided_slice %250 {offsets = [0, 96], sizes = [2, 48], strides = [1, 1]} : vector<2x192xf32> to vector<2x48xf32>
    %284 = vector.extract_strided_slice %282 {offsets = [0, 0], sizes = [2, 16], strides = [1, 1]} : vector<2x48xf32> to vector<2x16xf32>
    %285 = vector.extract_strided_slice %283 {offsets = [0, 0], sizes = [2, 16], strides = [1, 1]} : vector<2x48xf32> to vector<2x16xf32>
    %286 = arith.addf %284, %285 : vector<2x16xf32>
    %287 = arith.negf %286 : vector<2x16xf32>
    %288 = math.exp %287 : vector<2x16xf32>
    %cst_65 = arith.constant 1.000000e+00 : f32
    %289 = vector.broadcast %cst_65 : f32 to vector<2x16xf32>
    %290 = arith.addf %289, %288 : vector<2x16xf32>
    %291 = arith.divf %289, %290 : vector<2x16xf32>
    %292 = vector.extract_strided_slice %282 {offsets = [0, 16], sizes = [2, 16], strides = [1, 1]} : vector<2x48xf32> to vector<2x16xf32>
    %293 = vector.extract_strided_slice %283 {offsets = [0, 16], sizes = [2, 16], strides = [1, 1]} : vector<2x48xf32> to vector<2x16xf32>
    %294 = arith.addf %292, %293 : vector<2x16xf32>
    %295 = arith.negf %294 : vector<2x16xf32>
    %296 = math.exp %295 : vector<2x16xf32>
    %cst_66 = arith.constant 1.000000e+00 : f32
    %297 = vector.broadcast %cst_66 : f32 to vector<2x16xf32>
    %298 = arith.addf %297, %296 : vector<2x16xf32>
    %299 = arith.divf %297, %298 : vector<2x16xf32>
    %300 = vector.extract_strided_slice %282 {offsets = [0, 32], sizes = [2, 16], strides = [1, 1]} : vector<2x48xf32> to vector<2x16xf32>
    %301 = vector.extract_strided_slice %283 {offsets = [0, 32], sizes = [2, 16], strides = [1, 1]} : vector<2x48xf32> to vector<2x16xf32>
    %302 = arith.mulf %291, %301 : vector<2x16xf32>
    %303 = arith.addf %300, %302 : vector<2x16xf32>
    %304 = math.tanh %303 : vector<2x16xf32>
    %cst_67 = arith.constant 1.000000e+00 : f32
    %305 = vector.broadcast %cst_67 : f32 to vector<2x16xf32>
    %306 = arith.subf %305, %299 : vector<2x16xf32>
    %307 = arith.mulf %306, %304 : vector<2x16xf32>
    %308 = arith.mulf %299, %252 : vector<2x16xf32>
    %309 = arith.addf %307, %308 : vector<2x16xf32>
    %310 = vector.extract_strided_slice %33 {offsets = [10, 0], sizes = [2, 48], strides = [1, 1]} : vector<16x48xf32> to vector<2x48xf32>
    %311 = vector.extract_strided_slice %250 {offsets = [0, 144], sizes = [2, 48], strides = [1, 1]} : vector<2x192xf32> to vector<2x48xf32>
    %312 = vector.extract_strided_slice %310 {offsets = [0, 0], sizes = [2, 16], strides = [1, 1]} : vector<2x48xf32> to vector<2x16xf32>
    %313 = vector.extract_strided_slice %311 {offsets = [0, 0], sizes = [2, 16], strides = [1, 1]} : vector<2x48xf32> to vector<2x16xf32>
    %314 = arith.addf %312, %313 : vector<2x16xf32>
    %315 = arith.negf %314 : vector<2x16xf32>
    %316 = math.exp %315 : vector<2x16xf32>
    %cst_68 = arith.constant 1.000000e+00 : f32
    %317 = vector.broadcast %cst_68 : f32 to vector<2x16xf32>
    %318 = arith.addf %317, %316 : vector<2x16xf32>
    %319 = arith.divf %317, %318 : vector<2x16xf32>
    %320 = vector.extract_strided_slice %310 {offsets = [0, 16], sizes = [2, 16], strides = [1, 1]} : vector<2x48xf32> to vector<2x16xf32>
    %321 = vector.extract_strided_slice %311 {offsets = [0, 16], sizes = [2, 16], strides = [1, 1]} : vector<2x48xf32> to vector<2x16xf32>
    %322 = arith.addf %320, %321 : vector<2x16xf32>
    %323 = arith.negf %322 : vector<2x16xf32>
    %324 = math.exp %323 : vector<2x16xf32>
    %cst_69 = arith.constant 1.000000e+00 : f32
    %325 = vector.broadcast %cst_69 : f32 to vector<2x16xf32>
    %326 = arith.addf %325, %324 : vector<2x16xf32>
    %327 = arith.divf %325, %326 : vector<2x16xf32>
    %328 = vector.extract_strided_slice %310 {offsets = [0, 32], sizes = [2, 16], strides = [1, 1]} : vector<2x48xf32> to vector<2x16xf32>
    %329 = vector.extract_strided_slice %311 {offsets = [0, 32], sizes = [2, 16], strides = [1, 1]} : vector<2x48xf32> to vector<2x16xf32>
    %330 = arith.mulf %319, %329 : vector<2x16xf32>
    %331 = arith.addf %328, %330 : vector<2x16xf32>
    %332 = math.tanh %331 : vector<2x16xf32>
    %cst_70 = arith.constant 1.000000e+00 : f32
    %333 = vector.broadcast %cst_70 : f32 to vector<2x16xf32>
    %334 = arith.subf %333, %327 : vector<2x16xf32>
    %335 = arith.mulf %334, %332 : vector<2x16xf32>
    %336 = arith.mulf %327, %253 : vector<2x16xf32>
    %337 = arith.addf %335, %336 : vector<2x16xf32>
    %338 = vector.extract_strided_slice %34 {offsets = [10, 0], sizes = [2, 1], strides = [1, 1]} : vector<16x1xf32> to vector<2x1xf32>
    %339 = vector.broadcast %338 : vector<2x1xf32> to vector<2x16xf32>
    %340 = arith.mulf %337, %339 : vector<2x16xf32>
    %341 = vector.extract_strided_slice %34 {offsets = [4, 0], sizes = [2, 1], strides = [1, 1]} : vector<16x1xf32> to vector<2x1xf32>
    %342 = vector.broadcast %341 : vector<2x1xf32> to vector<2x16xf32>
    %343 = arith.mulf %309, %342 : vector<2x16xf32>
    %344 = vector.extract_strided_slice %343 {offsets = [0, 0], sizes = [1, 16], strides = [1, 1]} : vector<2x16xf32> to vector<1x16xf32>
    %c2 = arith.constant 2 : index
    %c0_71 = arith.constant 0 : index
    %345 = vector.load %arg25[%c2, %c0_71] : memref<16x32xf32, #tpu.memory_space<vmem>>, vector<1x16xf32>
    tpu.vector_store %arg25[%c2, %c0_71], %344 {strides = array<i32>} : memref<16x32xf32, #tpu.memory_space<vmem>>, vector<1x16xf32>,
    %346 = vector.extract_strided_slice %340 {offsets = [0, 0], sizes = [1, 16], strides = [1, 1]} : vector<2x16xf32> to vector<1x16xf32>
    %c5 = arith.constant 5 : index
    %c16_72 = arith.constant 16 : index
    %347 = vector.load %arg25[%c5, %c16_72] : memref<16x32xf32, #tpu.memory_space<vmem>>, vector<1x16xf32>
    tpu.vector_store %arg25[%c5, %c16_72], %346 {strides = array<i32>} : memref<16x32xf32, #tpu.memory_space<vmem>>, vector<1x16xf32>,
    %348 = vector.extract_strided_slice %343 {offsets = [1, 0], sizes = [1, 16], strides = [1, 1]} : vector<2x16xf32> to vector<1x16xf32>
    %c10 = arith.constant 10 : index
    %c0_73 = arith.constant 0 : index
    %349 = vector.load %arg25[%c10, %c0_73] : memref<16x32xf32, #tpu.memory_space<vmem>>, vector<1x16xf32>
    tpu.vector_store %arg25[%c10, %c0_73], %348 {strides = array<i32>} : memref<16x32xf32, #tpu.memory_space<vmem>>, vector<1x16xf32>,
    %350 = vector.extract_strided_slice %340 {offsets = [1, 0], sizes = [1, 16], strides = [1, 1]} : vector<2x16xf32> to vector<1x16xf32>
    %c13 = arith.constant 13 : index
    %c16_74 = arith.constant 16 : index
    %351 = vector.load %arg25[%c13, %c16_74] : memref<16x32xf32, #tpu.memory_space<vmem>>, vector<1x16xf32>
    tpu.vector_store %arg25[%c13, %c16_74], %350 {strides = array<i32>} : memref<16x32xf32, #tpu.memory_space<vmem>>, vector<1x16xf32>,
    %352 = tpu.concatenate %281, %309, %340 in 1 : vector<2x32xf32>, vector<2x16xf32>, vector<2x16xf32> -> vector<2x64xf32>
    %cst_75 = arith.constant dense<0.000000e+00> : vector<2x192xf32>
    %353 = tpu.matmul %352, %35, %cst_75 {dimension_numbers = #tpu.dot_dimension_numbers<[1], [0], [0], [1], [0, 0, 1, 1], [], []>} : vector<2x64xf32>, vector<64x192xf32>, vector<2x192xf32> -> vector<2x192xf32>
    %354 = vector.broadcast %36 : vector<1x192xf32> to vector<2x192xf32>
    %355 = arith.addf %353, %354 : vector<2x192xf32>
    %356 = vector.extract_strided_slice %352 {offsets = [0, 0], sizes = [2, 32], strides = [1, 1]} : vector<2x64xf32> to vector<2x32xf32>
    %357 = vector.extract_strided_slice %352 {offsets = [0, 32], sizes = [2, 16], strides = [1, 1]} : vector<2x64xf32> to vector<2x16xf32>
    %358 = vector.extract_strided_slice %352 {offsets = [0, 48], sizes = [2, 16], strides = [1, 1]} : vector<2x64xf32> to vector<2x16xf32>
    %359 = vector.extract_strided_slice %15 {offsets = [6, 0], sizes = [2, 96], strides = [1, 1]} : vector<16x96xf32> to vector<2x96xf32>
    %360 = vector.extract_strided_slice %355 {offsets = [0, 0], sizes = [2, 96], strides = [1, 1]} : vector<2x192xf32> to vector<2x96xf32>
    %361 = vector.extract_strided_slice %359 {offsets = [0, 0], sizes = [2, 32], strides = [1, 1]} : vector<2x96xf32> to vector<2x32xf32>
    %362 = vector.extract_strided_slice %360 {offsets = [0, 0], sizes = [2, 32], strides = [1, 1]} : vector<2x96xf32> to vector<2x32xf32>
    %363 = arith.addf %361, %362 : vector<2x32xf32>
    %364 = arith.negf %363 : vector<2x32xf32>
    %365 = math.exp %364 : vector<2x32xf32>
    %cst_76 = arith.constant 1.000000e+00 : f32
    %366 = vector.broadcast %cst_76 : f32 to vector<2x32xf32>
    %367 = arith.addf %366, %365 : vector<2x32xf32>
    %368 = arith.divf %366, %367 : vector<2x32xf32>
    %369 = vector.extract_strided_slice %359 {offsets = [0, 32], sizes = [2, 32], strides = [1, 1]} : vector<2x96xf32> to vector<2x32xf32>
    %370 = vector.extract_strided_slice %360 {offsets = [0, 32], sizes = [2, 32], strides = [1, 1]} : vector<2x96xf32> to vector<2x32xf32>
    %371 = arith.addf %369, %370 : vector<2x32xf32>
    %372 = arith.negf %371 : vector<2x32xf32>
    %373 = math.exp %372 : vector<2x32xf32>
    %cst_77 = arith.constant 1.000000e+00 : f32
    %374 = vector.broadcast %cst_77 : f32 to vector<2x32xf32>
    %375 = arith.addf %374, %373 : vector<2x32xf32>
    %376 = arith.divf %374, %375 : vector<2x32xf32>
    %377 = vector.extract_strided_slice %359 {offsets = [0, 64], sizes = [2, 32], strides = [1, 1]} : vector<2x96xf32> to vector<2x32xf32>
    %378 = vector.extract_strided_slice %360 {offsets = [0, 64], sizes = [2, 32], strides = [1, 1]} : vector<2x96xf32> to vector<2x32xf32>
    %379 = arith.mulf %368, %378 : vector<2x32xf32>
    %380 = arith.addf %377, %379 : vector<2x32xf32>
    %381 = math.tanh %380 : vector<2x32xf32>
    %cst_78 = arith.constant 1.000000e+00 : f32
    %382 = vector.broadcast %cst_78 : f32 to vector<2x32xf32>
    %383 = arith.subf %382, %376 : vector<2x32xf32>
    %384 = arith.mulf %383, %381 : vector<2x32xf32>
    %385 = arith.mulf %376, %356 : vector<2x32xf32>
    %386 = arith.addf %384, %385 : vector<2x32xf32>
    %387 = vector.extract_strided_slice %32 {offsets = [6, 0], sizes = [2, 48], strides = [1, 1]} : vector<16x48xf32> to vector<2x48xf32>
    %388 = vector.extract_strided_slice %355 {offsets = [0, 96], sizes = [2, 48], strides = [1, 1]} : vector<2x192xf32> to vector<2x48xf32>
    %389 = vector.extract_strided_slice %387 {offsets = [0, 0], sizes = [2, 16], strides = [1, 1]} : vector<2x48xf32> to vector<2x16xf32>
    %390 = vector.extract_strided_slice %388 {offsets = [0, 0], sizes = [2, 16], strides = [1, 1]} : vector<2x48xf32> to vector<2x16xf32>
    %391 = arith.addf %389, %390 : vector<2x16xf32>
    %392 = arith.negf %391 : vector<2x16xf32>
    %393 = math.exp %392 : vector<2x16xf32>
    %cst_79 = arith.constant 1.000000e+00 : f32
    %394 = vector.broadcast %cst_79 : f32 to vector<2x16xf32>
    %395 = arith.addf %394, %393 : vector<2x16xf32>
    %396 = arith.divf %394, %395 : vector<2x16xf32>
    %397 = vector.extract_strided_slice %387 {offsets = [0, 16], sizes = [2, 16], strides = [1, 1]} : vector<2x48xf32> to vector<2x16xf32>
    %398 = vector.extract_strided_slice %388 {offsets = [0, 16], sizes = [2, 16], strides = [1, 1]} : vector<2x48xf32> to vector<2x16xf32>
    %399 = arith.addf %397, %398 : vector<2x16xf32>
    %400 = arith.negf %399 : vector<2x16xf32>
    %401 = math.exp %400 : vector<2x16xf32>
    %cst_80 = arith.constant 1.000000e+00 : f32
    %402 = vector.broadcast %cst_80 : f32 to vector<2x16xf32>
    %403 = arith.addf %402, %401 : vector<2x16xf32>
    %404 = arith.divf %402, %403 : vector<2x16xf32>
    %405 = vector.extract_strided_slice %387 {offsets = [0, 32], sizes = [2, 16], strides = [1, 1]} : vector<2x48xf32> to vector<2x16xf32>
    %406 = vector.extract_strided_slice %388 {offsets = [0, 32], sizes = [2, 16], strides = [1, 1]} : vector<2x48xf32> to vector<2x16xf32>
    %407 = arith.mulf %396, %406 : vector<2x16xf32>
    %408 = arith.addf %405, %407 : vector<2x16xf32>
    %409 = math.tanh %408 : vector<2x16xf32>
    %cst_81 = arith.constant 1.000000e+00 : f32
    %410 = vector.broadcast %cst_81 : f32 to vector<2x16xf32>
    %411 = arith.subf %410, %404 : vector<2x16xf32>
    %412 = arith.mulf %411, %409 : vector<2x16xf32>
    %413 = arith.mulf %404, %357 : vector<2x16xf32>
    %414 = arith.addf %412, %413 : vector<2x16xf32>
    %415 = vector.extract_strided_slice %33 {offsets = [8, 0], sizes = [2, 48], strides = [1, 1]} : vector<16x48xf32> to vector<2x48xf32>
    %416 = vector.extract_strided_slice %355 {offsets = [0, 144], sizes = [2, 48], strides = [1, 1]} : vector<2x192xf32> to vector<2x48xf32>
    %417 = vector.extract_strided_slice %415 {offsets = [0, 0], sizes = [2, 16], strides = [1, 1]} : vector<2x48xf32> to vector<2x16xf32>
    %418 = vector.extract_strided_slice %416 {offsets = [0, 0], sizes = [2, 16], strides = [1, 1]} : vector<2x48xf32> to vector<2x16xf32>
    %419 = arith.addf %417, %418 : vector<2x16xf32>
    %420 = arith.negf %419 : vector<2x16xf32>
    %421 = math.exp %420 : vector<2x16xf32>
    %cst_82 = arith.constant 1.000000e+00 : f32
    %422 = vector.broadcast %cst_82 : f32 to vector<2x16xf32>
    %423 = arith.addf %422, %421 : vector<2x16xf32>
    %424 = arith.divf %422, %423 : vector<2x16xf32>
    %425 = vector.extract_strided_slice %415 {offsets = [0, 16], sizes = [2, 16], strides = [1, 1]} : vector<2x48xf32> to vector<2x16xf32>
    %426 = vector.extract_strided_slice %416 {offsets = [0, 16], sizes = [2, 16], strides = [1, 1]} : vector<2x48xf32> to vector<2x16xf32>
    %427 = arith.addf %425, %426 : vector<2x16xf32>
    %428 = arith.negf %427 : vector<2x16xf32>
    %429 = math.exp %428 : vector<2x16xf32>
    %cst_83 = arith.constant 1.000000e+00 : f32
    %430 = vector.broadcast %cst_83 : f32 to vector<2x16xf32>
    %431 = arith.addf %430, %429 : vector<2x16xf32>
    %432 = arith.divf %430, %431 : vector<2x16xf32>
    %433 = vector.extract_strided_slice %415 {offsets = [0, 32], sizes = [2, 16], strides = [1, 1]} : vector<2x48xf32> to vector<2x16xf32>
    %434 = vector.extract_strided_slice %416 {offsets = [0, 32], sizes = [2, 16], strides = [1, 1]} : vector<2x48xf32> to vector<2x16xf32>
    %435 = arith.mulf %424, %434 : vector<2x16xf32>
    %436 = arith.addf %433, %435 : vector<2x16xf32>
    %437 = math.tanh %436 : vector<2x16xf32>
    %cst_84 = arith.constant 1.000000e+00 : f32
    %438 = vector.broadcast %cst_84 : f32 to vector<2x16xf32>
    %439 = arith.subf %438, %432 : vector<2x16xf32>
    %440 = arith.mulf %439, %437 : vector<2x16xf32>
    %441 = arith.mulf %432, %358 : vector<2x16xf32>
    %442 = arith.addf %440, %441 : vector<2x16xf32>
    %443 = vector.extract_strided_slice %34 {offsets = [8, 0], sizes = [2, 1], strides = [1, 1]} : vector<16x1xf32> to vector<2x1xf32>
    %444 = vector.broadcast %443 : vector<2x1xf32> to vector<2x16xf32>
    %445 = arith.mulf %442, %444 : vector<2x16xf32>
    %446 = vector.extract_strided_slice %34 {offsets = [6, 0], sizes = [2, 1], strides = [1, 1]} : vector<16x1xf32> to vector<2x1xf32>
    %447 = vector.broadcast %446 : vector<2x1xf32> to vector<2x16xf32>
    %448 = arith.mulf %414, %447 : vector<2x16xf32>
    %449 = vector.extract_strided_slice %448 {offsets = [0, 0], sizes = [1, 16], strides = [1, 1]} : vector<2x16xf32> to vector<1x16xf32>
    %c3 = arith.constant 3 : index
    %c0_85 = arith.constant 0 : index
    %450 = vector.load %arg25[%c3, %c0_85] : memref<16x32xf32, #tpu.memory_space<vmem>>, vector<1x16xf32>
    tpu.vector_store %arg25[%c3, %c0_85], %449 {strides = array<i32>} : memref<16x32xf32, #tpu.memory_space<vmem>>, vector<1x16xf32>,
    %451 = vector.extract_strided_slice %445 {offsets = [0, 0], sizes = [1, 16], strides = [1, 1]} : vector<2x16xf32> to vector<1x16xf32>
    %c4 = arith.constant 4 : index
    %c16_86 = arith.constant 16 : index
    %452 = vector.load %arg25[%c4, %c16_86] : memref<16x32xf32, #tpu.memory_space<vmem>>, vector<1x16xf32>
    tpu.vector_store %arg25[%c4, %c16_86], %451 {strides = array<i32>} : memref<16x32xf32, #tpu.memory_space<vmem>>, vector<1x16xf32>,
    %453 = vector.extract_strided_slice %448 {offsets = [1, 0], sizes = [1, 16], strides = [1, 1]} : vector<2x16xf32> to vector<1x16xf32>
    %c11 = arith.constant 11 : index
    %c0_87 = arith.constant 0 : index
    %454 = vector.load %arg25[%c11, %c0_87] : memref<16x32xf32, #tpu.memory_space<vmem>>, vector<1x16xf32>
    tpu.vector_store %arg25[%c11, %c0_87], %453 {strides = array<i32>} : memref<16x32xf32, #tpu.memory_space<vmem>>, vector<1x16xf32>,
    %455 = vector.extract_strided_slice %445 {offsets = [1, 0], sizes = [1, 16], strides = [1, 1]} : vector<2x16xf32> to vector<1x16xf32>
    %c12 = arith.constant 12 : index
    %c16_88 = arith.constant 16 : index
    %456 = vector.load %arg25[%c12, %c16_88] : memref<16x32xf32, #tpu.memory_space<vmem>>, vector<1x16xf32>
    tpu.vector_store %arg25[%c12, %c16_88], %455 {strides = array<i32>} : memref<16x32xf32, #tpu.memory_space<vmem>>, vector<1x16xf32>,
    %457 = tpu.concatenate %386, %414, %445 in 1 : vector<2x32xf32>, vector<2x16xf32>, vector<2x16xf32> -> vector<2x64xf32>
    %cst_89 = arith.constant dense<0.000000e+00> : vector<2x192xf32>
    %458 = tpu.matmul %457, %35, %cst_89 {dimension_numbers = #tpu.dot_dimension_numbers<[1], [0], [0], [1], [0, 0, 1, 1], [], []>} : vector<2x64xf32>, vector<64x192xf32>, vector<2x192xf32> -> vector<2x192xf32>
    %459 = vector.broadcast %36 : vector<1x192xf32> to vector<2x192xf32>
    %460 = arith.addf %458, %459 : vector<2x192xf32>
    %461 = vector.extract_strided_slice %457 {offsets = [0, 0], sizes = [2, 32], strides = [1, 1]} : vector<2x64xf32> to vector<2x32xf32>
    %462 = vector.extract_strided_slice %457 {offsets = [0, 32], sizes = [2, 16], strides = [1, 1]} : vector<2x64xf32> to vector<2x16xf32>
    %463 = vector.extract_strided_slice %457 {offsets = [0, 48], sizes = [2, 16], strides = [1, 1]} : vector<2x64xf32> to vector<2x16xf32>
    %464 = vector.extract_strided_slice %15 {offsets = [8, 0], sizes = [2, 96], strides = [1, 1]} : vector<16x96xf32> to vector<2x96xf32>
    %465 = vector.extract_strided_slice %460 {offsets = [0, 0], sizes = [2, 96], strides = [1, 1]} : vector<2x192xf32> to vector<2x96xf32>
    %466 = vector.extract_strided_slice %464 {offsets = [0, 0], sizes = [2, 32], strides = [1, 1]} : vector<2x96xf32> to vector<2x32xf32>
    %467 = vector.extract_strided_slice %465 {offsets = [0, 0], sizes = [2, 32], strides = [1, 1]} : vector<2x96xf32> to vector<2x32xf32>
    %468 = arith.addf %466, %467 : vector<2x32xf32>
    %469 = arith.negf %468 : vector<2x32xf32>
    %470 = math.exp %469 : vector<2x32xf32>
    %cst_90 = arith.constant 1.000000e+00 : f32
    %471 = vector.broadcast %cst_90 : f32 to vector<2x32xf32>
    %472 = arith.addf %471, %470 : vector<2x32xf32>
    %473 = arith.divf %471, %472 : vector<2x32xf32>
    %474 = vector.extract_strided_slice %464 {offsets = [0, 32], sizes = [2, 32], strides = [1, 1]} : vector<2x96xf32> to vector<2x32xf32>
    %475 = vector.extract_strided_slice %465 {offsets = [0, 32], sizes = [2, 32], strides = [1, 1]} : vector<2x96xf32> to vector<2x32xf32>
    %476 = arith.addf %474, %475 : vector<2x32xf32>
    %477 = arith.negf %476 : vector<2x32xf32>
    %478 = math.exp %477 : vector<2x32xf32>
    %cst_91 = arith.constant 1.000000e+00 : f32
    %479 = vector.broadcast %cst_91 : f32 to vector<2x32xf32>
    %480 = arith.addf %479, %478 : vector<2x32xf32>
    %481 = arith.divf %479, %480 : vector<2x32xf32>
    %482 = vector.extract_strided_slice %464 {offsets = [0, 64], sizes = [2, 32], strides = [1, 1]} : vector<2x96xf32> to vector<2x32xf32>
    %483 = vector.extract_strided_slice %465 {offsets = [0, 64], sizes = [2, 32], strides = [1, 1]} : vector<2x96xf32> to vector<2x32xf32>
    %484 = arith.mulf %473, %483 : vector<2x32xf32>
    %485 = arith.addf %482, %484 : vector<2x32xf32>
    %486 = math.tanh %485 : vector<2x32xf32>
    %cst_92 = arith.constant 1.000000e+00 : f32
    %487 = vector.broadcast %cst_92 : f32 to vector<2x32xf32>
    %488 = arith.subf %487, %481 : vector<2x32xf32>
    %489 = arith.mulf %488, %486 : vector<2x32xf32>
    %490 = arith.mulf %481, %461 : vector<2x32xf32>
    %491 = arith.addf %489, %490 : vector<2x32xf32>
    %492 = vector.extract_strided_slice %32 {offsets = [8, 0], sizes = [2, 48], strides = [1, 1]} : vector<16x48xf32> to vector<2x48xf32>
    %493 = vector.extract_strided_slice %460 {offsets = [0, 96], sizes = [2, 48], strides = [1, 1]} : vector<2x192xf32> to vector<2x48xf32>
    %494 = vector.extract_strided_slice %492 {offsets = [0, 0], sizes = [2, 16], strides = [1, 1]} : vector<2x48xf32> to vector<2x16xf32>
    %495 = vector.extract_strided_slice %493 {offsets = [0, 0], sizes = [2, 16], strides = [1, 1]} : vector<2x48xf32> to vector<2x16xf32>
    %496 = arith.addf %494, %495 : vector<2x16xf32>
    %497 = arith.negf %496 : vector<2x16xf32>
    %498 = math.exp %497 : vector<2x16xf32>
    %cst_93 = arith.constant 1.000000e+00 : f32
    %499 = vector.broadcast %cst_93 : f32 to vector<2x16xf32>
    %500 = arith.addf %499, %498 : vector<2x16xf32>
    %501 = arith.divf %499, %500 : vector<2x16xf32>
    %502 = vector.extract_strided_slice %492 {offsets = [0, 16], sizes = [2, 16], strides = [1, 1]} : vector<2x48xf32> to vector<2x16xf32>
    %503 = vector.extract_strided_slice %493 {offsets = [0, 16], sizes = [2, 16], strides = [1, 1]} : vector<2x48xf32> to vector<2x16xf32>
    %504 = arith.addf %502, %503 : vector<2x16xf32>
    %505 = arith.negf %504 : vector<2x16xf32>
    %506 = math.exp %505 : vector<2x16xf32>
    %cst_94 = arith.constant 1.000000e+00 : f32
    %507 = vector.broadcast %cst_94 : f32 to vector<2x16xf32>
    %508 = arith.addf %507, %506 : vector<2x16xf32>
    %509 = arith.divf %507, %508 : vector<2x16xf32>
    %510 = vector.extract_strided_slice %492 {offsets = [0, 32], sizes = [2, 16], strides = [1, 1]} : vector<2x48xf32> to vector<2x16xf32>
    %511 = vector.extract_strided_slice %493 {offsets = [0, 32], sizes = [2, 16], strides = [1, 1]} : vector<2x48xf32> to vector<2x16xf32>
    %512 = arith.mulf %501, %511 : vector<2x16xf32>
    %513 = arith.addf %510, %512 : vector<2x16xf32>
    %514 = math.tanh %513 : vector<2x16xf32>
    %cst_95 = arith.constant 1.000000e+00 : f32
    %515 = vector.broadcast %cst_95 : f32 to vector<2x16xf32>
    %516 = arith.subf %515, %509 : vector<2x16xf32>
    %517 = arith.mulf %516, %514 : vector<2x16xf32>
    %518 = arith.mulf %509, %462 : vector<2x16xf32>
    %519 = arith.addf %517, %518 : vector<2x16xf32>
    %520 = vector.extract_strided_slice %33 {offsets = [6, 0], sizes = [2, 48], strides = [1, 1]} : vector<16x48xf32> to vector<2x48xf32>
    %521 = vector.extract_strided_slice %460 {offsets = [0, 144], sizes = [2, 48], strides = [1, 1]} : vector<2x192xf32> to vector<2x48xf32>
    %522 = vector.extract_strided_slice %520 {offsets = [0, 0], sizes = [2, 16], strides = [1, 1]} : vector<2x48xf32> to vector<2x16xf32>
    %523 = vector.extract_strided_slice %521 {offsets = [0, 0], sizes = [2, 16], strides = [1, 1]} : vector<2x48xf32> to vector<2x16xf32>
    %524 = arith.addf %522, %523 : vector<2x16xf32>
    %525 = arith.negf %524 : vector<2x16xf32>
    %526 = math.exp %525 : vector<2x16xf32>
    %cst_96 = arith.constant 1.000000e+00 : f32
    %527 = vector.broadcast %cst_96 : f32 to vector<2x16xf32>
    %528 = arith.addf %527, %526 : vector<2x16xf32>
    %529 = arith.divf %527, %528 : vector<2x16xf32>
    %530 = vector.extract_strided_slice %520 {offsets = [0, 16], sizes = [2, 16], strides = [1, 1]} : vector<2x48xf32> to vector<2x16xf32>
    %531 = vector.extract_strided_slice %521 {offsets = [0, 16], sizes = [2, 16], strides = [1, 1]} : vector<2x48xf32> to vector<2x16xf32>
    %532 = arith.addf %530, %531 : vector<2x16xf32>
    %533 = arith.negf %532 : vector<2x16xf32>
    %534 = math.exp %533 : vector<2x16xf32>
    %cst_97 = arith.constant 1.000000e+00 : f32
    %535 = vector.broadcast %cst_97 : f32 to vector<2x16xf32>
    %536 = arith.addf %535, %534 : vector<2x16xf32>
    %537 = arith.divf %535, %536 : vector<2x16xf32>
    %538 = vector.extract_strided_slice %520 {offsets = [0, 32], sizes = [2, 16], strides = [1, 1]} : vector<2x48xf32> to vector<2x16xf32>
    %539 = vector.extract_strided_slice %521 {offsets = [0, 32], sizes = [2, 16], strides = [1, 1]} : vector<2x48xf32> to vector<2x16xf32>
    %540 = arith.mulf %529, %539 : vector<2x16xf32>
    %541 = arith.addf %538, %540 : vector<2x16xf32>
    %542 = math.tanh %541 : vector<2x16xf32>
    %cst_98 = arith.constant 1.000000e+00 : f32
    %543 = vector.broadcast %cst_98 : f32 to vector<2x16xf32>
    %544 = arith.subf %543, %537 : vector<2x16xf32>
    %545 = arith.mulf %544, %542 : vector<2x16xf32>
    %546 = arith.mulf %537, %463 : vector<2x16xf32>
    %547 = arith.addf %545, %546 : vector<2x16xf32>
    %548 = vector.extract_strided_slice %34 {offsets = [6, 0], sizes = [2, 1], strides = [1, 1]} : vector<16x1xf32> to vector<2x1xf32>
    %549 = vector.broadcast %548 : vector<2x1xf32> to vector<2x16xf32>
    %550 = arith.mulf %547, %549 : vector<2x16xf32>
    %551 = vector.extract_strided_slice %34 {offsets = [8, 0], sizes = [2, 1], strides = [1, 1]} : vector<16x1xf32> to vector<2x1xf32>
    %552 = vector.broadcast %551 : vector<2x1xf32> to vector<2x16xf32>
    %553 = arith.mulf %519, %552 : vector<2x16xf32>
    %554 = vector.extract_strided_slice %553 {offsets = [0, 0], sizes = [1, 16], strides = [1, 1]} : vector<2x16xf32> to vector<1x16xf32>
    %c4_99 = arith.constant 4 : index
    %c0_100 = arith.constant 0 : index
    %555 = vector.load %arg25[%c4_99, %c0_100] : memref<16x32xf32, #tpu.memory_space<vmem>>, vector<1x16xf32>
    tpu.vector_store %arg25[%c4_99, %c0_100], %554 {strides = array<i32>} : memref<16x32xf32, #tpu.memory_space<vmem>>, vector<1x16xf32>,
    %556 = vector.extract_strided_slice %550 {offsets = [0, 0], sizes = [1, 16], strides = [1, 1]} : vector<2x16xf32> to vector<1x16xf32>
    %c3_101 = arith.constant 3 : index
    %c16_102 = arith.constant 16 : index
    %557 = vector.load %arg25[%c3_101, %c16_102] : memref<16x32xf32, #tpu.memory_space<vmem>>, vector<1x16xf32>
    tpu.vector_store %arg25[%c3_101, %c16_102], %556 {strides = array<i32>} : memref<16x32xf32, #tpu.memory_space<vmem>>, vector<1x16xf32>,
    %558 = vector.extract_strided_slice %553 {offsets = [1, 0], sizes = [1, 16], strides = [1, 1]} : vector<2x16xf32> to vector<1x16xf32>
    %c12_103 = arith.constant 12 : index
    %c0_104 = arith.constant 0 : index
    %559 = vector.load %arg25[%c12_103, %c0_104] : memref<16x32xf32, #tpu.memory_space<vmem>>, vector<1x16xf32>
    tpu.vector_store %arg25[%c12_103, %c0_104], %558 {strides = array<i32>} : memref<16x32xf32, #tpu.memory_space<vmem>>, vector<1x16xf32>,
    %560 = vector.extract_strided_slice %550 {offsets = [1, 0], sizes = [1, 16], strides = [1, 1]} : vector<2x16xf32> to vector<1x16xf32>
    %c11_105 = arith.constant 11 : index
    %c16_106 = arith.constant 16 : index
    %561 = vector.load %arg25[%c11_105, %c16_106] : memref<16x32xf32, #tpu.memory_space<vmem>>, vector<1x16xf32>
    tpu.vector_store %arg25[%c11_105, %c16_106], %560 {strides = array<i32>} : memref<16x32xf32, #tpu.memory_space<vmem>>, vector<1x16xf32>,
    %562 = tpu.concatenate %491, %519, %550 in 1 : vector<2x32xf32>, vector<2x16xf32>, vector<2x16xf32> -> vector<2x64xf32>
    %cst_107 = arith.constant dense<0.000000e+00> : vector<2x192xf32>
    %563 = tpu.matmul %562, %35, %cst_107 {dimension_numbers = #tpu.dot_dimension_numbers<[1], [0], [0], [1], [0, 0, 1, 1], [], []>} : vector<2x64xf32>, vector<64x192xf32>, vector<2x192xf32> -> vector<2x192xf32>
    %564 = vector.broadcast %36 : vector<1x192xf32> to vector<2x192xf32>
    %565 = arith.addf %563, %564 : vector<2x192xf32>
    %566 = vector.extract_strided_slice %562 {offsets = [0, 0], sizes = [2, 32], strides = [1, 1]} : vector<2x64xf32> to vector<2x32xf32>
    %567 = vector.extract_strided_slice %562 {offsets = [0, 32], sizes = [2, 16], strides = [1, 1]} : vector<2x64xf32> to vector<2x16xf32>
    %568 = vector.extract_strided_slice %562 {offsets = [0, 48], sizes = [2, 16], strides = [1, 1]} : vector<2x64xf32> to vector<2x16xf32>
    %569 = vector.extract_strided_slice %15 {offsets = [10, 0], sizes = [2, 96], strides = [1, 1]} : vector<16x96xf32> to vector<2x96xf32>
    %570 = vector.extract_strided_slice %565 {offsets = [0, 0], sizes = [2, 96], strides = [1, 1]} : vector<2x192xf32> to vector<2x96xf32>
    %571 = vector.extract_strided_slice %569 {offsets = [0, 0], sizes = [2, 32], strides = [1, 1]} : vector<2x96xf32> to vector<2x32xf32>
    %572 = vector.extract_strided_slice %570 {offsets = [0, 0], sizes = [2, 32], strides = [1, 1]} : vector<2x96xf32> to vector<2x32xf32>
    %573 = arith.addf %571, %572 : vector<2x32xf32>
    %574 = arith.negf %573 : vector<2x32xf32>
    %575 = math.exp %574 : vector<2x32xf32>
    %cst_108 = arith.constant 1.000000e+00 : f32
    %576 = vector.broadcast %cst_108 : f32 to vector<2x32xf32>
    %577 = arith.addf %576, %575 : vector<2x32xf32>
    %578 = arith.divf %576, %577 : vector<2x32xf32>
    %579 = vector.extract_strided_slice %569 {offsets = [0, 32], sizes = [2, 32], strides = [1, 1]} : vector<2x96xf32> to vector<2x32xf32>
    %580 = vector.extract_strided_slice %570 {offsets = [0, 32], sizes = [2, 32], strides = [1, 1]} : vector<2x96xf32> to vector<2x32xf32>
    %581 = arith.addf %579, %580 : vector<2x32xf32>
    %582 = arith.negf %581 : vector<2x32xf32>
    %583 = math.exp %582 : vector<2x32xf32>
    %cst_109 = arith.constant 1.000000e+00 : f32
    %584 = vector.broadcast %cst_109 : f32 to vector<2x32xf32>
    %585 = arith.addf %584, %583 : vector<2x32xf32>
    %586 = arith.divf %584, %585 : vector<2x32xf32>
    %587 = vector.extract_strided_slice %569 {offsets = [0, 64], sizes = [2, 32], strides = [1, 1]} : vector<2x96xf32> to vector<2x32xf32>
    %588 = vector.extract_strided_slice %570 {offsets = [0, 64], sizes = [2, 32], strides = [1, 1]} : vector<2x96xf32> to vector<2x32xf32>
    %589 = arith.mulf %578, %588 : vector<2x32xf32>
    %590 = arith.addf %587, %589 : vector<2x32xf32>
    %591 = math.tanh %590 : vector<2x32xf32>
    %cst_110 = arith.constant 1.000000e+00 : f32
    %592 = vector.broadcast %cst_110 : f32 to vector<2x32xf32>
    %593 = arith.subf %592, %586 : vector<2x32xf32>
    %594 = arith.mulf %593, %591 : vector<2x32xf32>
    %595 = arith.mulf %586, %566 : vector<2x32xf32>
    %596 = arith.addf %594, %595 : vector<2x32xf32>
    %597 = vector.extract_strided_slice %32 {offsets = [10, 0], sizes = [2, 48], strides = [1, 1]} : vector<16x48xf32> to vector<2x48xf32>
    %598 = vector.extract_strided_slice %565 {offsets = [0, 96], sizes = [2, 48], strides = [1, 1]} : vector<2x192xf32> to vector<2x48xf32>
    %599 = vector.extract_strided_slice %597 {offsets = [0, 0], sizes = [2, 16], strides = [1, 1]} : vector<2x48xf32> to vector<2x16xf32>
    %600 = vector.extract_strided_slice %598 {offsets = [0, 0], sizes = [2, 16], strides = [1, 1]} : vector<2x48xf32> to vector<2x16xf32>
    %601 = arith.addf %599, %600 : vector<2x16xf32>
    %602 = arith.negf %601 : vector<2x16xf32>
    %603 = math.exp %602 : vector<2x16xf32>
    %cst_111 = arith.constant 1.000000e+00 : f32
    %604 = vector.broadcast %cst_111 : f32 to vector<2x16xf32>
    %605 = arith.addf %604, %603 : vector<2x16xf32>
    %606 = arith.divf %604, %605 : vector<2x16xf32>
    %607 = vector.extract_strided_slice %597 {offsets = [0, 16], sizes = [2, 16], strides = [1, 1]} : vector<2x48xf32> to vector<2x16xf32>
    %608 = vector.extract_strided_slice %598 {offsets = [0, 16], sizes = [2, 16], strides = [1, 1]} : vector<2x48xf32> to vector<2x16xf32>
    %609 = arith.addf %607, %608 : vector<2x16xf32>
    %610 = arith.negf %609 : vector<2x16xf32>
    %611 = math.exp %610 : vector<2x16xf32>
    %cst_112 = arith.constant 1.000000e+00 : f32
    %612 = vector.broadcast %cst_112 : f32 to vector<2x16xf32>
    %613 = arith.addf %612, %611 : vector<2x16xf32>
    %614 = arith.divf %612, %613 : vector<2x16xf32>
    %615 = vector.extract_strided_slice %597 {offsets = [0, 32], sizes = [2, 16], strides = [1, 1]} : vector<2x48xf32> to vector<2x16xf32>
    %616 = vector.extract_strided_slice %598 {offsets = [0, 32], sizes = [2, 16], strides = [1, 1]} : vector<2x48xf32> to vector<2x16xf32>
    %617 = arith.mulf %606, %616 : vector<2x16xf32>
    %618 = arith.addf %615, %617 : vector<2x16xf32>
    %619 = math.tanh %618 : vector<2x16xf32>
    %cst_113 = arith.constant 1.000000e+00 : f32
    %620 = vector.broadcast %cst_113 : f32 to vector<2x16xf32>
    %621 = arith.subf %620, %614 : vector<2x16xf32>
    %622 = arith.mulf %621, %619 : vector<2x16xf32>
    %623 = arith.mulf %614, %567 : vector<2x16xf32>
    %624 = arith.addf %622, %623 : vector<2x16xf32>
    %625 = vector.extract_strided_slice %33 {offsets = [4, 0], sizes = [2, 48], strides = [1, 1]} : vector<16x48xf32> to vector<2x48xf32>
    %626 = vector.extract_strided_slice %565 {offsets = [0, 144], sizes = [2, 48], strides = [1, 1]} : vector<2x192xf32> to vector<2x48xf32>
    %627 = vector.extract_strided_slice %625 {offsets = [0, 0], sizes = [2, 16], strides = [1, 1]} : vector<2x48xf32> to vector<2x16xf32>
    %628 = vector.extract_strided_slice %626 {offsets = [0, 0], sizes = [2, 16], strides = [1, 1]} : vector<2x48xf32> to vector<2x16xf32>
    %629 = arith.addf %627, %628 : vector<2x16xf32>
    %630 = arith.negf %629 : vector<2x16xf32>
    %631 = math.exp %630 : vector<2x16xf32>
    %cst_114 = arith.constant 1.000000e+00 : f32
    %632 = vector.broadcast %cst_114 : f32 to vector<2x16xf32>
    %633 = arith.addf %632, %631 : vector<2x16xf32>
    %634 = arith.divf %632, %633 : vector<2x16xf32>
    %635 = vector.extract_strided_slice %625 {offsets = [0, 16], sizes = [2, 16], strides = [1, 1]} : vector<2x48xf32> to vector<2x16xf32>
    %636 = vector.extract_strided_slice %626 {offsets = [0, 16], sizes = [2, 16], strides = [1, 1]} : vector<2x48xf32> to vector<2x16xf32>
    %637 = arith.addf %635, %636 : vector<2x16xf32>
    %638 = arith.negf %637 : vector<2x16xf32>
    %639 = math.exp %638 : vector<2x16xf32>
    %cst_115 = arith.constant 1.000000e+00 : f32
    %640 = vector.broadcast %cst_115 : f32 to vector<2x16xf32>
    %641 = arith.addf %640, %639 : vector<2x16xf32>
    %642 = arith.divf %640, %641 : vector<2x16xf32>
    %643 = vector.extract_strided_slice %625 {offsets = [0, 32], sizes = [2, 16], strides = [1, 1]} : vector<2x48xf32> to vector<2x16xf32>
    %644 = vector.extract_strided_slice %626 {offsets = [0, 32], sizes = [2, 16], strides = [1, 1]} : vector<2x48xf32> to vector<2x16xf32>
    %645 = arith.mulf %634, %644 : vector<2x16xf32>
    %646 = arith.addf %643, %645 : vector<2x16xf32>
    %647 = math.tanh %646 : vector<2x16xf32>
    %cst_116 = arith.constant 1.000000e+00 : f32
    %648 = vector.broadcast %cst_116 : f32 to vector<2x16xf32>
    %649 = arith.subf %648, %642 : vector<2x16xf32>
    %650 = arith.mulf %649, %647 : vector<2x16xf32>
    %651 = arith.mulf %642, %568 : vector<2x16xf32>
    %652 = arith.addf %650, %651 : vector<2x16xf32>
    %653 = vector.extract_strided_slice %34 {offsets = [4, 0], sizes = [2, 1], strides = [1, 1]} : vector<16x1xf32> to vector<2x1xf32>
    %654 = vector.broadcast %653 : vector<2x1xf32> to vector<2x16xf32>
    %655 = arith.mulf %652, %654 : vector<2x16xf32>
    %656 = vector.extract_strided_slice %34 {offsets = [10, 0], sizes = [2, 1], strides = [1, 1]} : vector<16x1xf32> to vector<2x1xf32>
    %657 = vector.broadcast %656 : vector<2x1xf32> to vector<2x16xf32>
    %658 = arith.mulf %624, %657 : vector<2x16xf32>
    %659 = vector.extract_strided_slice %658 {offsets = [0, 0], sizes = [1, 16], strides = [1, 1]} : vector<2x16xf32> to vector<1x16xf32>
    %c5_117 = arith.constant 5 : index
    %c0_118 = arith.constant 0 : index
    %660 = vector.load %arg25[%c5_117, %c0_118] : memref<16x32xf32, #tpu.memory_space<vmem>>, vector<1x16xf32>
    tpu.vector_store %arg25[%c5_117, %c0_118], %659 {strides = array<i32>} : memref<16x32xf32, #tpu.memory_space<vmem>>, vector<1x16xf32>,
    %661 = vector.extract_strided_slice %655 {offsets = [0, 0], sizes = [1, 16], strides = [1, 1]} : vector<2x16xf32> to vector<1x16xf32>
    %c2_119 = arith.constant 2 : index
    %c16_120 = arith.constant 16 : index
    %662 = vector.load %arg25[%c2_119, %c16_120] : memref<16x32xf32, #tpu.memory_space<vmem>>, vector<1x16xf32>
    tpu.vector_store %arg25[%c2_119, %c16_120], %661 {strides = array<i32>} : memref<16x32xf32, #tpu.memory_space<vmem>>, vector<1x16xf32>,
    %663 = vector.extract_strided_slice %658 {offsets = [1, 0], sizes = [1, 16], strides = [1, 1]} : vector<2x16xf32> to vector<1x16xf32>
    %c13_121 = arith.constant 13 : index
    %c0_122 = arith.constant 0 : index
    %664 = vector.load %arg25[%c13_121, %c0_122] : memref<16x32xf32, #tpu.memory_space<vmem>>, vector<1x16xf32>
    tpu.vector_store %arg25[%c13_121, %c0_122], %663 {strides = array<i32>} : memref<16x32xf32, #tpu.memory_space<vmem>>, vector<1x16xf32>,
    %665 = vector.extract_strided_slice %655 {offsets = [1, 0], sizes = [1, 16], strides = [1, 1]} : vector<2x16xf32> to vector<1x16xf32>
    %c10_123 = arith.constant 10 : index
    %c16_124 = arith.constant 16 : index
    %666 = vector.load %arg25[%c10_123, %c16_124] : memref<16x32xf32, #tpu.memory_space<vmem>>, vector<1x16xf32>
    tpu.vector_store %arg25[%c10_123, %c16_124], %665 {strides = array<i32>} : memref<16x32xf32, #tpu.memory_space<vmem>>, vector<1x16xf32>,
    %667 = tpu.concatenate %596, %624, %655 in 1 : vector<2x32xf32>, vector<2x16xf32>, vector<2x16xf32> -> vector<2x64xf32>
    %cst_125 = arith.constant dense<0.000000e+00> : vector<2x192xf32>
    %668 = tpu.matmul %667, %35, %cst_125 {dimension_numbers = #tpu.dot_dimension_numbers<[1], [0], [0], [1], [0, 0, 1, 1], [], []>} : vector<2x64xf32>, vector<64x192xf32>, vector<2x192xf32> -> vector<2x192xf32>
    %669 = vector.broadcast %36 : vector<1x192xf32> to vector<2x192xf32>
    %670 = arith.addf %668, %669 : vector<2x192xf32>
    %671 = vector.extract_strided_slice %667 {offsets = [0, 0], sizes = [2, 32], strides = [1, 1]} : vector<2x64xf32> to vector<2x32xf32>
    %672 = vector.extract_strided_slice %667 {offsets = [0, 32], sizes = [2, 16], strides = [1, 1]} : vector<2x64xf32> to vector<2x16xf32>
    %673 = vector.extract_strided_slice %667 {offsets = [0, 48], sizes = [2, 16], strides = [1, 1]} : vector<2x64xf32> to vector<2x16xf32>
    %674 = vector.extract_strided_slice %15 {offsets = [12, 0], sizes = [2, 96], strides = [1, 1]} : vector<16x96xf32> to vector<2x96xf32>
    %675 = vector.extract_strided_slice %670 {offsets = [0, 0], sizes = [2, 96], strides = [1, 1]} : vector<2x192xf32> to vector<2x96xf32>
    %676 = vector.extract_strided_slice %674 {offsets = [0, 0], sizes = [2, 32], strides = [1, 1]} : vector<2x96xf32> to vector<2x32xf32>
    %677 = vector.extract_strided_slice %675 {offsets = [0, 0], sizes = [2, 32], strides = [1, 1]} : vector<2x96xf32> to vector<2x32xf32>
    %678 = arith.addf %676, %677 : vector<2x32xf32>
    %679 = arith.negf %678 : vector<2x32xf32>
    %680 = math.exp %679 : vector<2x32xf32>
    %cst_126 = arith.constant 1.000000e+00 : f32
    %681 = vector.broadcast %cst_126 : f32 to vector<2x32xf32>
    %682 = arith.addf %681, %680 : vector<2x32xf32>
    %683 = arith.divf %681, %682 : vector<2x32xf32>
    %684 = vector.extract_strided_slice %674 {offsets = [0, 32], sizes = [2, 32], strides = [1, 1]} : vector<2x96xf32> to vector<2x32xf32>
    %685 = vector.extract_strided_slice %675 {offsets = [0, 32], sizes = [2, 32], strides = [1, 1]} : vector<2x96xf32> to vector<2x32xf32>
    %686 = arith.addf %684, %685 : vector<2x32xf32>
    %687 = arith.negf %686 : vector<2x32xf32>
    %688 = math.exp %687 : vector<2x32xf32>
    %cst_127 = arith.constant 1.000000e+00 : f32
    %689 = vector.broadcast %cst_127 : f32 to vector<2x32xf32>
    %690 = arith.addf %689, %688 : vector<2x32xf32>
    %691 = arith.divf %689, %690 : vector<2x32xf32>
    %692 = vector.extract_strided_slice %674 {offsets = [0, 64], sizes = [2, 32], strides = [1, 1]} : vector<2x96xf32> to vector<2x32xf32>
    %693 = vector.extract_strided_slice %675 {offsets = [0, 64], sizes = [2, 32], strides = [1, 1]} : vector<2x96xf32> to vector<2x32xf32>
    %694 = arith.mulf %683, %693 : vector<2x32xf32>
    %695 = arith.addf %692, %694 : vector<2x32xf32>
    %696 = math.tanh %695 : vector<2x32xf32>
    %cst_128 = arith.constant 1.000000e+00 : f32
    %697 = vector.broadcast %cst_128 : f32 to vector<2x32xf32>
    %698 = arith.subf %697, %691 : vector<2x32xf32>
    %699 = arith.mulf %698, %696 : vector<2x32xf32>
    %700 = arith.mulf %691, %671 : vector<2x32xf32>
    %701 = arith.addf %699, %700 : vector<2x32xf32>
    %702 = vector.extract_strided_slice %32 {offsets = [12, 0], sizes = [2, 48], strides = [1, 1]} : vector<16x48xf32> to vector<2x48xf32>
    %703 = vector.extract_strided_slice %670 {offsets = [0, 96], sizes = [2, 48], strides = [1, 1]} : vector<2x192xf32> to vector<2x48xf32>
    %704 = vector.extract_strided_slice %702 {offsets = [0, 0], sizes = [2, 16], strides = [1, 1]} : vector<2x48xf32> to vector<2x16xf32>
    %705 = vector.extract_strided_slice %703 {offsets = [0, 0], sizes = [2, 16], strides = [1, 1]} : vector<2x48xf32> to vector<2x16xf32>
    %706 = arith.addf %704, %705 : vector<2x16xf32>
    %707 = arith.negf %706 : vector<2x16xf32>
    %708 = math.exp %707 : vector<2x16xf32>
    %cst_129 = arith.constant 1.000000e+00 : f32
    %709 = vector.broadcast %cst_129 : f32 to vector<2x16xf32>
    %710 = arith.addf %709, %708 : vector<2x16xf32>
    %711 = arith.divf %709, %710 : vector<2x16xf32>
    %712 = vector.extract_strided_slice %702 {offsets = [0, 16], sizes = [2, 16], strides = [1, 1]} : vector<2x48xf32> to vector<2x16xf32>
    %713 = vector.extract_strided_slice %703 {offsets = [0, 16], sizes = [2, 16], strides = [1, 1]} : vector<2x48xf32> to vector<2x16xf32>
    %714 = arith.addf %712, %713 : vector<2x16xf32>
    %715 = arith.negf %714 : vector<2x16xf32>
    %716 = math.exp %715 : vector<2x16xf32>
    %cst_130 = arith.constant 1.000000e+00 : f32
    %717 = vector.broadcast %cst_130 : f32 to vector<2x16xf32>
    %718 = arith.addf %717, %716 : vector<2x16xf32>
    %719 = arith.divf %717, %718 : vector<2x16xf32>
    %720 = vector.extract_strided_slice %702 {offsets = [0, 32], sizes = [2, 16], strides = [1, 1]} : vector<2x48xf32> to vector<2x16xf32>
    %721 = vector.extract_strided_slice %703 {offsets = [0, 32], sizes = [2, 16], strides = [1, 1]} : vector<2x48xf32> to vector<2x16xf32>
    %722 = arith.mulf %711, %721 : vector<2x16xf32>
    %723 = arith.addf %720, %722 : vector<2x16xf32>
    %724 = math.tanh %723 : vector<2x16xf32>
    %cst_131 = arith.constant 1.000000e+00 : f32
    %725 = vector.broadcast %cst_131 : f32 to vector<2x16xf32>
    %726 = arith.subf %725, %719 : vector<2x16xf32>
    %727 = arith.mulf %726, %724 : vector<2x16xf32>
    %728 = arith.mulf %719, %672 : vector<2x16xf32>
    %729 = arith.addf %727, %728 : vector<2x16xf32>
    %730 = vector.extract_strided_slice %33 {offsets = [2, 0], sizes = [2, 48], strides = [1, 1]} : vector<16x48xf32> to vector<2x48xf32>
    %731 = vector.extract_strided_slice %670 {offsets = [0, 144], sizes = [2, 48], strides = [1, 1]} : vector<2x192xf32> to vector<2x48xf32>
    %732 = vector.extract_strided_slice %730 {offsets = [0, 0], sizes = [2, 16], strides = [1, 1]} : vector<2x48xf32> to vector<2x16xf32>
    %733 = vector.extract_strided_slice %731 {offsets = [0, 0], sizes = [2, 16], strides = [1, 1]} : vector<2x48xf32> to vector<2x16xf32>
    %734 = arith.addf %732, %733 : vector<2x16xf32>
    %735 = arith.negf %734 : vector<2x16xf32>
    %736 = math.exp %735 : vector<2x16xf32>
    %cst_132 = arith.constant 1.000000e+00 : f32
    %737 = vector.broadcast %cst_132 : f32 to vector<2x16xf32>
    %738 = arith.addf %737, %736 : vector<2x16xf32>
    %739 = arith.divf %737, %738 : vector<2x16xf32>
    %740 = vector.extract_strided_slice %730 {offsets = [0, 16], sizes = [2, 16], strides = [1, 1]} : vector<2x48xf32> to vector<2x16xf32>
    %741 = vector.extract_strided_slice %731 {offsets = [0, 16], sizes = [2, 16], strides = [1, 1]} : vector<2x48xf32> to vector<2x16xf32>
    %742 = arith.addf %740, %741 : vector<2x16xf32>
    %743 = arith.negf %742 : vector<2x16xf32>
    %744 = math.exp %743 : vector<2x16xf32>
    %cst_133 = arith.constant 1.000000e+00 : f32
    %745 = vector.broadcast %cst_133 : f32 to vector<2x16xf32>
    %746 = arith.addf %745, %744 : vector<2x16xf32>
    %747 = arith.divf %745, %746 : vector<2x16xf32>
    %748 = vector.extract_strided_slice %730 {offsets = [0, 32], sizes = [2, 16], strides = [1, 1]} : vector<2x48xf32> to vector<2x16xf32>
    %749 = vector.extract_strided_slice %731 {offsets = [0, 32], sizes = [2, 16], strides = [1, 1]} : vector<2x48xf32> to vector<2x16xf32>
    %750 = arith.mulf %739, %749 : vector<2x16xf32>
    %751 = arith.addf %748, %750 : vector<2x16xf32>
    %752 = math.tanh %751 : vector<2x16xf32>
    %cst_134 = arith.constant 1.000000e+00 : f32
    %753 = vector.broadcast %cst_134 : f32 to vector<2x16xf32>
    %754 = arith.subf %753, %747 : vector<2x16xf32>
    %755 = arith.mulf %754, %752 : vector<2x16xf32>
    %756 = arith.mulf %747, %673 : vector<2x16xf32>
    %757 = arith.addf %755, %756 : vector<2x16xf32>
    %758 = vector.extract_strided_slice %34 {offsets = [2, 0], sizes = [2, 1], strides = [1, 1]} : vector<16x1xf32> to vector<2x1xf32>
    %759 = vector.broadcast %758 : vector<2x1xf32> to vector<2x16xf32>
    %760 = arith.mulf %757, %759 : vector<2x16xf32>
    %761 = vector.extract_strided_slice %34 {offsets = [12, 0], sizes = [2, 1], strides = [1, 1]} : vector<16x1xf32> to vector<2x1xf32>
    %762 = vector.broadcast %761 : vector<2x1xf32> to vector<2x16xf32>
    %763 = arith.mulf %729, %762 : vector<2x16xf32>
    %764 = vector.extract_strided_slice %763 {offsets = [0, 0], sizes = [1, 16], strides = [1, 1]} : vector<2x16xf32> to vector<1x16xf32>
    %c6_135 = arith.constant 6 : index
    %c0_136 = arith.constant 0 : index
    %765 = vector.load %arg25[%c6_135, %c0_136] : memref<16x32xf32, #tpu.memory_space<vmem>>, vector<1x16xf32>
    tpu.vector_store %arg25[%c6_135, %c0_136], %764 {strides = array<i32>} : memref<16x32xf32, #tpu.memory_space<vmem>>, vector<1x16xf32>,
    %766 = vector.extract_strided_slice %760 {offsets = [0, 0], sizes = [1, 16], strides = [1, 1]} : vector<2x16xf32> to vector<1x16xf32>
    %c1_137 = arith.constant 1 : index
    %c16_138 = arith.constant 16 : index
    %767 = vector.load %arg25[%c1_137, %c16_138] : memref<16x32xf32, #tpu.memory_space<vmem>>, vector<1x16xf32>
    tpu.vector_store %arg25[%c1_137, %c16_138], %766 {strides = array<i32>} : memref<16x32xf32, #tpu.memory_space<vmem>>, vector<1x16xf32>,
    %768 = vector.extract_strided_slice %763 {offsets = [1, 0], sizes = [1, 16], strides = [1, 1]} : vector<2x16xf32> to vector<1x16xf32>
    %c14_139 = arith.constant 14 : index
    %c0_140 = arith.constant 0 : index
    %769 = vector.load %arg25[%c14_139, %c0_140] : memref<16x32xf32, #tpu.memory_space<vmem>>, vector<1x16xf32>
    tpu.vector_store %arg25[%c14_139, %c0_140], %768 {strides = array<i32>} : memref<16x32xf32, #tpu.memory_space<vmem>>, vector<1x16xf32>,
    %770 = vector.extract_strided_slice %760 {offsets = [1, 0], sizes = [1, 16], strides = [1, 1]} : vector<2x16xf32> to vector<1x16xf32>
    %c9_141 = arith.constant 9 : index
    %c16_142 = arith.constant 16 : index
    %771 = vector.load %arg25[%c9_141, %c16_142] : memref<16x32xf32, #tpu.memory_space<vmem>>, vector<1x16xf32>
    tpu.vector_store %arg25[%c9_141, %c16_142], %770 {strides = array<i32>} : memref<16x32xf32, #tpu.memory_space<vmem>>, vector<1x16xf32>,
    %772 = tpu.concatenate %701, %729, %760 in 1 : vector<2x32xf32>, vector<2x16xf32>, vector<2x16xf32> -> vector<2x64xf32>
    %cst_143 = arith.constant dense<0.000000e+00> : vector<2x192xf32>
    %773 = tpu.matmul %772, %35, %cst_143 {dimension_numbers = #tpu.dot_dimension_numbers<[1], [0], [0], [1], [0, 0, 1, 1], [], []>} : vector<2x64xf32>, vector<64x192xf32>, vector<2x192xf32> -> vector<2x192xf32>
    %774 = vector.broadcast %36 : vector<1x192xf32> to vector<2x192xf32>
    %775 = arith.addf %773, %774 : vector<2x192xf32>
    %776 = vector.extract_strided_slice %772 {offsets = [0, 0], sizes = [2, 32], strides = [1, 1]} : vector<2x64xf32> to vector<2x32xf32>
    %777 = vector.extract_strided_slice %772 {offsets = [0, 32], sizes = [2, 16], strides = [1, 1]} : vector<2x64xf32> to vector<2x16xf32>
    %778 = vector.extract_strided_slice %772 {offsets = [0, 48], sizes = [2, 16], strides = [1, 1]} : vector<2x64xf32> to vector<2x16xf32>
    %779 = vector.extract_strided_slice %15 {offsets = [14, 0], sizes = [2, 96], strides = [1, 1]} : vector<16x96xf32> to vector<2x96xf32>
    %780 = vector.extract_strided_slice %775 {offsets = [0, 0], sizes = [2, 96], strides = [1, 1]} : vector<2x192xf32> to vector<2x96xf32>
    %781 = vector.extract_strided_slice %779 {offsets = [0, 0], sizes = [2, 32], strides = [1, 1]} : vector<2x96xf32> to vector<2x32xf32>
    %782 = vector.extract_strided_slice %780 {offsets = [0, 0], sizes = [2, 32], strides = [1, 1]} : vector<2x96xf32> to vector<2x32xf32>
    %783 = arith.addf %781, %782 : vector<2x32xf32>
    %784 = arith.negf %783 : vector<2x32xf32>
    %785 = math.exp %784 : vector<2x32xf32>
    %cst_144 = arith.constant 1.000000e+00 : f32
    %786 = vector.broadcast %cst_144 : f32 to vector<2x32xf32>
    %787 = arith.addf %786, %785 : vector<2x32xf32>
    %788 = arith.divf %786, %787 : vector<2x32xf32>
    %789 = vector.extract_strided_slice %779 {offsets = [0, 32], sizes = [2, 32], strides = [1, 1]} : vector<2x96xf32> to vector<2x32xf32>
    %790 = vector.extract_strided_slice %780 {offsets = [0, 32], sizes = [2, 32], strides = [1, 1]} : vector<2x96xf32> to vector<2x32xf32>
    %791 = arith.addf %789, %790 : vector<2x32xf32>
    %792 = arith.negf %791 : vector<2x32xf32>
    %793 = math.exp %792 : vector<2x32xf32>
    %cst_145 = arith.constant 1.000000e+00 : f32
    %794 = vector.broadcast %cst_145 : f32 to vector<2x32xf32>
    %795 = arith.addf %794, %793 : vector<2x32xf32>
    %796 = arith.divf %794, %795 : vector<2x32xf32>
    %797 = vector.extract_strided_slice %779 {offsets = [0, 64], sizes = [2, 32], strides = [1, 1]} : vector<2x96xf32> to vector<2x32xf32>
    %798 = vector.extract_strided_slice %780 {offsets = [0, 64], sizes = [2, 32], strides = [1, 1]} : vector<2x96xf32> to vector<2x32xf32>
    %799 = arith.mulf %788, %798 : vector<2x32xf32>
    %800 = arith.addf %797, %799 : vector<2x32xf32>
    %801 = math.tanh %800 : vector<2x32xf32>
    %cst_146 = arith.constant 1.000000e+00 : f32
    %802 = vector.broadcast %cst_146 : f32 to vector<2x32xf32>
    %803 = arith.subf %802, %796 : vector<2x32xf32>
    %804 = arith.mulf %803, %801 : vector<2x32xf32>
    %805 = arith.mulf %796, %776 : vector<2x32xf32>
    %806 = arith.addf %804, %805 : vector<2x32xf32>
    %807 = vector.extract_strided_slice %32 {offsets = [14, 0], sizes = [2, 48], strides = [1, 1]} : vector<16x48xf32> to vector<2x48xf32>
    %808 = vector.extract_strided_slice %775 {offsets = [0, 96], sizes = [2, 48], strides = [1, 1]} : vector<2x192xf32> to vector<2x48xf32>
    %809 = vector.extract_strided_slice %807 {offsets = [0, 0], sizes = [2, 16], strides = [1, 1]} : vector<2x48xf32> to vector<2x16xf32>
    %810 = vector.extract_strided_slice %808 {offsets = [0, 0], sizes = [2, 16], strides = [1, 1]} : vector<2x48xf32> to vector<2x16xf32>
    %811 = arith.addf %809, %810 : vector<2x16xf32>
    %812 = arith.negf %811 : vector<2x16xf32>
    %813 = math.exp %812 : vector<2x16xf32>
    %cst_147 = arith.constant 1.000000e+00 : f32
    %814 = vector.broadcast %cst_147 : f32 to vector<2x16xf32>
    %815 = arith.addf %814, %813 : vector<2x16xf32>
    %816 = arith.divf %814, %815 : vector<2x16xf32>
    %817 = vector.extract_strided_slice %807 {offsets = [0, 16], sizes = [2, 16], strides = [1, 1]} : vector<2x48xf32> to vector<2x16xf32>
    %818 = vector.extract_strided_slice %808 {offsets = [0, 16], sizes = [2, 16], strides = [1, 1]} : vector<2x48xf32> to vector<2x16xf32>
    %819 = arith.addf %817, %818 : vector<2x16xf32>
    %820 = arith.negf %819 : vector<2x16xf32>
    %821 = math.exp %820 : vector<2x16xf32>
    %cst_148 = arith.constant 1.000000e+00 : f32
    %822 = vector.broadcast %cst_148 : f32 to vector<2x16xf32>
    %823 = arith.addf %822, %821 : vector<2x16xf32>
    %824 = arith.divf %822, %823 : vector<2x16xf32>
    %825 = vector.extract_strided_slice %807 {offsets = [0, 32], sizes = [2, 16], strides = [1, 1]} : vector<2x48xf32> to vector<2x16xf32>
    %826 = vector.extract_strided_slice %808 {offsets = [0, 32], sizes = [2, 16], strides = [1, 1]} : vector<2x48xf32> to vector<2x16xf32>
    %827 = arith.mulf %816, %826 : vector<2x16xf32>
    %828 = arith.addf %825, %827 : vector<2x16xf32>
    %829 = math.tanh %828 : vector<2x16xf32>
    %cst_149 = arith.constant 1.000000e+00 : f32
    %830 = vector.broadcast %cst_149 : f32 to vector<2x16xf32>
    %831 = arith.subf %830, %824 : vector<2x16xf32>
    %832 = arith.mulf %831, %829 : vector<2x16xf32>
    %833 = arith.mulf %824, %777 : vector<2x16xf32>
    %834 = arith.addf %832, %833 : vector<2x16xf32>
    %835 = vector.extract_strided_slice %33 {offsets = [0, 0], sizes = [2, 48], strides = [1, 1]} : vector<16x48xf32> to vector<2x48xf32>
    %836 = vector.extract_strided_slice %775 {offsets = [0, 144], sizes = [2, 48], strides = [1, 1]} : vector<2x192xf32> to vector<2x48xf32>
    %837 = vector.extract_strided_slice %835 {offsets = [0, 0], sizes = [2, 16], strides = [1, 1]} : vector<2x48xf32> to vector<2x16xf32>
    %838 = vector.extract_strided_slice %836 {offsets = [0, 0], sizes = [2, 16], strides = [1, 1]} : vector<2x48xf32> to vector<2x16xf32>
    %839 = arith.addf %837, %838 : vector<2x16xf32>
    %840 = arith.negf %839 : vector<2x16xf32>
    %841 = math.exp %840 : vector<2x16xf32>
    %cst_150 = arith.constant 1.000000e+00 : f32
    %842 = vector.broadcast %cst_150 : f32 to vector<2x16xf32>
    %843 = arith.addf %842, %841 : vector<2x16xf32>
    %844 = arith.divf %842, %843 : vector<2x16xf32>
    %845 = vector.extract_strided_slice %835 {offsets = [0, 16], sizes = [2, 16], strides = [1, 1]} : vector<2x48xf32> to vector<2x16xf32>
    %846 = vector.extract_strided_slice %836 {offsets = [0, 16], sizes = [2, 16], strides = [1, 1]} : vector<2x48xf32> to vector<2x16xf32>
    %847 = arith.addf %845, %846 : vector<2x16xf32>
    %848 = arith.negf %847 : vector<2x16xf32>
    %849 = math.exp %848 : vector<2x16xf32>
    %cst_151 = arith.constant 1.000000e+00 : f32
    %850 = vector.broadcast %cst_151 : f32 to vector<2x16xf32>
    %851 = arith.addf %850, %849 : vector<2x16xf32>
    %852 = arith.divf %850, %851 : vector<2x16xf32>
    %853 = vector.extract_strided_slice %835 {offsets = [0, 32], sizes = [2, 16], strides = [1, 1]} : vector<2x48xf32> to vector<2x16xf32>
    %854 = vector.extract_strided_slice %836 {offsets = [0, 32], sizes = [2, 16], strides = [1, 1]} : vector<2x48xf32> to vector<2x16xf32>
    %855 = arith.mulf %844, %854 : vector<2x16xf32>
    %856 = arith.addf %853, %855 : vector<2x16xf32>
    %857 = math.tanh %856 : vector<2x16xf32>
    %cst_152 = arith.constant 1.000000e+00 : f32
    %858 = vector.broadcast %cst_152 : f32 to vector<2x16xf32>
    %859 = arith.subf %858, %852 : vector<2x16xf32>
    %860 = arith.mulf %859, %857 : vector<2x16xf32>
    %861 = arith.mulf %852, %778 : vector<2x16xf32>
    %862 = arith.addf %860, %861 : vector<2x16xf32>
    %863 = vector.extract_strided_slice %34 {offsets = [0, 0], sizes = [2, 1], strides = [1, 1]} : vector<16x1xf32> to vector<2x1xf32>
    %864 = vector.broadcast %863 : vector<2x1xf32> to vector<2x16xf32>
    %865 = arith.mulf %862, %864 : vector<2x16xf32>
    %866 = vector.extract_strided_slice %34 {offsets = [14, 0], sizes = [2, 1], strides = [1, 1]} : vector<16x1xf32> to vector<2x1xf32>
    %867 = vector.broadcast %866 : vector<2x1xf32> to vector<2x16xf32>
    %868 = arith.mulf %834, %867 : vector<2x16xf32>
    %869 = vector.extract_strided_slice %868 {offsets = [0, 0], sizes = [1, 16], strides = [1, 1]} : vector<2x16xf32> to vector<1x16xf32>
    %c7_153 = arith.constant 7 : index
    %c0_154 = arith.constant 0 : index
    %870 = vector.load %arg25[%c7_153, %c0_154] : memref<16x32xf32, #tpu.memory_space<vmem>>, vector<1x16xf32>
    tpu.vector_store %arg25[%c7_153, %c0_154], %869 {strides = array<i32>} : memref<16x32xf32, #tpu.memory_space<vmem>>, vector<1x16xf32>,
    %871 = vector.extract_strided_slice %865 {offsets = [0, 0], sizes = [1, 16], strides = [1, 1]} : vector<2x16xf32> to vector<1x16xf32>
    %c0_155 = arith.constant 0 : index
    %c16_156 = arith.constant 16 : index
    %872 = vector.load %arg25[%c0_155, %c16_156] : memref<16x32xf32, #tpu.memory_space<vmem>>, vector<1x16xf32>
    tpu.vector_store %arg25[%c0_155, %c16_156], %871 {strides = array<i32>} : memref<16x32xf32, #tpu.memory_space<vmem>>, vector<1x16xf32>,
    %873 = vector.extract_strided_slice %868 {offsets = [1, 0], sizes = [1, 16], strides = [1, 1]} : vector<2x16xf32> to vector<1x16xf32>
    %c15_157 = arith.constant 15 : index
    %c0_158 = arith.constant 0 : index
    %874 = vector.load %arg25[%c15_157, %c0_158] : memref<16x32xf32, #tpu.memory_space<vmem>>, vector<1x16xf32>
    tpu.vector_store %arg25[%c15_157, %c0_158], %873 {strides = array<i32>} : memref<16x32xf32, #tpu.memory_space<vmem>>, vector<1x16xf32>,
    %875 = vector.extract_strided_slice %865 {offsets = [1, 0], sizes = [1, 16], strides = [1, 1]} : vector<2x16xf32> to vector<1x16xf32>
    %c8_159 = arith.constant 8 : index
    %c16_160 = arith.constant 16 : index
    %876 = vector.load %arg25[%c8_159, %c16_160] : memref<16x32xf32, #tpu.memory_space<vmem>>, vector<1x16xf32>
    tpu.vector_store %arg25[%c8_159, %c16_160], %875 {strides = array<i32>} : memref<16x32xf32, #tpu.memory_space<vmem>>, vector<1x16xf32>,
    %877 = tpu.concatenate %806, %834, %865 in 1 : vector<2x32xf32>, vector<2x16xf32>, vector<2x16xf32> -> vector<2x64xf32>
    %878 = vector.extract_strided_slice %877 {offsets = [0, 0], sizes = [2, 32], strides = [1, 1]} : vector<2x64xf32> to vector<2x32xf32>
    %c0_161 = arith.constant 0 : index
    %c0_162 = arith.constant 0 : index
    %879 = vector.load %arg25[%c0_161, %c0_162] : memref<16x32xf32, #tpu.memory_space<vmem>>, vector<16x32xf32>
    %880 = vector.shape_cast %879 : vector<16x32xf32> to vector<2x8x32xf32>
    %c0_163 = arith.constant 0 : index
    %c0_164 = arith.constant 0 : index
    %881 = vector.load %arg18[%c0_163, %c0_164] : memref<32x32xf32, #tpu.memory_space<vmem>>, vector<32x32xf32>
    %cst_165 = arith.constant dense<0.000000e+00> : vector<16x32xf32>
    %882 = tpu.matmul %879, %881, %cst_165 {dimension_numbers = #tpu.dot_dimension_numbers<[1], [0], [0], [1], [0, 0, 1, 1], [], []>} : vector<16x32xf32>, vector<32x32xf32>, vector<16x32xf32> -> vector<16x32xf32>
    %c0_166 = arith.constant 0 : index
    %c0_167 = arith.constant 0 : index
    %883 = vector.load %arg19[%c0_166, %c0_167] : memref<1x32xf32, #tpu.memory_space<vmem>>, vector<1x32xf32>
    %884 = vector.broadcast %883 : vector<1x32xf32> to vector<16x32xf32>
    %885 = arith.addf %882, %884 : vector<16x32xf32>
    %886 = vector.shape_cast %885 : vector<16x32xf32> to vector<2x8x32xf32>
    %c0_168 = arith.constant 0 : index
    %c0_169 = arith.constant 0 : index
    %887 = vector.load %arg17[%c0_168, %c0_169] : memref<32x128xf32, #tpu.memory_space<vmem>>, vector<32x128xf32>
    %c0_170 = arith.constant 0 : index
    %c0_171 = arith.constant 0 : index
    %888 = vector.load %arg14[%c0_170, %c0_171] : memref<32x96xf32, #tpu.memory_space<vmem>>, vector<32x96xf32>
    %c0_172 = arith.constant 0 : index
    %c0_173 = arith.constant 0 : index
    %889 = vector.load %arg15[%c0_172, %c0_173] : memref<1x96xf32, #tpu.memory_space<vmem>>, vector<1x96xf32>
    %c0_174 = arith.constant 0 : index
    %c0_175 = arith.constant 0 : index
    %890 = vector.load %arg16[%c0_174, %c0_175] : memref<1x96xf32, #tpu.memory_space<vmem>>, vector<1x96xf32>
    %c0_176 = arith.constant 0 : index
    %c0_177 = arith.constant 0 : index
    %891 = vector.load %arg20[%c0_176, %c0_177] : memref<1x32xf32, #tpu.memory_space<vmem>>, vector<1x32xf32>
    %892 = vector.shape_cast %891 : vector<1x32xf32> to vector<1x1x32xf32>
    %c0_178 = arith.constant 0 : index
    %c0_179 = arith.constant 0 : index
    %893 = vector.load %arg21[%c0_178, %c0_179] : memref<1x1xf32, #tpu.memory_space<vmem>>, vector<1x1xf32>
    %c0_180 = arith.constant 0 : index
    %c0_181 = arith.constant 0 : index
    %894 = vector.load %arg3[%c0_180, %c0_181] : memref<1x8xf32, #tpu.memory_space<vmem>>, vector<1x8xf32>
    %cst_182 = arith.constant dense<0.000000e+00> : vector<2x128xf32>
    %895 = tpu.matmul %878, %887, %cst_182 {dimension_numbers = #tpu.dot_dimension_numbers<[1], [0], [0], [1], [0, 0, 1, 1], [], []>} : vector<2x32xf32>, vector<32x128xf32>, vector<2x128xf32> -> vector<2x128xf32>
    %896 = vector.extract_strided_slice %895 {offsets = [0, 0], sizes = [2, 32], strides = [1, 1]} : vector<2x128xf32> to vector<2x32xf32>
    %897 = vector.extract_strided_slice %895 {offsets = [0, 32], sizes = [2, 96], strides = [1, 1]} : vector<2x128xf32> to vector<2x96xf32>
    %898 = vector.broadcast %890 : vector<1x96xf32> to vector<2x96xf32>
    %899 = arith.addf %897, %898 : vector<2x96xf32>
    %900 = vector.shape_cast %896 : vector<2x32xf32> to vector<2x1x32xf32>
    %901 = vector.broadcast %900 : vector<2x1x32xf32> to vector<2x8x32xf32>
    %902 = arith.addf %886, %901 : vector<2x8x32xf32>
    %903 = math.tanh %902 : vector<2x8x32xf32>
    %904 = vector.broadcast %892 : vector<1x1x32xf32> to vector<2x8x32xf32>
    %905 = arith.mulf %903, %904 : vector<2x8x32xf32>
    %cst_183 = arith.constant dense<0.000000e+00> : vector<2x8xf32>
    %906 = vector.multi_reduction <add>, %905, %cst_183 [2] : vector<2x8x32xf32> to vector<2x8xf32>
    %907 = vector.broadcast %893 : vector<1x1xf32> to vector<2x8xf32>
    %908 = arith.addf %906, %907 : vector<2x8xf32>
    %cst_184 = arith.constant dense<0xFF800000> : vector<2xf32>
    %909 = vector.multi_reduction <maximumf>, %908, %cst_184 [1] : vector<2x8xf32> to vector<2xf32>
    %910 = vector.shape_cast %909 : vector<2xf32> to vector<2x1xf32>
    %911 = vector.broadcast %910 : vector<2x1xf32> to vector<2x8xf32>
    %912 = arith.subf %908, %911 : vector<2x8xf32>
    %913 = math.exp %912 : vector<2x8xf32>
    %914 = vector.broadcast %894 : vector<1x8xf32> to vector<2x8xf32>
    %915 = arith.mulf %913, %914 : vector<2x8xf32>
    %cst_185 = arith.constant dense<0.000000e+00> : vector<2xf32>
    %916 = vector.multi_reduction <add>, %915, %cst_185 [1] : vector<2x8xf32> to vector<2xf32>
    %917 = vector.shape_cast %916 : vector<2xf32> to vector<2x1xf32>
    %918 = tpu.reciprocal %917 {approx = true} : vector<2x1xf32> -> vector<2x1xf32>
    %919 = vector.broadcast %918 : vector<2x1xf32> to vector<2x8xf32>
    %920 = arith.mulf %915, %919 : vector<2x8xf32>
    %921 = vector.shape_cast %920 : vector<2x8xf32> to vector<2x8x1xf32>
    %922 = vector.broadcast %921 : vector<2x8x1xf32> to vector<2x8x32xf32>
    %923 = arith.mulf %922, %880 : vector<2x8x32xf32>
    %cst_186 = arith.constant dense<0.000000e+00> : vector<2x32xf32>
    %924 = vector.multi_reduction <add>, %923, %cst_186 [1] : vector<2x8x32xf32> to vector<2x32xf32>
    %cst_187 = arith.constant dense<0.000000e+00> : vector<2x96xf32>
    %925 = tpu.matmul %924, %888, %cst_187 {dimension_numbers = #tpu.dot_dimension_numbers<[1], [0], [0], [1], [0, 0, 1, 1], [], []>} : vector<2x32xf32>, vector<32x96xf32>, vector<2x96xf32> -> vector<2x96xf32>
    %926 = vector.broadcast %889 : vector<1x96xf32> to vector<2x96xf32>
    %927 = arith.addf %925, %926 : vector<2x96xf32>
    %928 = vector.extract_strided_slice %927 {offsets = [0, 0], sizes = [2, 32], strides = [1, 1]} : vector<2x96xf32> to vector<2x32xf32>
    %929 = vector.extract_strided_slice %899 {offsets = [0, 0], sizes = [2, 32], strides = [1, 1]} : vector<2x96xf32> to vector<2x32xf32>
    %930 = arith.addf %928, %929 : vector<2x32xf32>
    %931 = arith.negf %930 : vector<2x32xf32>
    %932 = math.exp %931 : vector<2x32xf32>
    %cst_188 = arith.constant 1.000000e+00 : f32
    %933 = vector.broadcast %cst_188 : f32 to vector<2x32xf32>
    %934 = arith.addf %933, %932 : vector<2x32xf32>
    %935 = arith.divf %933, %934 : vector<2x32xf32>
    %936 = vector.extract_strided_slice %927 {offsets = [0, 32], sizes = [2, 32], strides = [1, 1]} : vector<2x96xf32> to vector<2x32xf32>
    %937 = vector.extract_strided_slice %899 {offsets = [0, 32], sizes = [2, 32], strides = [1, 1]} : vector<2x96xf32> to vector<2x32xf32>
    %938 = arith.addf %936, %937 : vector<2x32xf32>
    %939 = arith.negf %938 : vector<2x32xf32>
    %940 = math.exp %939 : vector<2x32xf32>
    %cst_189 = arith.constant 1.000000e+00 : f32
    %941 = vector.broadcast %cst_189 : f32 to vector<2x32xf32>
    %942 = arith.addf %941, %940 : vector<2x32xf32>
    %943 = arith.divf %941, %942 : vector<2x32xf32>
    %944 = vector.extract_strided_slice %927 {offsets = [0, 64], sizes = [2, 32], strides = [1, 1]} : vector<2x96xf32> to vector<2x32xf32>
    %945 = vector.extract_strided_slice %899 {offsets = [0, 64], sizes = [2, 32], strides = [1, 1]} : vector<2x96xf32> to vector<2x32xf32>
    %946 = arith.mulf %935, %945 : vector<2x32xf32>
    %947 = arith.addf %944, %946 : vector<2x32xf32>
    %948 = math.tanh %947 : vector<2x32xf32>
    %cst_190 = arith.constant 1.000000e+00 : f32
    %949 = vector.broadcast %cst_190 : f32 to vector<2x32xf32>
    %950 = arith.subf %949, %943 : vector<2x32xf32>
    %951 = arith.mulf %950, %948 : vector<2x32xf32>
    %952 = arith.mulf %943, %878 : vector<2x32xf32>
    %953 = arith.addf %951, %952 : vector<2x32xf32>
    %c0_191 = arith.constant 0 : index
    %c0_192 = arith.constant 0 : index
    %954 = vector.load %arg26[%c0_191, %c0_192] : memref<12x32xf32, #tpu.memory_space<vmem>>, vector<2x32xf32>
    tpu.vector_store %arg26[%c0_191, %c0_192], %953 {strides = array<i32>} : memref<12x32xf32, #tpu.memory_space<vmem>>, vector<2x32xf32>,
    %cst_193 = arith.constant dense<0.000000e+00> : vector<2x128xf32>
    %955 = tpu.matmul %953, %887, %cst_193 {dimension_numbers = #tpu.dot_dimension_numbers<[1], [0], [0], [1], [0, 0, 1, 1], [], []>} : vector<2x32xf32>, vector<32x128xf32>, vector<2x128xf32> -> vector<2x128xf32>
    %956 = vector.extract_strided_slice %955 {offsets = [0, 0], sizes = [2, 32], strides = [1, 1]} : vector<2x128xf32> to vector<2x32xf32>
    %957 = vector.extract_strided_slice %955 {offsets = [0, 32], sizes = [2, 96], strides = [1, 1]} : vector<2x128xf32> to vector<2x96xf32>
    %958 = vector.broadcast %890 : vector<1x96xf32> to vector<2x96xf32>
    %959 = arith.addf %957, %958 : vector<2x96xf32>
    %960 = vector.shape_cast %956 : vector<2x32xf32> to vector<2x1x32xf32>
    %961 = vector.broadcast %960 : vector<2x1x32xf32> to vector<2x8x32xf32>
    %962 = arith.addf %886, %961 : vector<2x8x32xf32>
    %963 = math.tanh %962 : vector<2x8x32xf32>
    %964 = vector.broadcast %892 : vector<1x1x32xf32> to vector<2x8x32xf32>
    %965 = arith.mulf %963, %964 : vector<2x8x32xf32>
    %cst_194 = arith.constant dense<0.000000e+00> : vector<2x8xf32>
    %966 = vector.multi_reduction <add>, %965, %cst_194 [2] : vector<2x8x32xf32> to vector<2x8xf32>
    %967 = vector.broadcast %893 : vector<1x1xf32> to vector<2x8xf32>
    %968 = arith.addf %966, %967 : vector<2x8xf32>
    %cst_195 = arith.constant dense<0xFF800000> : vector<2xf32>
    %969 = vector.multi_reduction <maximumf>, %968, %cst_195 [1] : vector<2x8xf32> to vector<2xf32>
    %970 = vector.shape_cast %969 : vector<2xf32> to vector<2x1xf32>
    %971 = vector.broadcast %970 : vector<2x1xf32> to vector<2x8xf32>
    %972 = arith.subf %968, %971 : vector<2x8xf32>
    %973 = math.exp %972 : vector<2x8xf32>
    %974 = vector.broadcast %894 : vector<1x8xf32> to vector<2x8xf32>
    %975 = arith.mulf %973, %974 : vector<2x8xf32>
    %cst_196 = arith.constant dense<0.000000e+00> : vector<2xf32>
    %976 = vector.multi_reduction <add>, %975, %cst_196 [1] : vector<2x8xf32> to vector<2xf32>
    %977 = vector.shape_cast %976 : vector<2xf32> to vector<2x1xf32>
    %978 = tpu.reciprocal %977 {approx = true} : vector<2x1xf32> -> vector<2x1xf32>
    %979 = vector.broadcast %978 : vector<2x1xf32> to vector<2x8xf32>
    %980 = arith.mulf %975, %979 : vector<2x8xf32>
    %981 = vector.shape_cast %980 : vector<2x8xf32> to vector<2x8x1xf32>
    %982 = vector.broadcast %981 : vector<2x8x1xf32> to vector<2x8x32xf32>
    %983 = arith.mulf %982, %880 : vector<2x8x32xf32>
    %cst_197 = arith.constant dense<0.000000e+00> : vector<2x32xf32>
    %984 = vector.multi_reduction <add>, %983, %cst_197 [1] : vector<2x8x32xf32> to vector<2x32xf32>
    %cst_198 = arith.constant dense<0.000000e+00> : vector<2x96xf32>
    %985 = tpu.matmul %984, %888, %cst_198 {dimension_numbers = #tpu.dot_dimension_numbers<[1], [0], [0], [1], [0, 0, 1, 1], [], []>} : vector<2x32xf32>, vector<32x96xf32>, vector<2x96xf32> -> vector<2x96xf32>
    %986 = vector.broadcast %889 : vector<1x96xf32> to vector<2x96xf32>
    %987 = arith.addf %985, %986 : vector<2x96xf32>
    %988 = vector.extract_strided_slice %987 {offsets = [0, 0], sizes = [2, 32], strides = [1, 1]} : vector<2x96xf32> to vector<2x32xf32>
    %989 = vector.extract_strided_slice %959 {offsets = [0, 0], sizes = [2, 32], strides = [1, 1]} : vector<2x96xf32> to vector<2x32xf32>
    %990 = arith.addf %988, %989 : vector<2x32xf32>
    %991 = arith.negf %990 : vector<2x32xf32>
    %992 = math.exp %991 : vector<2x32xf32>
    %cst_199 = arith.constant 1.000000e+00 : f32
    %993 = vector.broadcast %cst_199 : f32 to vector<2x32xf32>
    %994 = arith.addf %993, %992 : vector<2x32xf32>
    %995 = arith.divf %993, %994 : vector<2x32xf32>
    %996 = vector.extract_strided_slice %987 {offsets = [0, 32], sizes = [2, 32], strides = [1, 1]} : vector<2x96xf32> to vector<2x32xf32>
    %997 = vector.extract_strided_slice %959 {offsets = [0, 32], sizes = [2, 32], strides = [1, 1]} : vector<2x96xf32> to vector<2x32xf32>
    %998 = arith.addf %996, %997 : vector<2x32xf32>
    %999 = arith.negf %998 : vector<2x32xf32>
    %1000 = math.exp %999 : vector<2x32xf32>
    %cst_200 = arith.constant 1.000000e+00 : f32
    %1001 = vector.broadcast %cst_200 : f32 to vector<2x32xf32>
    %1002 = arith.addf %1001, %1000 : vector<2x32xf32>
    %1003 = arith.divf %1001, %1002 : vector<2x32xf32>
    %1004 = vector.extract_strided_slice %987 {offsets = [0, 64], sizes = [2, 32], strides = [1, 1]} : vector<2x96xf32> to vector<2x32xf32>
    %1005 = vector.extract_strided_slice %959 {offsets = [0, 64], sizes = [2, 32], strides = [1, 1]} : vector<2x96xf32> to vector<2x32xf32>
    %1006 = arith.mulf %995, %1005 : vector<2x32xf32>
    %1007 = arith.addf %1004, %1006 : vector<2x32xf32>
    %1008 = math.tanh %1007 : vector<2x32xf32>
    %cst_201 = arith.constant 1.000000e+00 : f32
    %1009 = vector.broadcast %cst_201 : f32 to vector<2x32xf32>
    %1010 = arith.subf %1009, %1003 : vector<2x32xf32>
    %1011 = arith.mulf %1010, %1008 : vector<2x32xf32>
    %1012 = arith.mulf %1003, %953 : vector<2x32xf32>
    %1013 = arith.addf %1011, %1012 : vector<2x32xf32>
    %c2_202 = arith.constant 2 : index
    %c0_203 = arith.constant 0 : index
    %1014 = vector.load %arg26[%c2_202, %c0_203] : memref<12x32xf32, #tpu.memory_space<vmem>>, vector<2x32xf32>
    tpu.vector_store %arg26[%c2_202, %c0_203], %1013 {strides = array<i32>} : memref<12x32xf32, #tpu.memory_space<vmem>>, vector<2x32xf32>,
    %cst_204 = arith.constant dense<0.000000e+00> : vector<2x128xf32>
    %1015 = tpu.matmul %1013, %887, %cst_204 {dimension_numbers = #tpu.dot_dimension_numbers<[1], [0], [0], [1], [0, 0, 1, 1], [], []>} : vector<2x32xf32>, vector<32x128xf32>, vector<2x128xf32> -> vector<2x128xf32>
    %1016 = vector.extract_strided_slice %1015 {offsets = [0, 0], sizes = [2, 32], strides = [1, 1]} : vector<2x128xf32> to vector<2x32xf32>
    %1017 = vector.extract_strided_slice %1015 {offsets = [0, 32], sizes = [2, 96], strides = [1, 1]} : vector<2x128xf32> to vector<2x96xf32>
    %1018 = vector.broadcast %890 : vector<1x96xf32> to vector<2x96xf32>
    %1019 = arith.addf %1017, %1018 : vector<2x96xf32>
    %1020 = vector.shape_cast %1016 : vector<2x32xf32> to vector<2x1x32xf32>
    %1021 = vector.broadcast %1020 : vector<2x1x32xf32> to vector<2x8x32xf32>
    %1022 = arith.addf %886, %1021 : vector<2x8x32xf32>
    %1023 = math.tanh %1022 : vector<2x8x32xf32>
    %1024 = vector.broadcast %892 : vector<1x1x32xf32> to vector<2x8x32xf32>
    %1025 = arith.mulf %1023, %1024 : vector<2x8x32xf32>
    %cst_205 = arith.constant dense<0.000000e+00> : vector<2x8xf32>
    %1026 = vector.multi_reduction <add>, %1025, %cst_205 [2] : vector<2x8x32xf32> to vector<2x8xf32>
    %1027 = vector.broadcast %893 : vector<1x1xf32> to vector<2x8xf32>
    %1028 = arith.addf %1026, %1027 : vector<2x8xf32>
    %cst_206 = arith.constant dense<0xFF800000> : vector<2xf32>
    %1029 = vector.multi_reduction <maximumf>, %1028, %cst_206 [1] : vector<2x8xf32> to vector<2xf32>
    %1030 = vector.shape_cast %1029 : vector<2xf32> to vector<2x1xf32>
    %1031 = vector.broadcast %1030 : vector<2x1xf32> to vector<2x8xf32>
    %1032 = arith.subf %1028, %1031 : vector<2x8xf32>
    %1033 = math.exp %1032 : vector<2x8xf32>
    %1034 = vector.broadcast %894 : vector<1x8xf32> to vector<2x8xf32>
    %1035 = arith.mulf %1033, %1034 : vector<2x8xf32>
    %cst_207 = arith.constant dense<0.000000e+00> : vector<2xf32>
    %1036 = vector.multi_reduction <add>, %1035, %cst_207 [1] : vector<2x8xf32> to vector<2xf32>
    %1037 = vector.shape_cast %1036 : vector<2xf32> to vector<2x1xf32>
    %1038 = tpu.reciprocal %1037 {approx = true} : vector<2x1xf32> -> vector<2x1xf32>
    %1039 = vector.broadcast %1038 : vector<2x1xf32> to vector<2x8xf32>
    %1040 = arith.mulf %1035, %1039 : vector<2x8xf32>
    %1041 = vector.shape_cast %1040 : vector<2x8xf32> to vector<2x8x1xf32>
    %1042 = vector.broadcast %1041 : vector<2x8x1xf32> to vector<2x8x32xf32>
    %1043 = arith.mulf %1042, %880 : vector<2x8x32xf32>
    %cst_208 = arith.constant dense<0.000000e+00> : vector<2x32xf32>
    %1044 = vector.multi_reduction <add>, %1043, %cst_208 [1] : vector<2x8x32xf32> to vector<2x32xf32>
    %cst_209 = arith.constant dense<0.000000e+00> : vector<2x96xf32>
    %1045 = tpu.matmul %1044, %888, %cst_209 {dimension_numbers = #tpu.dot_dimension_numbers<[1], [0], [0], [1], [0, 0, 1, 1], [], []>} : vector<2x32xf32>, vector<32x96xf32>, vector<2x96xf32> -> vector<2x96xf32>
    %1046 = vector.broadcast %889 : vector<1x96xf32> to vector<2x96xf32>
    %1047 = arith.addf %1045, %1046 : vector<2x96xf32>
    %1048 = vector.extract_strided_slice %1047 {offsets = [0, 0], sizes = [2, 32], strides = [1, 1]} : vector<2x96xf32> to vector<2x32xf32>
    %1049 = vector.extract_strided_slice %1019 {offsets = [0, 0], sizes = [2, 32], strides = [1, 1]} : vector<2x96xf32> to vector<2x32xf32>
    %1050 = arith.addf %1048, %1049 : vector<2x32xf32>
    %1051 = arith.negf %1050 : vector<2x32xf32>
    %1052 = math.exp %1051 : vector<2x32xf32>
    %cst_210 = arith.constant 1.000000e+00 : f32
    %1053 = vector.broadcast %cst_210 : f32 to vector<2x32xf32>
    %1054 = arith.addf %1053, %1052 : vector<2x32xf32>
    %1055 = arith.divf %1053, %1054 : vector<2x32xf32>
    %1056 = vector.extract_strided_slice %1047 {offsets = [0, 32], sizes = [2, 32], strides = [1, 1]} : vector<2x96xf32> to vector<2x32xf32>
    %1057 = vector.extract_strided_slice %1019 {offsets = [0, 32], sizes = [2, 32], strides = [1, 1]} : vector<2x96xf32> to vector<2x32xf32>
    %1058 = arith.addf %1056, %1057 : vector<2x32xf32>
    %1059 = arith.negf %1058 : vector<2x32xf32>
    %1060 = math.exp %1059 : vector<2x32xf32>
    %cst_211 = arith.constant 1.000000e+00 : f32
    %1061 = vector.broadcast %cst_211 : f32 to vector<2x32xf32>
    %1062 = arith.addf %1061, %1060 : vector<2x32xf32>
    %1063 = arith.divf %1061, %1062 : vector<2x32xf32>
    %1064 = vector.extract_strided_slice %1047 {offsets = [0, 64], sizes = [2, 32], strides = [1, 1]} : vector<2x96xf32> to vector<2x32xf32>
    %1065 = vector.extract_strided_slice %1019 {offsets = [0, 64], sizes = [2, 32], strides = [1, 1]} : vector<2x96xf32> to vector<2x32xf32>
    %1066 = arith.mulf %1055, %1065 : vector<2x32xf32>
    %1067 = arith.addf %1064, %1066 : vector<2x32xf32>
    %1068 = math.tanh %1067 : vector<2x32xf32>
    %cst_212 = arith.constant 1.000000e+00 : f32
    %1069 = vector.broadcast %cst_212 : f32 to vector<2x32xf32>
    %1070 = arith.subf %1069, %1063 : vector<2x32xf32>
    %1071 = arith.mulf %1070, %1068 : vector<2x32xf32>
    %1072 = arith.mulf %1063, %1013 : vector<2x32xf32>
    %1073 = arith.addf %1071, %1072 : vector<2x32xf32>
    %c4_213 = arith.constant 4 : index
    %c0_214 = arith.constant 0 : index
    %1074 = vector.load %arg26[%c4_213, %c0_214] : memref<12x32xf32, #tpu.memory_space<vmem>>, vector<2x32xf32>
    tpu.vector_store %arg26[%c4_213, %c0_214], %1073 {strides = array<i32>} : memref<12x32xf32, #tpu.memory_space<vmem>>, vector<2x32xf32>,
    %cst_215 = arith.constant dense<0.000000e+00> : vector<2x128xf32>
    %1075 = tpu.matmul %1073, %887, %cst_215 {dimension_numbers = #tpu.dot_dimension_numbers<[1], [0], [0], [1], [0, 0, 1, 1], [], []>} : vector<2x32xf32>, vector<32x128xf32>, vector<2x128xf32> -> vector<2x128xf32>
    %1076 = vector.extract_strided_slice %1075 {offsets = [0, 0], sizes = [2, 32], strides = [1, 1]} : vector<2x128xf32> to vector<2x32xf32>
    %1077 = vector.extract_strided_slice %1075 {offsets = [0, 32], sizes = [2, 96], strides = [1, 1]} : vector<2x128xf32> to vector<2x96xf32>
    %1078 = vector.broadcast %890 : vector<1x96xf32> to vector<2x96xf32>
    %1079 = arith.addf %1077, %1078 : vector<2x96xf32>
    %1080 = vector.shape_cast %1076 : vector<2x32xf32> to vector<2x1x32xf32>
    %1081 = vector.broadcast %1080 : vector<2x1x32xf32> to vector<2x8x32xf32>
    %1082 = arith.addf %886, %1081 : vector<2x8x32xf32>
    %1083 = math.tanh %1082 : vector<2x8x32xf32>
    %1084 = vector.broadcast %892 : vector<1x1x32xf32> to vector<2x8x32xf32>
    %1085 = arith.mulf %1083, %1084 : vector<2x8x32xf32>
    %cst_216 = arith.constant dense<0.000000e+00> : vector<2x8xf32>
    %1086 = vector.multi_reduction <add>, %1085, %cst_216 [2] : vector<2x8x32xf32> to vector<2x8xf32>
    %1087 = vector.broadcast %893 : vector<1x1xf32> to vector<2x8xf32>
    %1088 = arith.addf %1086, %1087 : vector<2x8xf32>
    %cst_217 = arith.constant dense<0xFF800000> : vector<2xf32>
    %1089 = vector.multi_reduction <maximumf>, %1088, %cst_217 [1] : vector<2x8xf32> to vector<2xf32>
    %1090 = vector.shape_cast %1089 : vector<2xf32> to vector<2x1xf32>
    %1091 = vector.broadcast %1090 : vector<2x1xf32> to vector<2x8xf32>
    %1092 = arith.subf %1088, %1091 : vector<2x8xf32>
    %1093 = math.exp %1092 : vector<2x8xf32>
    %1094 = vector.broadcast %894 : vector<1x8xf32> to vector<2x8xf32>
    %1095 = arith.mulf %1093, %1094 : vector<2x8xf32>
    %cst_218 = arith.constant dense<0.000000e+00> : vector<2xf32>
    %1096 = vector.multi_reduction <add>, %1095, %cst_218 [1] : vector<2x8xf32> to vector<2xf32>
    %1097 = vector.shape_cast %1096 : vector<2xf32> to vector<2x1xf32>
    %1098 = tpu.reciprocal %1097 {approx = true} : vector<2x1xf32> -> vector<2x1xf32>
    %1099 = vector.broadcast %1098 : vector<2x1xf32> to vector<2x8xf32>
    %1100 = arith.mulf %1095, %1099 : vector<2x8xf32>
    %1101 = vector.shape_cast %1100 : vector<2x8xf32> to vector<2x8x1xf32>
    %1102 = vector.broadcast %1101 : vector<2x8x1xf32> to vector<2x8x32xf32>
    %1103 = arith.mulf %1102, %880 : vector<2x8x32xf32>
    %cst_219 = arith.constant dense<0.000000e+00> : vector<2x32xf32>
    %1104 = vector.multi_reduction <add>, %1103, %cst_219 [1] : vector<2x8x32xf32> to vector<2x32xf32>
    %cst_220 = arith.constant dense<0.000000e+00> : vector<2x96xf32>
    %1105 = tpu.matmul %1104, %888, %cst_220 {dimension_numbers = #tpu.dot_dimension_numbers<[1], [0], [0], [1], [0, 0, 1, 1], [], []>} : vector<2x32xf32>, vector<32x96xf32>, vector<2x96xf32> -> vector<2x96xf32>
    %1106 = vector.broadcast %889 : vector<1x96xf32> to vector<2x96xf32>
    %1107 = arith.addf %1105, %1106 : vector<2x96xf32>
    %1108 = vector.extract_strided_slice %1107 {offsets = [0, 0], sizes = [2, 32], strides = [1, 1]} : vector<2x96xf32> to vector<2x32xf32>
    %1109 = vector.extract_strided_slice %1079 {offsets = [0, 0], sizes = [2, 32], strides = [1, 1]} : vector<2x96xf32> to vector<2x32xf32>
    %1110 = arith.addf %1108, %1109 : vector<2x32xf32>
    %1111 = arith.negf %1110 : vector<2x32xf32>
    %1112 = math.exp %1111 : vector<2x32xf32>
    %cst_221 = arith.constant 1.000000e+00 : f32
    %1113 = vector.broadcast %cst_221 : f32 to vector<2x32xf32>
    %1114 = arith.addf %1113, %1112 : vector<2x32xf32>
    %1115 = arith.divf %1113, %1114 : vector<2x32xf32>
    %1116 = vector.extract_strided_slice %1107 {offsets = [0, 32], sizes = [2, 32], strides = [1, 1]} : vector<2x96xf32> to vector<2x32xf32>
    %1117 = vector.extract_strided_slice %1079 {offsets = [0, 32], sizes = [2, 32], strides = [1, 1]} : vector<2x96xf32> to vector<2x32xf32>
    %1118 = arith.addf %1116, %1117 : vector<2x32xf32>
    %1119 = arith.negf %1118 : vector<2x32xf32>
    %1120 = math.exp %1119 : vector<2x32xf32>
    %cst_222 = arith.constant 1.000000e+00 : f32
    %1121 = vector.broadcast %cst_222 : f32 to vector<2x32xf32>
    %1122 = arith.addf %1121, %1120 : vector<2x32xf32>
    %1123 = arith.divf %1121, %1122 : vector<2x32xf32>
    %1124 = vector.extract_strided_slice %1107 {offsets = [0, 64], sizes = [2, 32], strides = [1, 1]} : vector<2x96xf32> to vector<2x32xf32>
    %1125 = vector.extract_strided_slice %1079 {offsets = [0, 64], sizes = [2, 32], strides = [1, 1]} : vector<2x96xf32> to vector<2x32xf32>
    %1126 = arith.mulf %1115, %1125 : vector<2x32xf32>
    %1127 = arith.addf %1124, %1126 : vector<2x32xf32>
    %1128 = math.tanh %1127 : vector<2x32xf32>
    %cst_223 = arith.constant 1.000000e+00 : f32
    %1129 = vector.broadcast %cst_223 : f32 to vector<2x32xf32>
    %1130 = arith.subf %1129, %1123 : vector<2x32xf32>
    %1131 = arith.mulf %1130, %1128 : vector<2x32xf32>
    %1132 = arith.mulf %1123, %1073 : vector<2x32xf32>
    %1133 = arith.addf %1131, %1132 : vector<2x32xf32>
    %c6_224 = arith.constant 6 : index
    %c0_225 = arith.constant 0 : index
    %1134 = vector.load %arg26[%c6_224, %c0_225] : memref<12x32xf32, #tpu.memory_space<vmem>>, vector<2x32xf32>
    tpu.vector_store %arg26[%c6_224, %c0_225], %1133 {strides = array<i32>} : memref<12x32xf32, #tpu.memory_space<vmem>>, vector<2x32xf32>,
    %cst_226 = arith.constant dense<0.000000e+00> : vector<2x128xf32>
    %1135 = tpu.matmul %1133, %887, %cst_226 {dimension_numbers = #tpu.dot_dimension_numbers<[1], [0], [0], [1], [0, 0, 1, 1], [], []>} : vector<2x32xf32>, vector<32x128xf32>, vector<2x128xf32> -> vector<2x128xf32>
    %1136 = vector.extract_strided_slice %1135 {offsets = [0, 0], sizes = [2, 32], strides = [1, 1]} : vector<2x128xf32> to vector<2x32xf32>
    %1137 = vector.extract_strided_slice %1135 {offsets = [0, 32], sizes = [2, 96], strides = [1, 1]} : vector<2x128xf32> to vector<2x96xf32>
    %1138 = vector.broadcast %890 : vector<1x96xf32> to vector<2x96xf32>
    %1139 = arith.addf %1137, %1138 : vector<2x96xf32>
    %1140 = vector.shape_cast %1136 : vector<2x32xf32> to vector<2x1x32xf32>
    %1141 = vector.broadcast %1140 : vector<2x1x32xf32> to vector<2x8x32xf32>
    %1142 = arith.addf %886, %1141 : vector<2x8x32xf32>
    %1143 = math.tanh %1142 : vector<2x8x32xf32>
    %1144 = vector.broadcast %892 : vector<1x1x32xf32> to vector<2x8x32xf32>
    %1145 = arith.mulf %1143, %1144 : vector<2x8x32xf32>
    %cst_227 = arith.constant dense<0.000000e+00> : vector<2x8xf32>
    %1146 = vector.multi_reduction <add>, %1145, %cst_227 [2] : vector<2x8x32xf32> to vector<2x8xf32>
    %1147 = vector.broadcast %893 : vector<1x1xf32> to vector<2x8xf32>
    %1148 = arith.addf %1146, %1147 : vector<2x8xf32>
    %cst_228 = arith.constant dense<0xFF800000> : vector<2xf32>
    %1149 = vector.multi_reduction <maximumf>, %1148, %cst_228 [1] : vector<2x8xf32> to vector<2xf32>
    %1150 = vector.shape_cast %1149 : vector<2xf32> to vector<2x1xf32>
    %1151 = vector.broadcast %1150 : vector<2x1xf32> to vector<2x8xf32>
    %1152 = arith.subf %1148, %1151 : vector<2x8xf32>
    %1153 = math.exp %1152 : vector<2x8xf32>
    %1154 = vector.broadcast %894 : vector<1x8xf32> to vector<2x8xf32>
    %1155 = arith.mulf %1153, %1154 : vector<2x8xf32>
    %cst_229 = arith.constant dense<0.000000e+00> : vector<2xf32>
    %1156 = vector.multi_reduction <add>, %1155, %cst_229 [1] : vector<2x8xf32> to vector<2xf32>
    %1157 = vector.shape_cast %1156 : vector<2xf32> to vector<2x1xf32>
    %1158 = tpu.reciprocal %1157 {approx = true} : vector<2x1xf32> -> vector<2x1xf32>
    %1159 = vector.broadcast %1158 : vector<2x1xf32> to vector<2x8xf32>
    %1160 = arith.mulf %1155, %1159 : vector<2x8xf32>
    %1161 = vector.shape_cast %1160 : vector<2x8xf32> to vector<2x8x1xf32>
    %1162 = vector.broadcast %1161 : vector<2x8x1xf32> to vector<2x8x32xf32>
    %1163 = arith.mulf %1162, %880 : vector<2x8x32xf32>
    %cst_230 = arith.constant dense<0.000000e+00> : vector<2x32xf32>
    %1164 = vector.multi_reduction <add>, %1163, %cst_230 [1] : vector<2x8x32xf32> to vector<2x32xf32>
    %cst_231 = arith.constant dense<0.000000e+00> : vector<2x96xf32>
    %1165 = tpu.matmul %1164, %888, %cst_231 {dimension_numbers = #tpu.dot_dimension_numbers<[1], [0], [0], [1], [0, 0, 1, 1], [], []>} : vector<2x32xf32>, vector<32x96xf32>, vector<2x96xf32> -> vector<2x96xf32>
    %1166 = vector.broadcast %889 : vector<1x96xf32> to vector<2x96xf32>
    %1167 = arith.addf %1165, %1166 : vector<2x96xf32>
    %1168 = vector.extract_strided_slice %1167 {offsets = [0, 0], sizes = [2, 32], strides = [1, 1]} : vector<2x96xf32> to vector<2x32xf32>
    %1169 = vector.extract_strided_slice %1139 {offsets = [0, 0], sizes = [2, 32], strides = [1, 1]} : vector<2x96xf32> to vector<2x32xf32>
    %1170 = arith.addf %1168, %1169 : vector<2x32xf32>
    %1171 = arith.negf %1170 : vector<2x32xf32>
    %1172 = math.exp %1171 : vector<2x32xf32>
    %cst_232 = arith.constant 1.000000e+00 : f32
    %1173 = vector.broadcast %cst_232 : f32 to vector<2x32xf32>
    %1174 = arith.addf %1173, %1172 : vector<2x32xf32>
    %1175 = arith.divf %1173, %1174 : vector<2x32xf32>
    %1176 = vector.extract_strided_slice %1167 {offsets = [0, 32], sizes = [2, 32], strides = [1, 1]} : vector<2x96xf32> to vector<2x32xf32>
    %1177 = vector.extract_strided_slice %1139 {offsets = [0, 32], sizes = [2, 32], strides = [1, 1]} : vector<2x96xf32> to vector<2x32xf32>
    %1178 = arith.addf %1176, %1177 : vector<2x32xf32>
    %1179 = arith.negf %1178 : vector<2x32xf32>
    %1180 = math.exp %1179 : vector<2x32xf32>
    %cst_233 = arith.constant 1.000000e+00 : f32
    %1181 = vector.broadcast %cst_233 : f32 to vector<2x32xf32>
    %1182 = arith.addf %1181, %1180 : vector<2x32xf32>
    %1183 = arith.divf %1181, %1182 : vector<2x32xf32>
    %1184 = vector.extract_strided_slice %1167 {offsets = [0, 64], sizes = [2, 32], strides = [1, 1]} : vector<2x96xf32> to vector<2x32xf32>
    %1185 = vector.extract_strided_slice %1139 {offsets = [0, 64], sizes = [2, 32], strides = [1, 1]} : vector<2x96xf32> to vector<2x32xf32>
    %1186 = arith.mulf %1175, %1185 : vector<2x32xf32>
    %1187 = arith.addf %1184, %1186 : vector<2x32xf32>
    %1188 = math.tanh %1187 : vector<2x32xf32>
    %cst_234 = arith.constant 1.000000e+00 : f32
    %1189 = vector.broadcast %cst_234 : f32 to vector<2x32xf32>
    %1190 = arith.subf %1189, %1183 : vector<2x32xf32>
    %1191 = arith.mulf %1190, %1188 : vector<2x32xf32>
    %1192 = arith.mulf %1183, %1133 : vector<2x32xf32>
    %1193 = arith.addf %1191, %1192 : vector<2x32xf32>
    %c8_235 = arith.constant 8 : index
    %c0_236 = arith.constant 0 : index
    %1194 = vector.load %arg26[%c8_235, %c0_236] : memref<12x32xf32, #tpu.memory_space<vmem>>, vector<2x32xf32>
    tpu.vector_store %arg26[%c8_235, %c0_236], %1193 {strides = array<i32>} : memref<12x32xf32, #tpu.memory_space<vmem>>, vector<2x32xf32>,
    %cst_237 = arith.constant dense<0.000000e+00> : vector<2x128xf32>
    %1195 = tpu.matmul %1193, %887, %cst_237 {dimension_numbers = #tpu.dot_dimension_numbers<[1], [0], [0], [1], [0, 0, 1, 1], [], []>} : vector<2x32xf32>, vector<32x128xf32>, vector<2x128xf32> -> vector<2x128xf32>
    %1196 = vector.extract_strided_slice %1195 {offsets = [0, 0], sizes = [2, 32], strides = [1, 1]} : vector<2x128xf32> to vector<2x32xf32>
    %1197 = vector.extract_strided_slice %1195 {offsets = [0, 32], sizes = [2, 96], strides = [1, 1]} : vector<2x128xf32> to vector<2x96xf32>
    %1198 = vector.broadcast %890 : vector<1x96xf32> to vector<2x96xf32>
    %1199 = arith.addf %1197, %1198 : vector<2x96xf32>
    %1200 = vector.shape_cast %1196 : vector<2x32xf32> to vector<2x1x32xf32>
    %1201 = vector.broadcast %1200 : vector<2x1x32xf32> to vector<2x8x32xf32>
    %1202 = arith.addf %886, %1201 : vector<2x8x32xf32>
    %1203 = math.tanh %1202 : vector<2x8x32xf32>
    %1204 = vector.broadcast %892 : vector<1x1x32xf32> to vector<2x8x32xf32>
    %1205 = arith.mulf %1203, %1204 : vector<2x8x32xf32>
    %cst_238 = arith.constant dense<0.000000e+00> : vector<2x8xf32>
    %1206 = vector.multi_reduction <add>, %1205, %cst_238 [2] : vector<2x8x32xf32> to vector<2x8xf32>
    %1207 = vector.broadcast %893 : vector<1x1xf32> to vector<2x8xf32>
    %1208 = arith.addf %1206, %1207 : vector<2x8xf32>
    %cst_239 = arith.constant dense<0xFF800000> : vector<2xf32>
    %1209 = vector.multi_reduction <maximumf>, %1208, %cst_239 [1] : vector<2x8xf32> to vector<2xf32>
    %1210 = vector.shape_cast %1209 : vector<2xf32> to vector<2x1xf32>
    %1211 = vector.broadcast %1210 : vector<2x1xf32> to vector<2x8xf32>
    %1212 = arith.subf %1208, %1211 : vector<2x8xf32>
    %1213 = math.exp %1212 : vector<2x8xf32>
    %1214 = vector.broadcast %894 : vector<1x8xf32> to vector<2x8xf32>
    %1215 = arith.mulf %1213, %1214 : vector<2x8xf32>
    %cst_240 = arith.constant dense<0.000000e+00> : vector<2xf32>
    %1216 = vector.multi_reduction <add>, %1215, %cst_240 [1] : vector<2x8xf32> to vector<2xf32>
    %1217 = vector.shape_cast %1216 : vector<2xf32> to vector<2x1xf32>
    %1218 = tpu.reciprocal %1217 {approx = true} : vector<2x1xf32> -> vector<2x1xf32>
    %1219 = vector.broadcast %1218 : vector<2x1xf32> to vector<2x8xf32>
    %1220 = arith.mulf %1215, %1219 : vector<2x8xf32>
    %1221 = vector.shape_cast %1220 : vector<2x8xf32> to vector<2x8x1xf32>
    %1222 = vector.broadcast %1221 : vector<2x8x1xf32> to vector<2x8x32xf32>
    %1223 = arith.mulf %1222, %880 : vector<2x8x32xf32>
    %cst_241 = arith.constant dense<0.000000e+00> : vector<2x32xf32>
    %1224 = vector.multi_reduction <add>, %1223, %cst_241 [1] : vector<2x8x32xf32> to vector<2x32xf32>
    %cst_242 = arith.constant dense<0.000000e+00> : vector<2x96xf32>
    %1225 = tpu.matmul %1224, %888, %cst_242 {dimension_numbers = #tpu.dot_dimension_numbers<[1], [0], [0], [1], [0, 0, 1, 1], [], []>} : vector<2x32xf32>, vector<32x96xf32>, vector<2x96xf32> -> vector<2x96xf32>
    %1226 = vector.broadcast %889 : vector<1x96xf32> to vector<2x96xf32>
    %1227 = arith.addf %1225, %1226 : vector<2x96xf32>
    %1228 = vector.extract_strided_slice %1227 {offsets = [0, 0], sizes = [2, 32], strides = [1, 1]} : vector<2x96xf32> to vector<2x32xf32>
    %1229 = vector.extract_strided_slice %1199 {offsets = [0, 0], sizes = [2, 32], strides = [1, 1]} : vector<2x96xf32> to vector<2x32xf32>
    %1230 = arith.addf %1228, %1229 : vector<2x32xf32>
    %1231 = arith.negf %1230 : vector<2x32xf32>
    %1232 = math.exp %1231 : vector<2x32xf32>
    %cst_243 = arith.constant 1.000000e+00 : f32
    %1233 = vector.broadcast %cst_243 : f32 to vector<2x32xf32>
    %1234 = arith.addf %1233, %1232 : vector<2x32xf32>
    %1235 = arith.divf %1233, %1234 : vector<2x32xf32>
    %1236 = vector.extract_strided_slice %1227 {offsets = [0, 32], sizes = [2, 32], strides = [1, 1]} : vector<2x96xf32> to vector<2x32xf32>
    %1237 = vector.extract_strided_slice %1199 {offsets = [0, 32], sizes = [2, 32], strides = [1, 1]} : vector<2x96xf32> to vector<2x32xf32>
    %1238 = arith.addf %1236, %1237 : vector<2x32xf32>
    %1239 = arith.negf %1238 : vector<2x32xf32>
    %1240 = math.exp %1239 : vector<2x32xf32>
    %cst_244 = arith.constant 1.000000e+00 : f32
    %1241 = vector.broadcast %cst_244 : f32 to vector<2x32xf32>
    %1242 = arith.addf %1241, %1240 : vector<2x32xf32>
    %1243 = arith.divf %1241, %1242 : vector<2x32xf32>
    %1244 = vector.extract_strided_slice %1227 {offsets = [0, 64], sizes = [2, 32], strides = [1, 1]} : vector<2x96xf32> to vector<2x32xf32>
    %1245 = vector.extract_strided_slice %1199 {offsets = [0, 64], sizes = [2, 32], strides = [1, 1]} : vector<2x96xf32> to vector<2x32xf32>
    %1246 = arith.mulf %1235, %1245 : vector<2x32xf32>
    %1247 = arith.addf %1244, %1246 : vector<2x32xf32>
    %1248 = math.tanh %1247 : vector<2x32xf32>
    %cst_245 = arith.constant 1.000000e+00 : f32
    %1249 = vector.broadcast %cst_245 : f32 to vector<2x32xf32>
    %1250 = arith.subf %1249, %1243 : vector<2x32xf32>
    %1251 = arith.mulf %1250, %1248 : vector<2x32xf32>
    %1252 = arith.mulf %1243, %1193 : vector<2x32xf32>
    %1253 = arith.addf %1251, %1252 : vector<2x32xf32>
    %c10_246 = arith.constant 10 : index
    %c0_247 = arith.constant 0 : index
    %1254 = vector.load %arg26[%c10_246, %c0_247] : memref<12x32xf32, #tpu.memory_space<vmem>>, vector<2x32xf32>
    tpu.vector_store %arg26[%c10_246, %c0_247], %1253 {strides = array<i32>} : memref<12x32xf32, #tpu.memory_space<vmem>>, vector<2x32xf32>,
    %c0_248 = arith.constant 0 : index
    %c0_249 = arith.constant 0 : index
    %1255 = vector.load %arg26[%c0_248, %c0_249] : memref<12x32xf32, #tpu.memory_space<vmem>>, vector<12x32xf32>
    %c0_250 = arith.constant 0 : index
    %c0_251 = arith.constant 0 : index
    %1256 = vector.load %arg22[%c0_250, %c0_251] : memref<32x2xf32, #tpu.memory_space<vmem>>, vector<32x2xf32>
    %cst_252 = arith.constant dense<0.000000e+00> : vector<12x2xf32>
    %1257 = tpu.matmul %1255, %1256, %cst_252 {dimension_numbers = #tpu.dot_dimension_numbers<[1], [0], [0], [1], [0, 0, 1, 1], [], []>} : vector<12x32xf32>, vector<32x2xf32>, vector<12x2xf32> -> vector<12x2xf32>
    %c0_253 = arith.constant 0 : index
    %c0_254 = arith.constant 0 : index
    %1258 = vector.load %arg23[%c0_253, %c0_254] : memref<1x2xf32, #tpu.memory_space<vmem>>, vector<1x2xf32>
    %1259 = vector.broadcast %1258 : vector<1x2xf32> to vector<12x2xf32>
    %1260 = arith.addf %1257, %1259 : vector<12x2xf32>
    %c0_255 = arith.constant 0 : index
    %c0_256 = arith.constant 0 : index
    %1261 = vector.load %arg24[%c0_255, %c0_256] : memref<12x2xf32, #tpu.memory_space<vmem>>, vector<12x2xf32>
    tpu.vector_store %arg24[%c0_255, %c0_256], %1260 {strides = array<i32>} : memref<12x2xf32, #tpu.memory_space<vmem>>, vector<12x2xf32>,
    return
  }
}

</mosaic_0001>

<bundles_post_ra>
// kernel: tpu_custom_call.1
= control target key start
LH: loop header
LB: loop body
LE: loop exit
PB: predicated region body
PF: predicated region fallthrough
CT: control target
= control target key end

     0   :  { %s6686_s0 = inlined_call_operand.vmem [shape: f32[16,5], index: 0, kind: input, shape index: {}]   ;;  %s6687_s1 = inlined_call_operand.hbm [shape: f32[16,18], index: 1, kind: input, shape index: {}]   ;;  %s6688_s2 = inlined_call_operand.vmem [shape: f32[16,1], index: 2, kind: input, shape index: {}]   ;;  %s6689_s3 = inlined_call_operand.vmem [shape: f32[1,8], index: 3, kind: input, shape index: {}]   ;;  %s6690_s4 = inlined_call_operand.hbm [shape: f32[5,16], index: 4, kind: input, shape index: {}]   ;;  %s6691_s5 = inlined_call_operand.hbm [shape: f32[1,16], index: 5, kind: input, shape index: {}]   ;;  %s6692_s6 = inlined_call_operand.hbm [shape: f32[16,96], index: 6, kind: input, shape index: {}]   ;;  %s6693_s7 = inlined_call_operand.hbm [shape: f32[1,96], index: 7, kind: input, shape index: {}]   ;;  %s6694_s8 = inlined_call_operand.hbm [shape: f32[18,32], index: 8, kind: input, shape index: {}]   ;;  %s6695_s9 = inlined_call_operand.hbm [shape: f32[1,32], index: 9, kind: input, shape index: {}]   ;;  %s6696_s10 = inlined_call_operand.vmem [shape: f32[32,96], index: 10, kind: input, shape index: {}]   ;;  %s6697_s11 = inlined_call_operand.hbm [shape: f32[1,96], index: 11, kind: input, shape index: {}]   ;;  %s6698_s12 = inlined_call_operand.hbm [shape: f32[64,192], index: 12, kind: input, shape index: {}]   ;;  %s6699_s13 = inlined_call_operand.vmem [shape: f32[1,192], index: 13, kind: input, shape index: {}]   ;;  %s6700_s14 = inlined_call_operand.vmem [shape: f32[32,96], index: 14, kind: input, shape index: {}]   ;;  %s6701_s15 = inlined_call_operand.vmem [shape: f32[1,96], index: 15, kind: input, shape index: {}]   ;;  %s6702_s16 = inlined_call_operand.vmem [shape: f32[1,96], index: 16, kind: input, shape index: {}]   ;;  %s6703_s17 = inlined_call_operand.vmem [shape: f32[32,128], index: 17, kind: input, shape index: {}]   ;;  %s6704_s18 = inlined_call_operand.vmem [shape: f32[32,32], index: 18, kind: input, shape index: {}]   ;;  %s6705_s19 = inlined_call_operand.vmem [shape: f32[1,32], index: 19, kind: input, shape index: {}]   ;;  %s6706_s20 = inlined_call_operand.vmem [shape: f32[1,32], index: 20, kind: input, shape index: {}]   ;;  %s6707_s21 = inlined_call_operand.<no memory space> [shape: f32[1,1], index: 21, kind: input, shape index: {}]   ;;  %s6708_s22 = inlined_call_operand.vmem [shape: f32[32,2], index: 22, kind: input, shape index: {}]   ;;  %s6709_s23 = inlined_call_operand.vmem [shape: f32[1,2], index: 23, kind: input, shape index: {}]   ;;  %s6710_s24 = inlined_call_operand.vmem [shape: f32[12,2], index: 24, kind: output, shape index: {}]  }
   0x1   :  { %6724 = sst [smem:[#allocation24_spill]] %s6686_s0  ;;  %v29_v0 = vstv %s6707_s21 }
   0x2   :  { %6725 = sst [smem:[#allocation25_spill]] %s6687_s1  ;;  %30 = vst [vmem:[#allocation4] sm:$0x1] %v29_v0 }
   0x3   :  { %6726 = sst [smem:[#allocation26_spill]] %s6688_s2 }
   0x4   :  { %6727 = sst [smem:[#allocation27_spill]] %s6689_s3 }
   0x5   :  { %6728 = sst [smem:[#allocation28_spill]] %s6690_s4 }
   0x6   :  { %6729 = sst [smem:[#allocation29_spill]] %s6691_s5 }
   0x7   :  { %6730 = sst [smem:[#allocation30_spill]] %s6692_s6 }
   0x8   :  { %6731 = sst [smem:[#allocation31_spill]] %s6693_s7 }
   0x9   :  { %6732 = sst [smem:[#allocation32_spill]] %s6694_s8 }
   0xa   :  { %6733 = sst [smem:[#allocation33_spill]] %s6710_s24 }
   0xb   :  { %31 = vsyncpa [#allocation6], 0 }
   0xc   :  { %32 = vsyncpa [#allocation8], 0 }
   0xd   :  { %33 = vsyncpa [#allocation11], 0 }
   0xe   :  { %34 = vsyncpa [#allocation14], 0 }
   0xf   :  { %35 = vsyncpa [#allocation17], 0  ;;  %s5448_s27 = smov [#allocation7]   ;;  %s6734_s29 = sld [smem:[#allocation28_spill]] }
  0x10   :  { %s60_s28 = sshll.u32 %s5448_s27, 4  ;;  %s61_s28 = int_to_ptr.vmem [resolvable:$true] %s60_s28 }
  0x15   :  { %s5240_s0 = scalar_lea.hbm %s6734_s29, 128 }
  0x16   :  { %p5241_p0 = scmp.ne.s32.totalorder %s6734_s29, %s5240_s0  ;;  %p5244_p1 = scmp.lt.u32.totalorder %s5240_s0, %s6734_s29 }
  0x18   :  { %p5246_p2 = pnand %p5244_p1, %p5241_p0 }
  0x1a   :  { %5249 = shalt.err (!%p5246_p2)
}
  0x1b   :  { %s5250_s21 = scalar_lea.vmem %s61_s28, 128  ;;  %p5255_p4 = scmp.lt.s32.totalorder %s61_s28, %s61_s28 }
  0x1c   :  { %p5251_p3 = scmp.ne.s32.totalorder %s61_s28, %s5250_s21  ;;  %p5256_p5 = scmp.lt.s32.totalorder %s5250_s21, %s5250_s21 }
  0x1e   :  { %p5257_p6 = por %p5256_p5, %p5255_p4 }
  0x20   :  { %p5258_p7 = pnand %p5257_p6, %p5251_p3 }
  0x22   :  { %5261 = shalt.err (!%p5258_p7)
}
  0x23   :  { %63 = dma.hbm_to_vmem [thread:$0]  %s6734_s29, 128, %s61_s28, [#allocation8]  }
  0x24   :  { %s5449_s1 = smov [#allocation10]   ;;  %s5450_s26 = smov [#allocation13]  }
  0x25   :  { %s79_s5 = sshll.u32 %s5449_s1, 4  ;;  %s101_s27 = sshll.u32 %s5450_s26, 4  ;;  %s80_s5 = int_to_ptr.vmem [resolvable:$true] %s79_s5  ;;  %s102_s27 = int_to_ptr.vmem [resolvable:$true] %s101_s27 }
  0x26   :  { %s6735_s0 = sld [smem:[#allocation30_spill]] }
  0x2c   :  { %s5262_s7 = scalar_lea.hbm %s6735_s0, 256 }
  0x2d   :  { %p5263_p8 = scmp.ne.s32.totalorder %s6735_s0, %s5262_s7  ;;  %p5266_p9 = scmp.lt.u32.totalorder %s5262_s7, %s6735_s0 }
  0x2f   :  { %p5268_p10 = pnand %p5266_p9, %p5263_p8 }
  0x31   :  { %5271 = shalt.err (!%p5268_p10)
}
  0x32   :  { %s5272_s28 = scalar_lea.vmem %s80_s5, 256  ;;  %p5277_p12 = scmp.lt.s32.totalorder %s80_s5, %s80_s5 }
  0x33   :  { %p5273_p11 = scmp.ne.s32.totalorder %s80_s5, %s5272_s28  ;;  %p5278_p13 = scmp.lt.s32.totalorder %s5272_s28, %s5272_s28 }
  0x35   :  { %p5279_p0 = por %p5278_p13, %p5277_p12 }
  0x37   :  { %p5280_p1 = pnand %p5279_p0, %p5273_p11 }
  0x39   :  { %5283 = shalt.err (!%p5280_p1)
}
  0x3a   :  { %s5451_s29 = smov 128   ;;  %s5452_s8 = smov 8  }
  0x3b   :  { %85 = dma.hbm_to_vmem [thread:$0]  %s6735_s0, 256, %s80_s5, [#allocation11], %s5451_s29, %s5451_s29, %s5452_s8  }
  0x3c   :  { %s6736_s2 = sld [smem:[#allocation32_spill]] }
  0x42   :  { %s5284_s7 = scalar_lea.hbm %s6736_s2, 384 }
  0x43   :  { %p5285_p2 = scmp.ne.s32.totalorder %s6736_s2, %s5284_s7  ;;  %p5288_p3 = scmp.lt.u32.totalorder %s5284_s7, %s6736_s2 }
  0x45   :  { %p5290_p4 = pnand %p5288_p3, %p5285_p2 }
  0x47   :  { %5293 = shalt.err (!%p5290_p4)
}
  0x48   :  { %s5294_s28 = scalar_lea.vmem %s102_s27, 384  ;;  %p5299_p6 = scmp.lt.s32.totalorder %s102_s27, %s102_s27 }
  0x49   :  { %p5295_p5 = scmp.ne.s32.totalorder %s102_s27, %s5294_s28  ;;  %p5300_p7 = scmp.lt.s32.totalorder %s5294_s28, %s5294_s28 }
  0x4b   :  { %p5301_p8 = por %p5300_p7, %p5299_p6 }
  0x4d   :  { %p5302_p9 = pnand %p5301_p8, %p5295_p5 }
  0x4f   :  { %5305 = shalt.err (!%p5302_p9)
}
  0x50   :  { %107 = dma.hbm_to_vmem [thread:$0]  %s6736_s2, 384, %s102_s27, [#allocation14], %s5451_s29, %s5451_s29, %s5452_s8  }
  0x51   :  { %s5453_s4 = smov [#allocation16]   ;;  %s5454_s26 = smov [#allocation5]  }
  0x52   :  { %s126_s1 = sshll.u32 %s5453_s4, 4  ;;  %s43_s6 = sshll.u32 %s5454_s26, 4  ;;  %s127_s1 = int_to_ptr.vmem [resolvable:$true] %s126_s1  ;;  %s44_s6 = int_to_ptr.vmem [resolvable:$true] %s43_s6 }
  0x53   :  { %s5306_s3 = scalar_lea.hbm %s6697_s11, 16 }
  0x54   :  { %p5307_p10 = scmp.ne.s32.totalorder %s6697_s11, %s5306_s3  ;;  %p5310_p11 = scmp.lt.u32.totalorder %s5306_s3, %s6697_s11 }
  0x56   :  { %p5312_p12 = pnand %p5310_p11, %p5307_p10 }
  0x58   :  { %5315 = shalt.err (!%p5312_p12)
}
  0x59   :  { %s5316_s27 = scalar_lea.vmem %s127_s1, 16  ;;  %s5320_s2 = scalar_lea.vmem %s127_s1, 32 }
  0x5a   :  { %p5317_p13 = scmp.ne.s32.totalorder %s127_s1, %s5316_s27  ;;  %p5321_p0 = scmp.lt.s32.totalorder %s127_s1, %s127_s1 }
  0x5b   :  { %p5322_p1 = scmp.lt.s32.totalorder %s5320_s2, %s5316_s27 }
  0x5d   :  { %p5323_p2 = por %p5322_p1, %p5321_p0 }
  0x5f   :  { %p5324_p3 = pnand %p5323_p2, %p5317_p13 }
  0x61   :  { %5327 = shalt.err (!%p5324_p3)
}
  0x62   :  { %129 = dma.hbm_to_vmem [thread:$0]  %s6697_s11, 16, %s127_s1, [#allocation17]  }
  0x63   :  { %s6737_s7 = sld [smem:[#allocation25_spill]] }
  0x69   :  { %s5328_s24 = scalar_lea.hbm %s6737_s7, 256 }
  0x6a   :  { %p5329_p4 = scmp.ne.s32.totalorder %s6737_s7, %s5328_s24  ;;  %p5332_p5 = scmp.lt.u32.totalorder %s5328_s24, %s6737_s7 }
  0x6c   :  { %p5334_p6 = pnand %p5332_p5, %p5329_p4 }
  0x6e   :  { %5337 = shalt.err (!%p5334_p6)
}
  0x6f   :  { %s5338_s28 = scalar_lea.vmem %s44_s6, 256  ;;  %p5343_p8 = scmp.lt.s32.totalorder %s44_s6, %s44_s6 }
  0x70   :  { %p5339_p7 = scmp.ne.s32.totalorder %s44_s6, %s5338_s28  ;;  %p5344_p9 = scmp.lt.s32.totalorder %s5338_s28, %s5338_s28 }
  0x72   :  { %p5345_p10 = por %p5344_p9, %p5343_p8 }
  0x74   :  { %p5346_p11 = pnand %p5345_p10, %p5339_p7 }
  0x76   :  { %5349 = shalt.err (!%p5346_p11)
}
  0x77   :  { %49 = dma.hbm_to_vmem [thread:$0]  %s6737_s7, 256, %s44_s6, [#allocation6], %s5451_s29, %s5451_s29, %s5452_s8  }
  0x78   :  { %s5455_s27 = smov [#allocation9]   ;;  %s5456_s5 = smov [#allocation12]  }
  0x79   :  { %s70_s2 = sshll.u32 %s5455_s27, 4  ;;  %s92_s0 = sshll.u32 %s5456_s5, 4  ;;  %s71_s2 = int_to_ptr.vmem [resolvable:$true] %s70_s2  ;;  %s93_s0 = int_to_ptr.vmem [resolvable:$true] %s92_s0 }
  0x7a   :  { %s6738_s24 = sld [smem:[#allocation29_spill]] }
  0x80   :  { %s5350_s30 = scalar_lea.hbm %s6738_s24, 16 }
  0x81   :  { %p5351_p12 = scmp.ne.s32.totalorder %s6738_s24, %s5350_s30  ;;  %p5354_p13 = scmp.lt.u32.totalorder %s5350_s30, %s6738_s24 }
  0x83   :  { %p5356_p0 = pnand %p5354_p13, %p5351_p12 }
  0x85   :  { %5359 = shalt.err (!%p5356_p0)
}
  0x86   :  { %s5360_s29 = scalar_lea.vmem %s71_s2, 16  ;;  %s5364_s8 = scalar_lea.vmem %s71_s2, 32 }
  0x87   :  { %p5361_p1 = scmp.ne.s32.totalorder %s71_s2, %s5360_s29  ;;  %p5365_p2 = scmp.lt.s32.totalorder %s71_s2, %s71_s2 }
  0x88   :  { %p5366_p3 = scmp.lt.s32.totalorder %s5364_s8, %s5360_s29 }
  0x8a   :  { %p5367_p4 = por %p5366_p3, %p5365_p2 }
  0x8c   :  { %p5368_p5 = pnand %p5367_p4, %p5361_p1 }
  0x8e   :  { %5371 = shalt.err (!%p5368_p5)
}
  0x8f   :  { %73 = dma.hbm_to_vmem [thread:$0]  %s6738_s24, 16, %s71_s2, [#allocation8]  }
  0x90   :  { %s6739_s27 = sld [smem:[#allocation31_spill]] }
  0x96   :  { %s5372_s5 = scalar_lea.hbm %s6739_s27, 16 }
  0x97   :  { %p5373_p6 = scmp.ne.s32.totalorder %s6739_s27, %s5372_s5  ;;  %p5376_p7 = scmp.lt.u32.totalorder %s5372_s5, %s6739_s27 }
  0x99   :  { %p5378_p8 = pnand %p5376_p7, %p5373_p6 }
  0x9b   :  { %5381 = shalt.err (!%p5378_p8)
}
  0x9c   :  { %s5382_s25 = scalar_lea.vmem %s93_s0, 16  ;;  %s5386_s21 = scalar_lea.vmem %s93_s0, 32 }
  0x9d   :  { %p5383_p9 = scmp.ne.s32.totalorder %s93_s0, %s5382_s25  ;;  %p5387_p10 = scmp.lt.s32.totalorder %s93_s0, %s93_s0 }
  0x9e   :  { %p5388_p11 = scmp.lt.s32.totalorder %s5386_s21, %s5382_s25 }
  0xa0   :  { %p5389_p12 = por %p5388_p11, %p5387_p10 }
  0xa2   :  { %p5390_p13 = pnand %p5389_p12, %p5383_p9 }
  0xa4   :  { %5393 = shalt.err (!%p5390_p13)
}
  0xa5   :  { %95 = dma.hbm_to_vmem [thread:$0]  %s6739_s27, 16, %s93_s0, [#allocation11]  }
  0xa6   :  { %s5457_s28 = smov [#allocation15]   ;;  %s5458_s8 = smov [#allocation18]  }
  0xa7   :  { %s114_s29 = sshll.u32 %s5457_s28, 4  ;;  %s135_s6 = sshll.u32 %s5458_s8, 4  ;;  %s115_s29 = int_to_ptr.vmem [resolvable:$true] %s114_s29  ;;  %s136_s6 = int_to_ptr.vmem [resolvable:$true] %s135_s6 }
  0xa8   :  { %s5394_s1 = scalar_lea.hbm %s6695_s9, 16 }
  0xa9   :  { %p5395_p0 = scmp.ne.s32.totalorder %s6695_s9, %s5394_s1  ;;  %p5398_p1 = scmp.lt.u32.totalorder %s5394_s1, %s6695_s9 }
  0xab   :  { %p5400_p2 = pnand %p5398_p1, %p5395_p0 }
  0xad   :  { %5403 = shalt.err (!%p5400_p2)
}
  0xae   :  { %s5404_s0 = scalar_lea.vmem %s115_s29, 16  ;;  %s5408_s27 = scalar_lea.vmem %s115_s29, 32 }
  0xaf   :  { %p5405_p3 = scmp.ne.s32.totalorder %s115_s29, %s5404_s0  ;;  %p5409_p4 = scmp.lt.s32.totalorder %s115_s29, %s115_s29 }
  0xb0   :  { %p5410_p5 = scmp.lt.s32.totalorder %s5408_s27, %s5404_s0 }
  0xb2   :  { %p5411_p6 = por %p5410_p5, %p5409_p4 }
  0xb4   :  { %p5412_p7 = pnand %p5411_p6, %p5405_p3 }
  0xb6   :  { %5415 = shalt.err (!%p5412_p7)
}
  0xb7   :  { %117 = dma.hbm_to_vmem [thread:$0]  %s6695_s9, 16, %s115_s29, [#allocation14]  }
  0xb8   :  { %s5416_s24 = scalar_lea.hbm %s6698_s12, 2048 }
  0xb9   :  { %p5417_p8 = scmp.ne.s32.totalorder %s6698_s12, %s5416_s24  ;;  %p5420_p9 = scmp.lt.u32.totalorder %s5416_s24, %s6698_s12 }
  0xbb   :  { %p5422_p10 = pnand %p5420_p9, %p5417_p8 }
  0xbd   :  { %5425 = shalt.err (!%p5422_p10)
}
  0xbe   :  { %s5426_s1 = scalar_lea.vmem %s136_s6, 2048  ;;  %p5431_p12 = scmp.lt.s32.totalorder %s136_s6, %s136_s6 }
  0xbf   :  { %p5427_p11 = scmp.ne.s32.totalorder %s136_s6, %s5426_s1  ;;  %p5432_p13 = scmp.lt.s32.totalorder %s5426_s1, %s5426_s1 }
  0xc1   :  { %p5433_p0 = por %p5432_p13, %p5431_p12 }
  0xc3   :  { %p5434_p1 = pnand %p5433_p0, %p5427_p11 }
  0xc5   :  { %5437 = shalt.err (!%p5434_p1)
}
  0xc6   :  { %s5459_s9 = smov 256   ;;  %s5460_s29 = smov 16  }
  0xc7   :  { %141 = dma.hbm_to_vmem [thread:$0]  %s6698_s12, 2048, %s136_s6, [#allocation17], %s5459_s9, %s5459_s9, %s5460_s29  }
  0xc8   :  { %5438 = dma.done.wait [#allocation6], 256  }
  0xc9   :  { %5439 = vsyncadd [#allocation6], 4294967040 }
  0xca   :  { %5440 = dma.done.wait [#allocation8], 144  }
  0xcb   :  { %5441 = vsyncadd [#allocation8], 4294967152 }
  0xcc   :  { %5442 = dma.done.wait [#allocation11], 272  }
  0xcd   :  { %5443 = vsyncadd [#allocation11], 4294967024 }
  0xce   :  { %5444 = dma.done.wait [#allocation14], 400  }
  0xcf   :  { %5445 = vsyncadd [#allocation14], 4294966896 }
  0xd0   :  { %5446 = dma.done.wait [#allocation17], 2064  }
  0xd1   :  { %5447 = vsyncadd [#allocation17], 4294965232  ;;  %vm208_vm0 = vcmask 1044480   ;;  %vm201_vm1 = vcmask 39936   ;;  %v193_v1 = vld [vmem:[#allocation7] sm:$0x1f]  ;;  %v601_v58 = vlaneseq }
  0xd2   :  { %s6740_s0 = sld [smem:[#allocation24_spill]]  ;;  %4553 = vmatprep.subr.msk.mxu0 %vm208_vm0, %v193_v1  ;;  %v386_v4 = vld [vmem:[#allocation13] sm:$0xff]  ;;  %v387_v5 = vld [vmem:[#allocation13 + $0x8] sm:$0xff]  ;;  %vm396_vm2 = vcmask 146432   ;;  %v384_v7 = vld [vmem:[#allocation5] sm:$0xff]  ;;  %vm403_vm3 = vcmask 1041408  }
  0xd3   :  { %4554 = vmatpush3.msk.msra.mxu0 %vm208_vm0, %v193_v1  ;;  %v4743_v6 = vpack.c.bf16 %v387_v5, %v386_v4  ;;  %v388_v8 = vld [vmem:[#allocation13 + $0x10] sm:$0x3]  ;;  %v584_v9 = vld [vmem:[#allocation18 + $0x8] sm:$0xff]  ;;  %v586_v10 = vld [vmem:[#allocation18 + $0x18] sm:$0xff]  ;;  %v5461_v24 = vmov 0.0   ;;  %vm302_vm6 = vcmask 130048  }
  0xd4   :  { %v583_v11 = vld [vmem:[#allocation18] sm:$0xff]  ;;  %v585_v12 = vld [vmem:[#allocation18 + $0x10] sm:$0xff]  ;;  %v588_v13 = vld [vmem:[#allocation18 + $0x28] sm:$0xff]  ;;  %v5725_v15 = vpack.c.bf16 %v586_v10, %v584_v9  ;;  %vm6723_vm8 = vcmask 261120   ;;  %v5776_v62 = vshrl.u32 %v601_v58, 7  ;;  %s5463_s11 = smov 32  }
  0xd5   :  { %4744 = vmatprep.subr.bf16.mxu0 %v4743_v6  ;;  %v590_v14 = vld [vmem:[#allocation18 + $0x38] sm:$0xff]  ;;  %v385_v16 = vld [vmem:[#allocation5 + $0x8] sm:$0xff]  ;;  %v5727_v17 = vpack.c.bf16 %v585_v12, %v583_v11  ;;  %v589_v20 = vld [vmem:[#allocation18 + $0x30] sm:$0xff]  ;;  %s6741_s5 = sld [smem:[#allocation26_spill]]  ;;  %s5465_s4 = smov 112   ;;  %vm6722_vm10 = vcmask 392192  }
  0xd6   :  { %v5729_v18 = vpack.c.bf16 %v590_v14, %v588_v13  ;;  %v587_v19 = vld [vmem:[#allocation18 + $0x20] sm:$0xff]  ;;  %v592_v21 = vld [vmem:[#allocation18 + $0x48] sm:$0xff]  ;;  %v594_v22 = vld [vmem:[#allocation18 + $0x58] sm:$0xff]  ;;  %v5782_v0 = vsub.s32 0, %v5776_v62  ;;  %v5785_v1 = vsub.s32 1, %v5776_v62  ;;  %s5466_s26 = smov 96  }
  0xd7   :  { %v5735_v23 = vpack.c.bf16 %v589_v20, %v587_v19  ;;  %v5739_v25 = vpack.c.bf16 %v594_v22, %v592_v21  ;;  %v591_v26 = vld [vmem:[#allocation18 + $0x40] sm:$0xff]  ;;  %v593_v27 = vld [vmem:[#allocation18 + $0x50] sm:$0xff]  ;;  %v596_v28 = vld [vmem:[#allocation18 + $0x68] sm:$0xff]  ;;  %vm611_vm11 = vcmask 523264   ;;  %s5467_s27 = smov 80   ;;  %vm787_vm12 = vcmask 260230  }
  0xd8   :  { %v191_v2 = vld [vmem:[%s6740_s0] sm:$0xff]  ;;  %v192_v3 = vld [vmem:[%s6740_s0 + $0x8] sm:$0xff]  ;;  %v5742_v30 = vpack.c.bf16 %v593_v27, %v591_v26  ;;  %v4389_v41 = vld [vmem:[#allocation9] ss:$0 sm:$0xff]  ;;  %vm791_vm13 = vcmask 261255   ;;  %vm988_vm14 = vcmask 258180  }
  0xd9   :  { %4555 = vmatprep.mubr.msk.f32.mxu0 %vm201_vm1, %v191_v2  ;;  %v598_v29 = vld [vmem:[#allocation18 + $0x78] sm:$0xff]  ;;  %v595_v32 = vld [vmem:[#allocation18 + $0x60] sm:$0xff]  ;;  %v597_v33 = vld [vmem:[#allocation18 + $0x70] sm:$0xff]  ;;  %vm992_vm15 = vcmask 259205   ;;  %vm1188_vm0 = vcmask 256130   ;;  %s6750_s3 = sld [smem:[#allocation27_spill]] }
  0xda   :  { %4556 = vmatmul.mubr.msk.f32.vlgmr.msra.gmra.mrb[0].mxu0 %vm201_vm1, %v192_v3  ;;  %v5745_v31 = vpack.c.bf16 %v598_v29, %v596_v28  ;;  %v5748_v34 = vpack.c.bf16 %v597_v33, %v595_v32  ;;  %v293_v35 = vld [vmem:[#allocation10] sm:$0xff]  ;;  %v294_v36 = vld [vmem:[#allocation10 + $0x8] sm:$0xff]  ;;  %v490_v47 = vld [vmem:[%s6696_s10 + $0x10] sm:$0xff]  ;;  %vm1192_vm1 = vcmask 257155  }
  0xdb   :  { %4571 = vmatprep.mubr.msk.f32.mxu0 %vm396_vm2, %v384_v7  ;;  %4746 = vmatpush3.bf16.msra.mxu0 %v4743_v6  ;;  %v4739_v37 = vpack.c.bf16 %v294_v36, %v293_v35  ;;  %v488_v38 = vld [vmem:[%s6696_s10] sm:$0xff]  ;;  %v489_v39 = vld [vmem:[%s6696_s10 + $0x8] sm:$0xff]  ;;  %v491_v48 = vld [vmem:[%s6696_s10 + $0x18] sm:$0xff] }
  0xdc   :  { %4569 = vmatprep.subr.msk.mxu0 %vm403_vm3, %v388_v8  ;;  %v4747_v40 = vpack.c.bf16 %v489_v39, %v488_v38  ;;  %v4396_v50 = vld [vmem:[#allocation15] ss:$0 sm:$0xff]  ;;  %v4751_v52 = vpack.c.bf16 %v491_v48, %v490_v47  ;;  %v599_v2 = vld [vmem:[%s6699_s13] sm:$0x3]  ;;  %s5462_s13 = smov 64   ;;  %v5464_v39 = vmov 0  }
  0xdd   :  { %4740 = vmatprep.subr.bf16.mxu1 %v4739_v37  ;;  %v5794_v3 = vrot.slane %v599_v2, %v5782_v0  ;;  %v5797_v4 = vrot.slane %v599_v2, %v5785_v1  ;;  %v4393_v10 = vld [vmem:[#allocation12] ss:$0 sm:$0xff]  ;;  %v4400_v21 = vld [vmem:[#allocation16] ss:$0 sm:$0xff]  ;;  %4994 = vset.pattern.permute.xlu0 %v5464_v39 }
  0xde   :  { %4742 = vmatpush3.bf16.msra.mxu1 %v4739_v37  ;;  %4995 = vset.pattern.permute.xlu1 %v5464_v39  ;;  %v582_v47 = vld [vmem:[%s6741_s5 + $0x8] sm:$0xff] }
  0xdf   :  { %4570 = vmatpush3.msk.msra.mxu0 %vm403_vm3, %v388_v8  ;;  %4748 = vmatprep.subr.bf16.mxu1 %v4747_v40  ;;  %vm1390_vm3 = vcmask 255105  }
  0xe0   :  { %4572 = vmatmul.mubr.msk.f32.vlgmr.msra.gmra.mrb[2].mxu0 %vm396_vm2, %v385_v16  ;;  %4756 = vmatprep.subr.bf16.mxu0 %v5725_v15  ;;  %vm1386_vm2 = vcmask 254080  }
  0xe1   :  { %4758 = vmatpush1.bf16.msra.mxu0 %v5727_v17  ;;  %679 = vmatprep.mubr.f32.mxu0 %v5461_v24 }
  0xe2   :  { %4760 = vmatprep.subr.bf16.mxu0 %v5729_v18 }
  0xe5   :  { %4762 = vmatpush1.bf16.msra.mxu0 %v5735_v23 }
  0xe6   :  { %4764 = vmatprep.subr.bf16.mxu0 %v5739_v25 }
  0xe9   :  { %4766 = vmatpush1.bf16.msra.mxu0 %v5742_v30 }
  0xea   :  { %4768 = vmatprep.subr.bf16.mxu0 %v5745_v31 }
  0xed   :  { %4770 = vmatpush1.bf16.msra.mxu0 %v5748_v34 }
  0xee   :  { %4788 = vmatprep.subr.bf16.mxu0 %v5725_v15 }
  0xf0   :  { %680 = vmatmul.mubr.f32.vlgmr.msra.gmra.mrb[4].mxu0 %v5461_v24 }
  0xf1   :  { %4790 = vmatpush1.bf16.msra.mxu0 %v5727_v17  ;;  %1076 = vmatprep.mubr.f32.mxu0 %v5461_v24 }
  0xf2   :  { %4792 = vmatprep.subr.bf16.mxu0 %v5729_v18 }
  0xf5   :  { %4794 = vmatpush1.bf16.msra.mxu0 %v5735_v23 }
  0xf6   :  { %4796 = vmatprep.subr.bf16.mxu0 %v5739_v25 }
  0xf9   :  { %4798 = vmatpush1.bf16.msra.mxu0 %v5742_v30 }
  0xfa   :  { %4800 = vmatprep.subr.bf16.mxu0 %v5745_v31 }
  0xfd   :  { %4802 = vmatpush1.bf16.msra.mxu0 %v5748_v34 }
  0xfe   :  { %4820 = vmatprep.subr.bf16.mxu0 %v5725_v15 }
 0x1ad   :  { %v4557_v42 = vpop.f32.mrb[0].mxu0 }
 0x1ae   :  { %v284_v43 = vadd.f32 %v4557_v42, %v4389_v41  ;;  %v278_v44 = vpop.f32.mrb[1].mxu0 }
 0x1af   :  { %v279_v45 = vadd.f32 %v4389_v41, %v278_v44 }
 0x1b0   :  { %v290_v46 = vmul.f32 0.1, %v284_v43  ;;  %vm288_vm4 = vcmp.ge.f32.partialorder %v284_v43, 0.0 }
 0x1b1   :  { %vm287_vm5 = vcmp.ge.f32.partialorder %v279_v45, 0.0  ;;  %v289_v49 = vmul.f32 0.1, %v279_v45 }
 0x1b2   :  { %v292_v54 = vsel %vm288_vm4, %v284_v43, %v290_v46  ;;  %vm781_vm4 = vcmask 122880  }
 0x1b3   :  { %v291_v51 = vsel %vm287_vm5, %v279_v45, %v289_v49  ;;  %v4573_v53 = vpop.f32.mrb[2].mxu0  ;;  %vm789_vm5 = vcmask 123905  }
 0x1b4   :  { %4562 = vmatprep.mubr.msk.f32.mxu1 %vm302_vm6, %v291_v51  ;;  %v479_v55 = vadd.f32 %v4573_v53, %v4396_v50  ;;  %v473_v56 = vpop.f32.mrb[3].mxu0 }
 0x1b5   :  { %4563 = vmatmul.mubr.msk.f32.vlgmr.msra.gmra.mrb[0].mxu1 %vm302_vm6, %v292_v54  ;;  %v474_v57 = vadd.f32 %v4396_v50, %v473_v56  ;;  %vm6720_vm6 = vmmov 0  }
 0x1b6   :  { %4750 = vmatpush3.bf16.msra.mxu1 %v4747_v40  ;;  %v485_v59 = vmul.f32 0.1, %v479_v55  ;;  %vm483_vm9 = vcmp.ge.f32.partialorder %v479_v55, 0.0 }
 0x1b7   :  { %4752 = vmatprep.subr.bf16.mxu1 %v4751_v52  ;;  %vm482_vm7 = vcmp.ge.f32.partialorder %v474_v57, 0.0  ;;  %v484_v60 = vmul.f32 0.1, %v474_v57 }
 0x1b8   :  { %v487_v63 = vsel %vm483_vm9, %v479_v55, %v485_v59  ;;  %vm990_vm9 = vcmask 125955  }
 0x1b9   :  { %v486_v61 = vsel %vm482_vm7, %v474_v57, %v484_v60  ;;  %vm982_vm7 = vcmask 124930  }
 0x1ba   :  { %4754 = vmatpush3.bf16.msra.mxu1 %v4751_v52  ;;  %4582 = vmatprep.mubr.msk.f32.mxu1 %vm6723_vm8, %v486_v61 }
 0x1bb   :  { %4772 = vmatprep.subr.bf16.mxu1 %v5725_v15 }
 0x1bd   :  { %4583 = vmatmul.mubr.msk.f32.vlgmr.msra.gmra.mrb[2].mxu1 %vm6723_vm8, %v487_v63 }
 0x1be   :  { %4774 = vmatpush1.bf16.msra.mxu1 %v5727_v17  ;;  %875 = vmatprep.mubr.f32.mxu1 %v5461_v24 }
 0x1bf   :  { %4776 = vmatprep.subr.bf16.mxu1 %v5729_v18 }
 0x1c2   :  { %4778 = vmatpush1.bf16.msra.mxu1 %v5735_v23 }
 0x1c3   :  { %4780 = vmatprep.subr.bf16.mxu1 %v5739_v25  ;;  %v681_v5 = vpop.f32.mrb[4].mxu0 }
 0x1c4   :  { %v682_v6 = vadd.f32 %v681_v5, %v5794_v3  ;;  %v683_v7 = vpop.f32.mrb[5].mxu0 }
 0x1c5   :  { %v684_v8 = vadd.f32 %v683_v7, %v5797_v4 }
 0x1c6   :  { %4782 = vmatpush1.bf16.msra.mxu1 %v5742_v30  ;;  %694 = vrot.lane.b32.xlu1 %v682_v6, %s5462_s13 }
 0x1c7   :  { %4784 = vmatprep.subr.bf16.mxu1 %v5745_v31  ;;  %v738_v9 = vrot.slane %v684_v8, 2 }
 0x1c9   :  { %739 = vrot.lane.b32.xlu0 %v738_v9, %s5463_s11 }
 0x1ca   :  { %4786 = vmatpush1.bf16.msra.mxu1 %v5748_v34 }
 0x1cb   :  { %4804 = vmatprep.subr.bf16.mxu1 %v5725_v15 }
 0x1cd   :  { %712 = vrot.lane.b32.xlu0 %v682_v6, %s5463_s11 }
 0x238   :  { %v695_v45 = vpop.permute.xlu1 %694 }
 0x23b   :  { %v740_v19 = vpop.permute.xlu0 %739 }
 0x23f   :  { %v713_v29 = vpop.permute.xlu0 %712 }
 0x288   :  { %v4564_v11 = vpop.f32.mrb[0].mxu1 }
 0x289   :  { %v5810_v12 = vadd.f32 %v4564_v11, %v4393_v10  ;;  %v375_v13 = vpop.f32.mrb[1].mxu1 }
 0x28a   :  { %v5812_v14 = vadd.f32 %v4393_v10, %v375_v13 }
 0x28c   :  { %v686_v16 = vadd.f32 %v682_v6, %v5812_v14 }
 0x28e   :  { %v4403_v20 = vmul.f32 -1.442695, %v686_v16 }
 0x290   :  { %4996 = vpow2.f32 %v4403_v20  ;;  %v4584_v22 = vpop.f32.mrb[2].mxu1 }
 0x291   :  { %v5815_v26 = vadd.f32 %v4584_v22, %v4400_v21  ;;  %v572_v27 = vpop.f32.mrb[3].mxu1 }
 0x292   :  { %v5817_v28 = vadd.f32 %v4400_v21, %v572_v27 }
 0x293   :  { %v742_v32 = vadd.f32 %v740_v19, %v5815_v26 }
 0x294   :  { %v715_v33 = vadd.f32 %v713_v29, %v5817_v28 }
 0x295   :  { %v4405_v35 = vmul.f32 -1.442695, %v742_v32 }
 0x296   :  { %v4404_v36 = vmul.f32 -1.442695, %v715_v33 }
 0x297   :  { %4998 = vpow2.f32 %v4405_v35 }
 0x298   :  { %5000 = vpow2.f32 %v4404_v36 }
 0x29a   :  { %v4997_v37 = vpop.eup %4996 }
 0x29b   :  { %v690_v38 = vadd.f32 1.0, %v4997_v37 }
 0x29d   :  { %5002 = vrcp.f32 %v690_v38 }
 0x2a1   :  { %v4999_v40 = vpop.eup %4998 }
 0x2a2   :  { %v5001_v41 = vpop.eup %5000  ;;  %v746_v42 = vadd.f32 1.0, %v4999_v40 }
 0x2a3   :  { %v719_v43 = vadd.f32 1.0, %v5001_v41 }
 0x2a4   :  { %5004 = vrcp.f32 %v746_v42 }
 0x2a5   :  { %5006 = vrcp.f32 %v719_v43 }
 0x2a7   :  { %v5003_v44 = vpop.eup %5002 }
 0x2a8   :  { %v697_v46 = vmul.f32 %v5003_v44, %v695_v45  ;;  %v710_v16 = vmul.f32 0.0, %v5003_v44 }
 0x2aa   :  { %699 = vrot.lane.b32.xlu0 %v697_v46, %s5462_s13 }
 0x2ae   :  { %v5005_v48 = vpop.eup %5004  ;;  %767 = vperm.xlu0 %4994, %v582_v47  }
 0x2af   :  { %v750_v49 = vmul.f32 %v5005_v48, %v738_v9  ;;  %v5007_v50 = vpop.eup %5006  ;;  %v757_v2 = vsub.f32 1.0, %v5005_v48  ;;  %v763_v6 = vmul.f32 0.0, %v5005_v48  ;;  %v704_v9 = vsub.f32 1.0, %v5003_v44 }
 0x2b0   :  { %v722_v51 = vmul.f32 %v5007_v50, %v684_v8  ;;  %v729_v10 = vsub.f32 1.0, %v5007_v50  ;;  %v735_v21 = vmul.f32 0.0, %v5007_v50 }
 0x2b1   :  { %752 = vrot.lane.b32.xlu1 %v750_v49, %s5463_s11 }
 0x2b5   :  { %724 = vrot.lane.b32.xlu1 %v722_v51, %s5463_s11 }
 0x31c   :  { %v700_v52 = vpop.permute.xlu0 %699 }
 0x31d   :  { %v702_v55 = vadd.f32 %v700_v52, %v5812_v14 }
 0x323   :  { %v753_v53 = vpop.permute.xlu1 %752 }
 0x324   :  { %v755_v54 = vadd.f32 %v753_v53, %v5815_v26 }
 0x326   :  { %5008 = vtanh.f32 %v755_v54 }
 0x327   :  { %v725_v56 = vpop.permute.xlu1 %724  ;;  %5010 = vtanh.f32 %v702_v55 }
 0x328   :  { %v727_v57 = vadd.f32 %v725_v56, %v5817_v28 }
 0x32a   :  { %5012 = vtanh.f32 %v727_v57 }
 0x32d   :  { %v5833_v63 = vpop.permute.xlu0 %767 }
 0x330   :  { %v5009_v59 = vpop.eup %5008 }
 0x331   :  { %759 = vrot.lane.b32.xlu1 %v5009_v59, %s5465_s4  ;;  %v5011_v60 = vpop.eup %5010 }
 0x334   :  { %v5013_v61 = vpop.eup %5012 }
 0x335   :  { %731 = vrot.lane.b32.xlu0 %v5013_v61, %s5465_s4  ;;  %706 = vrot.lane.b32.xlu1 %v5011_v60, %s5466_s26 }
 0x3a3   :  { %v760_v5 = vpop.permute.xlu1 %759 }
 0x3a4   :  { %v762_v7 = vmul.f32 %v760_v5, %v757_v2 }
 0x3a6   :  { %v764_v8 = vadd.f32 %v763_v6, %v762_v7 }
 0x3a7   :  { %v707_v11 = vpop.permute.xlu1 %706  ;;  %v732_v13 = vpop.permute.xlu0 %731 }
 0x3a8   :  { %v709_v19 = vmul.f32 %v707_v11, %v704_v9  ;;  %v734_v20 = vmul.f32 %v732_v13, %v729_v10  ;;  %v5838_v29 = vmul.f32 %v5833_v63, %v764_v8 }
 0x3aa   :  { %v711_v22 = vadd.f32 %v710_v16, %v709_v19  ;;  %v5835_v27 = vadd.f32 %v735_v21, %v734_v20  ;;  %v801_v32 = vrot.slane %v5838_v29, 6 }
 0x3ac   :  { %794 = vrot.lane.b32.xlu1 %v711_v22, %s5466_s26  ;;  %798 = vrot.lane.b32.xlu0 %v5835_v27, %s5460_s29 }
 0x3b0   :  { %802 = vrot.lane.b32.xlu1 %v801_v32, %s5465_s4 }
 0x41e   :  { %v795_v33 = vpop.permute.xlu1 %794  ;;  %v799_v35 = vpop.permute.xlu0 %798 }
 0x41f   :  { %v805_v36 = vsel %vm6723_vm8, %v795_v33, %v799_v35 }
 0x422   :  { %v803_v37 = vpop.permute.xlu1 %802 }
 0x423   :  { %v807_v38 = vsel %vm6722_vm10, %v805_v36, %v803_v37 }
 0x424   :  { %4406 = vmatmul.mubr.msk.f32.vlgmr.msra.gmra.mrb[4].mxu1 %vm611_vm11, %v807_v38  ;;  %v970_v10 = vrot.slane %v807_v38, 4  ;;  %v908_v11 = vrot.slane %v807_v38, 6 }
 0x425   :  { %4806 = vmatpush1.bf16.msra.mxu1 %v5727_v17  ;;  %1276 = vmatprep.mubr.f32.mxu1 %v5461_v24 }
 0x426   :  { %4808 = vmatprep.subr.bf16.mxu1 %v5729_v18 }
 0x429   :  { %4810 = vmatpush1.bf16.msra.mxu1 %v5735_v23 }
 0x42a   :  { %4812 = vmatprep.subr.bf16.mxu1 %v5739_v25 }
 0x42d   :  { %4814 = vmatpush1.bf16.msra.mxu1 %v5742_v30 }
 0x42e   :  { %4816 = vmatprep.subr.bf16.mxu1 %v5745_v31 }
 0x431   :  { %4818 = vmatpush1.bf16.msra.mxu1 %v5748_v34 }
 0x432   :  { %4836 = vmatprep.subr.bf16.mxu1 %v5725_v15 }
 0x4f7   :  { %v877_v39 = vpop.f32.mrb[4].mxu1 }
 0x4f8   :  { %v878_v40 = vadd.f32 %v877_v39, %v5794_v3  ;;  %v879_v41 = vpop.f32.mrb[5].mxu1 }
 0x4f9   :  { %v880_v42 = vadd.f32 %v879_v41, %v5797_v4 }
 0x4fa   :  { %v883_v43 = vrot.slane %v878_v40, 6 }
 0x4fb   :  { %v945_v44 = vrot.slane %v880_v42, 4  ;;  %v925_v8 = vrot.slane %v880_v42, 6 }
 0x4fc   :  { %914 = vrot.lane.b32.xlu1 %v883_v43, %s5463_s11  ;;  %v885_v45 = vadd.f32 %v883_v43, %v5812_v14 }
 0x4fd   :  { %946 = vrot.lane.b32.xlu0 %v945_v44, %s5463_s11 }
 0x4fe   :  { %v4407_v46 = vmul.f32 -1.442695, %v885_v45 }
 0x500   :  { %5014 = vpow2.f32 %v4407_v46 }
 0x501   :  { %892 = vrot.lane.b32.xlu0 %v883_v43, %s5462_s13 }
 0x50a   :  { %v5015_v47 = vpop.eup %5014 }
 0x50b   :  { %v889_v48 = vadd.f32 1.0, %v5015_v47 }
 0x50d   :  { %5016 = vrcp.f32 %v889_v48 }
 0x517   :  { %v5017_v55 = vpop.eup %5016 }
 0x518   :  { %v902_v38 = vsub.f32 1.0, %v5017_v55 }
 0x56e   :  { %v915_v49 = vpop.permute.xlu1 %914 }
 0x56f   :  { %v917_v50 = vadd.f32 %v915_v49, %v5817_v28  ;;  %v947_v51 = vpop.permute.xlu0 %946 }
 0x570   :  { %v949_v52 = vadd.f32 %v947_v51, %v5815_v26 }
 0x571   :  { %v4408_v53 = vmul.f32 -1.442695, %v917_v50 }
 0x572   :  { %v4409_v54 = vmul.f32 -1.442695, %v949_v52 }
 0x573   :  { %5018 = vpow2.f32 %v4408_v53  ;;  %v893_v56 = vpop.permute.xlu0 %892 }
 0x574   :  { %5020 = vpow2.f32 %v4409_v54  ;;  %v895_v57 = vmul.f32 %v5017_v55, %v893_v56 }
 0x576   :  { %897 = vrot.lane.b32.xlu0 %v895_v57, %s5462_s13 }
 0x57d   :  { %v5019_v59 = vpop.eup %5018 }
 0x57e   :  { %v5021_v60 = vpop.eup %5020  ;;  %v921_v61 = vadd.f32 1.0, %v5019_v59 }
 0x57f   :  { %v953_v2 = vadd.f32 1.0, %v5021_v60 }
 0x581   :  { %5022 = vrcp.f32 %v953_v2 }
 0x582   :  { %5024 = vrcp.f32 %v921_v61 }
 0x58b   :  { %v5023_v5 = vpop.eup %5022 }
 0x58c   :  { %v957_v6 = vmul.f32 %v5023_v5, %v945_v44  ;;  %v5025_v7 = vpop.eup %5024  ;;  %v964_v43 = vsub.f32 1.0, %v5023_v5 }
 0x58d   :  { %v927_v9 = vmul.f32 %v5025_v7, %v925_v8  ;;  %v934_v49 = vsub.f32 1.0, %v5025_v7 }
 0x58e   :  { %959 = vrot.lane.b32.xlu1 %v957_v6, %s5463_s11 }
 0x592   :  { %929 = vrot.lane.b32.xlu1 %v927_v9, %s5463_s11 }
 0x596   :  { %971 = vrot.lane.b32.xlu1 %v970_v10, %s5460_s29 }
 0x59a   :  { %909 = vrot.lane.b32.xlu1 %v908_v11, %s5463_s11 }
 0x59e   :  { %940 = vrot.lane.b32.xlu1 %v908_v11, %s5465_s4 }
 0x5e8   :  { %v898_v13 = vpop.permute.xlu0 %897 }
 0x5e9   :  { %v900_v16 = vadd.f32 %v898_v13, %v5812_v14 }
 0x5eb   :  { %5026 = vtanh.f32 %v900_v16 }
 0x5f5   :  { %v5027_v19 = vpop.eup %5026 }
 0x5f6   :  { %904 = vrot.lane.b32.xlu0 %v5027_v19, %s5466_s26 }
 0x600   :  { %v960_v20 = vpop.permute.xlu1 %959 }
 0x601   :  { %v962_v21 = vadd.f32 %v960_v20, %v5815_v26 }
 0x603   :  { %5028 = vtanh.f32 %v962_v21 }
 0x604   :  { %v930_v22 = vpop.permute.xlu1 %929 }
 0x605   :  { %v932_v32 = vadd.f32 %v930_v22, %v5817_v28 }
 0x607   :  { %5030 = vtanh.f32 %v932_v32 }
 0x608   :  { %v972_v36 = vpop.permute.xlu1 %971 }
 0x609   :  { %v974_v45 = vmul.f32 %v5023_v5, %v972_v36 }
 0x60c   :  { %v910_v37 = vpop.permute.xlu1 %909 }
 0x60d   :  { %v5029_v33 = vpop.eup %5028  ;;  %v912_v40 = vmul.f32 %v5017_v55, %v910_v37 }
 0x60e   :  { %966 = vrot.lane.b32.xlu0 %v5029_v33, %s5465_s4 }
 0x610   :  { %v941_v47 = vpop.permute.xlu1 %940 }
 0x611   :  { %v5031_v35 = vpop.eup %5030  ;;  %v943_v51 = vmul.f32 %v5025_v7, %v941_v47 }
 0x612   :  { %936 = vrot.lane.b32.xlu0 %v5031_v35, %s5465_s4 }
 0x668   :  { %v905_v39 = vpop.permute.xlu0 %904 }
 0x669   :  { %v907_v41 = vmul.f32 %v905_v39, %v902_v38 }
 0x66b   :  { %v913_v42 = vadd.f32 %v912_v40, %v907_v41 }
 0x66d   :  { %995 = vrot.lane.b32.xlu0 %v913_v42, %s5466_s26 }
 0x680   :  { %v967_v44 = vpop.permute.xlu0 %966 }
 0x681   :  { %v969_v46 = vmul.f32 %v967_v44, %v964_v43 }
 0x683   :  { %v975_v48 = vadd.f32 %v974_v45, %v969_v46 }
 0x684   :  { %v937_v50 = vpop.permute.xlu0 %936 }
 0x685   :  { %v5879_v52 = vmul.f32 %v975_v48, %v5833_v63  ;;  %v939_v53 = vmul.f32 %v937_v50, %v934_v49 }
 0x687   :  { %v1002_v54 = vrot.slane %v5879_v52, 2  ;;  %v5882_v55 = vadd.f32 %v943_v51, %v939_v53 }
 0x689   :  { %1003 = vrot.lane.b32.xlu0 %v1002_v54, %s5465_s4  ;;  %999 = vrot.lane.b32.xlu1 %v5882_v55, %s5460_s29 }
 0x6df   :  { %v996_v56 = vpop.permute.xlu0 %995 }
 0x6fb   :  { %v1000_v57 = vpop.permute.xlu1 %999  ;;  %v1004_v59 = vpop.permute.xlu0 %1003 }
 0x6fc   :  { %v1006_v60 = vsel %vm6723_vm8, %v996_v56, %v1000_v57 }
 0x6fd   :  { %v1007_v61 = vsel %vm6722_vm10, %v1006_v60, %v1004_v59 }
 0x6fe   :  { %v1009_v2 = vrot.slane %v1007_v61, 2  ;;  %v1109_v48 = vrot.slane %v1007_v61, 6 }
 0x700   :  { %4410 = vmatmul.mubr.msk.f32.vlgmr.msra.gmra.mrb[6].mxu0 %vm611_vm11, %v1009_v2 }
 0x701   :  { %4822 = vmatpush1.bf16.msra.mxu0 %v5727_v17  ;;  %1474 = vmatprep.mubr.f32.mxu0 %v5461_v24 }
 0x702   :  { %4824 = vmatprep.subr.bf16.mxu0 %v5729_v18 }
 0x705   :  { %4826 = vmatpush1.bf16.msra.mxu0 %v5735_v23 }
 0x706   :  { %4828 = vmatprep.subr.bf16.mxu0 %v5739_v25 }
 0x709   :  { %4830 = vmatpush1.bf16.msra.mxu0 %v5742_v30 }
 0x70a   :  { %4832 = vmatprep.subr.bf16.mxu0 %v5745_v31 }
 0x70d   :  { %4834 = vmatpush1.bf16.msra.mxu0 %v5748_v34 }
 0x70e   :  { %4852 = vmatprep.subr.bf16.mxu0 %v5725_v15 }
 0x7d3   :  { %v1078_v5 = vpop.f32.mrb[6].mxu0 }
 0x7d4   :  { %v1079_v6 = vadd.f32 %v1078_v5, %v5794_v3  ;;  %v1080_v7 = vpop.f32.mrb[7].mxu0 }
 0x7d5   :  { %v1081_v8 = vadd.f32 %v1080_v7, %v5797_v4 }
 0x7d6   :  { %v1084_v9 = vrot.slane %v1079_v6, 4 }
 0x7d7   :  { %v1146_v10 = vrot.slane %v1081_v8, 6  ;;  %v1126_v46 = vrot.slane %v1081_v8, 4 }
 0x7d8   :  { %1115 = vrot.lane.b32.xlu0 %v1084_v9, %s5463_s11  ;;  %v1086_v11 = vadd.f32 %v1084_v9, %v5812_v14 }
 0x7d9   :  { %1147 = vrot.lane.b32.xlu1 %v1146_v10, %s5463_s11 }
 0x7da   :  { %v4411_v13 = vmul.f32 -1.442695, %v1086_v11 }
 0x7dc   :  { %5032 = vpow2.f32 %v4411_v13 }
 0x7dd   :  { %1093 = vrot.lane.b32.xlu1 %v1084_v9, %s5462_s13 }
 0x7e6   :  { %v5033_v16 = vpop.eup %5032 }
 0x7e7   :  { %v1090_v19 = vadd.f32 1.0, %v5033_v16 }
 0x7e9   :  { %5034 = vrcp.f32 %v1090_v19 }
 0x7f3   :  { %v5035_v36 = vpop.eup %5034 }
 0x7f4   :  { %v1103_v5 = vsub.f32 1.0, %v5035_v36 }
 0x84a   :  { %v1116_v20 = vpop.permute.xlu0 %1115 }
 0x84b   :  { %v1118_v21 = vadd.f32 %v1116_v20, %v5817_v28  ;;  %v1148_v22 = vpop.permute.xlu1 %1147 }
 0x84c   :  { %v1150_v32 = vadd.f32 %v1148_v22, %v5815_v26 }
 0x84d   :  { %v4412_v33 = vmul.f32 -1.442695, %v1118_v21 }
 0x84e   :  { %v4413_v35 = vmul.f32 -1.442695, %v1150_v32 }
 0x84f   :  { %5036 = vpow2.f32 %v4412_v33  ;;  %v1094_v37 = vpop.permute.xlu1 %1093 }
 0x850   :  { %5038 = vpow2.f32 %v4413_v35  ;;  %v1096_v38 = vmul.f32 %v5035_v36, %v1094_v37 }
 0x852   :  { %1098 = vrot.lane.b32.xlu1 %v1096_v38, %s5462_s13 }
 0x859   :  { %v5037_v39 = vpop.eup %5036 }
 0x85a   :  { %v5039_v40 = vpop.eup %5038  ;;  %v1122_v41 = vadd.f32 1.0, %v5037_v39 }
 0x85b   :  { %v1154_v42 = vadd.f32 1.0, %v5039_v40 }
 0x85d   :  { %5040 = vrcp.f32 %v1154_v42 }
 0x85e   :  { %5042 = vrcp.f32 %v1122_v41 }
 0x867   :  { %v5041_v43 = vpop.eup %5040 }
 0x868   :  { %v1158_v44 = vmul.f32 %v5041_v43, %v1146_v10  ;;  %v5043_v45 = vpop.eup %5042  ;;  %v1165_v10 = vsub.f32 1.0, %v5041_v43 }
 0x869   :  { %v1128_v47 = vmul.f32 %v5043_v45, %v1126_v46  ;;  %v1135_v21 = vsub.f32 1.0, %v5043_v45 }
 0x86a   :  { %1160 = vrot.lane.b32.xlu0 %v1158_v44, %s5463_s11 }
 0x86e   :  { %1130 = vrot.lane.b32.xlu0 %v1128_v47, %s5463_s11 }
 0x872   :  { %1171 = vrot.lane.b32.xlu0 %v1007_v61, %s5460_s29 }
 0x876   :  { %1110 = vrot.lane.b32.xlu0 %v1109_v48, %s5463_s11 }
 0x87a   :  { %1141 = vrot.lane.b32.xlu0 %v1109_v48, %s5465_s4 }
 0x8c4   :  { %v1099_v49 = vpop.permute.xlu1 %1098 }
 0x8c5   :  { %v1101_v50 = vadd.f32 %v1099_v49, %v5812_v14 }
 0x8c7   :  { %5044 = vtanh.f32 %v1101_v50 }
 0x8d1   :  { %v5045_v51 = vpop.eup %5044 }
 0x8d2   :  { %1105 = vrot.lane.b32.xlu1 %v5045_v51, %s5466_s26 }
 0x8dc   :  { %v1161_v53 = vpop.permute.xlu0 %1160 }
 0x8dd   :  { %v1163_v54 = vadd.f32 %v1161_v53, %v5815_v26 }
 0x8df   :  { %5046 = vtanh.f32 %v1163_v54 }
 0x8e0   :  { %v1131_v56 = vpop.permute.xlu0 %1130 }
 0x8e1   :  { %v1133_v57 = vadd.f32 %v1131_v56, %v5817_v28 }
 0x8e3   :  { %5048 = vtanh.f32 %v1133_v57 }
 0x8e4   :  { %v1172_v61 = vpop.permute.xlu0 %1171 }
 0x8e5   :  { %v1174_v13 = vmul.f32 %v5041_v43, %v1172_v61 }
 0x8e8   :  { %v1111_v2 = vpop.permute.xlu0 %1110 }
 0x8e9   :  { %v5047_v59 = vpop.eup %5046  ;;  %v1113_v7 = vmul.f32 %v5035_v36, %v1111_v2 }
 0x8ea   :  { %1167 = vrot.lane.b32.xlu1 %v5047_v59, %s5465_s4 }
 0x8ec   :  { %v1142_v19 = vpop.permute.xlu0 %1141 }
 0x8ed   :  { %v5049_v60 = vpop.eup %5048  ;;  %v1144_v32 = vmul.f32 %v5043_v45, %v1142_v19 }
 0x8ee   :  { %1137 = vrot.lane.b32.xlu1 %v5049_v60, %s5465_s4 }
 0x944   :  { %v1106_v6 = vpop.permute.xlu1 %1105 }
 0x945   :  { %v1108_v8 = vmul.f32 %v1106_v6, %v1103_v5 }
 0x947   :  { %v1114_v9 = vadd.f32 %v1113_v7, %v1108_v8 }
 0x949   :  { %1195 = vrot.lane.b32.xlu1 %v1114_v9, %s5466_s26 }
 0x95c   :  { %v1168_v11 = vpop.permute.xlu1 %1167 }
 0x95d   :  { %v1170_v16 = vmul.f32 %v1168_v11, %v1165_v10 }
 0x95f   :  { %v1175_v20 = vadd.f32 %v1174_v13, %v1170_v16 }
 0x960   :  { %v1138_v22 = vpop.permute.xlu1 %1137 }
 0x961   :  { %v5921_v33 = vmul.f32 %v1175_v20, %v5833_v63  ;;  %v1140_v35 = vmul.f32 %v1138_v22, %v1135_v21 }
 0x963   :  { %v1202_v37 = vrot.slane %v5921_v33, 6  ;;  %v5924_v36 = vadd.f32 %v1144_v32, %v1140_v35 }
 0x965   :  { %1203 = vrot.lane.b32.xlu1 %v1202_v37, %s5465_s4  ;;  %1199 = vrot.lane.b32.xlu0 %v5924_v36, %s5460_s29 }
 0x9bb   :  { %v1196_v38 = vpop.permute.xlu1 %1195 }
 0x9d7   :  { %v1200_v39 = vpop.permute.xlu0 %1199  ;;  %v1204_v40 = vpop.permute.xlu1 %1203 }
 0x9d8   :  { %v1206_v41 = vsel %vm6723_vm8, %v1196_v38, %v1200_v39 }
 0x9d9   :  { %v1207_v42 = vsel %vm6722_vm10, %v1206_v41, %v1204_v40 }
 0x9da   :  { %v1209_v43 = vrot.slane %v1207_v42, 4  ;;  %v1309_v20 = vrot.slane %v1207_v42, 6 }
 0x9dc   :  { %4414 = vmatmul.mubr.msk.f32.vlgmr.msra.gmra.mrb[6].mxu1 %vm611_vm11, %v1209_v43 }
 0x9dd   :  { %4838 = vmatpush1.bf16.msra.mxu1 %v5727_v17  ;;  %1664 = vmatprep.mubr.f32.mxu1 %v5461_v24 }
 0x9de   :  { %4840 = vmatprep.subr.bf16.mxu1 %v5729_v18 }
 0x9e1   :  { %4842 = vmatpush1.bf16.msra.mxu1 %v5735_v23 }
 0x9e2   :  { %4844 = vmatprep.subr.bf16.mxu1 %v5739_v25 }
 0x9e5   :  { %4846 = vmatpush1.bf16.msra.mxu1 %v5742_v30 }
 0x9e6   :  { %4848 = vmatprep.subr.bf16.mxu1 %v5745_v31 }
 0x9e9   :  { %4850 = vmatpush1.bf16.msra.mxu1 %v5748_v34 }
 0x9ea   :  { %4868 = vmatprep.subr.bf16.mxu1 %v5725_v15 }
 0xaaf   :  { %v1278_v44 = vpop.f32.mrb[6].mxu1 }
 0xab0   :  { %v1279_v45 = vadd.f32 %v1278_v44, %v5794_v3  ;;  %v1280_v46 = vpop.f32.mrb[7].mxu1 }
 0xab1   :  { %v1281_v47 = vadd.f32 %v1280_v46, %v5797_v4 }
 0xab2   :  { %v1284_v48 = vrot.slane %v1279_v45, 2 }
 0xab3   :  { %1346 = vrot.lane.b32.xlu0 %v1281_v47, %s5463_s11  ;;  %v1326_v16 = vrot.slane %v1281_v47, 2 }
 0xab4   :  { %1315 = vrot.lane.b32.xlu1 %v1284_v48, %s5463_s11  ;;  %v1286_v49 = vadd.f32 %v1284_v48, %v5812_v14 }
 0xab6   :  { %v4415_v50 = vmul.f32 -1.442695, %v1286_v49 }
 0xab7   :  { %1293 = vrot.lane.b32.xlu0 %v1284_v48, %s5462_s13 }
 0xab8   :  { %5050 = vpow2.f32 %v4415_v50 }
 0xac2   :  { %v5051_v51 = vpop.eup %5050 }
 0xac3   :  { %v1290_v53 = vadd.f32 1.0, %v5051_v51 }
 0xac5   :  { %5052 = vrcp.f32 %v1290_v53 }
 0xacf   :  { %v5053_v60 = vpop.eup %5052 }
 0xb25   :  { %v1347_v15 = vpop.permute.xlu0 %1346 }
 0xb26   :  { %v1349_v54 = vadd.f32 %v1347_v15, %v5815_v26  ;;  %v1316_v56 = vpop.permute.xlu1 %1315 }
 0xb27   :  { %v1318_v57 = vadd.f32 %v1316_v56, %v5817_v28 }
 0xb28   :  { %v4417_v59 = vmul.f32 -1.442695, %v1349_v54 }
 0xb29   :  { %v4416_v61 = vmul.f32 -1.442695, %v1318_v57  ;;  %v1294_v2 = vpop.permute.xlu0 %1293 }
 0xb2a   :  { %5054 = vpow2.f32 %v4417_v59  ;;  %v1296_v5 = vmul.f32 %v5053_v60, %v1294_v2 }
 0xb2b   :  { %5056 = vpow2.f32 %v4416_v61 }
 0xb2c   :  { %1298 = vrot.lane.b32.xlu0 %v1296_v5, %s5462_s13 }
 0xb34   :  { %v5055_v6 = vpop.eup %5054 }
 0xb35   :  { %v5057_v7 = vpop.eup %5056  ;;  %v1353_v8 = vadd.f32 1.0, %v5055_v6 }
 0xb36   :  { %v1322_v9 = vadd.f32 1.0, %v5057_v7 }
 0xb37   :  { %5058 = vrcp.f32 %v1353_v8 }
 0xb38   :  { %5060 = vrcp.f32 %v1322_v9 }
 0xb41   :  { %v5059_v10 = vpop.eup %5058 }
 0xb42   :  { %v1356_v11 = vmul.f32 %v5059_v10, %v1281_v47  ;;  %v5061_v13 = vpop.eup %5060  ;;  %v1363_v48 = vsub.f32 1.0, %v5059_v10 }
 0xb43   :  { %v1328_v19 = vmul.f32 %v5061_v13, %v1326_v16  ;;  %v1335_v54 = vsub.f32 1.0, %v5061_v13 }
 0xb44   :  { %1358 = vrot.lane.b32.xlu1 %v1356_v11, %s5463_s11 }
 0xb48   :  { %1330 = vrot.lane.b32.xlu1 %v1328_v19, %s5463_s11 }
 0xb4c   :  { %1369 = vrot.lane.b32.xlu1 %v1209_v43, %s5460_s29  ;;  %v1303_v43 = vsub.f32 1.0, %v5053_v60 }
 0xb50   :  { %1310 = vrot.lane.b32.xlu1 %v1309_v20, %s5463_s11 }
 0xb54   :  { %1341 = vrot.lane.b32.xlu1 %v1309_v20, %s5465_s4 }
 0xb9e   :  { %v1299_v21 = vpop.permute.xlu0 %1298 }
 0xb9f   :  { %v1301_v22 = vadd.f32 %v1299_v21, %v5812_v14 }
 0xba1   :  { %5062 = vtanh.f32 %v1301_v22 }
 0xbab   :  { %v5063_v32 = vpop.eup %5062 }
 0xbac   :  { %1305 = vrot.lane.b32.xlu0 %v5063_v32, %s5466_s26 }
 0xbb6   :  { %v1359_v35 = vpop.permute.xlu1 %1358 }
 0xbb7   :  { %v1361_v37 = vadd.f32 %v1359_v35, %v5815_v26 }
 0xbb9   :  { %5064 = vtanh.f32 %v1361_v37 }
 0xbba   :  { %v1331_v38 = vpop.permute.xlu1 %1330 }
 0xbbb   :  { %v1333_v39 = vadd.f32 %v1331_v38, %v5817_v28 }
 0xbbd   :  { %5066 = vtanh.f32 %v1333_v39 }
 0xbbe   :  { %v1370_v42 = vpop.permute.xlu1 %1369 }
 0xbbf   :  { %v1372_v50 = vmul.f32 %v5059_v10, %v1370_v42 }
 0xbc2   :  { %v1311_v14 = vpop.permute.xlu1 %1310 }
 0xbc3   :  { %v5065_v40 = vpop.eup %5064  ;;  %v1313_v45 = vmul.f32 %v5053_v60, %v1311_v14 }
 0xbc4   :  { %1365 = vrot.lane.b32.xlu0 %v5065_v40, %s5465_s4 }
 0xbc6   :  { %v1342_v53 = vpop.permute.xlu1 %1341 }
 0xbc7   :  { %v5067_v41 = vpop.eup %5066  ;;  %v1344_v57 = vmul.f32 %v5061_v13, %v1342_v53 }
 0xbc8   :  { %1337 = vrot.lane.b32.xlu0 %v5067_v41, %s5465_s4 }
 0xc1e   :  { %v1306_v44 = vpop.permute.xlu0 %1305 }
 0xc1f   :  { %v1308_v46 = vmul.f32 %v1306_v44, %v1303_v43 }
 0xc21   :  { %v1314_v47 = vadd.f32 %v1313_v45, %v1308_v46  ;;  %v581_v45 = vld [vmem:[%s6741_s5] sm:$0xff] }
 0xc23   :  { %1393 = vrot.lane.b32.xlu0 %v1314_v47, %s5466_s26 }
 0xc36   :  { %v1366_v49 = vpop.permute.xlu0 %1365 }
 0xc37   :  { %v1368_v51 = vmul.f32 %v1366_v49, %v1363_v48 }
 0xc39   :  { %v1373_v15 = vadd.f32 %v1372_v50, %v1368_v51 }
 0xc3a   :  { %v1338_v56 = vpop.permute.xlu0 %1337 }
 0xc3b   :  { %v5963_v59 = vmul.f32 %v1373_v15, %v5833_v63  ;;  %v1340_v61 = vmul.f32 %v1338_v56, %v1335_v54 }
 0xc3d   :  { %v1400_v2 = vrot.slane %v5963_v59, 2  ;;  %v5966_v60 = vadd.f32 %v1344_v57, %v1340_v61 }
 0xc3f   :  { %1401 = vrot.lane.b32.xlu0 %v1400_v2, %s5465_s4  ;;  %1397 = vrot.lane.b32.xlu1 %v5966_v60, %s5460_s29 }
 0xc95   :  { %v1394_v5 = vpop.permute.xlu0 %1393 }
 0xcb1   :  { %v1398_v6 = vpop.permute.xlu1 %1397  ;;  %v1402_v7 = vpop.permute.xlu0 %1401 }
 0xcb2   :  { %v1404_v8 = vsel %vm6723_vm8, %v1394_v5, %v1398_v6 }
 0xcb3   :  { %v1405_v9 = vsel %vm6722_vm10, %v1404_v8, %v1402_v7 }
 0xcb4   :  { %v1407_v10 = vrot.slane %v1405_v9, 6 }
 0xcb6   :  { %4418 = vmatmul.mubr.msk.f32.vlgmr.msra.gmra.mrb[8].mxu0 %vm611_vm11, %v1407_v10 }
 0xcb7   :  { %4854 = vmatpush1.bf16.msra.mxu0 %v5727_v17  ;;  %1861 = vmatprep.mubr.f32.mxu0 %v5461_v24 }
 0xcb8   :  { %4856 = vmatprep.subr.bf16.mxu0 %v5729_v18 }
 0xcbb   :  { %4858 = vmatpush1.bf16.msra.mxu0 %v5735_v23 }
 0xcbc   :  { %4860 = vmatprep.subr.bf16.mxu0 %v5739_v25 }
 0xcbf   :  { %4862 = vmatpush1.bf16.msra.mxu0 %v5742_v30 }
 0xcc0   :  { %4864 = vmatprep.subr.bf16.mxu0 %v5745_v31 }
 0xcc3   :  { %4866 = vmatpush1.bf16.msra.mxu0 %v5748_v34 }
 0xd89   :  { %v1476_v11 = vpop.f32.mrb[8].mxu0 }
 0xd8a   :  { %v1477_v13 = vadd.f32 %v1476_v11, %v5794_v3  ;;  %v1478_v16 = vpop.f32.mrb[9].mxu0 }
 0xd8b   :  { %v1479_v19 = vadd.f32 %v1478_v16, %v5797_v4 }
 0xd8c   :  { %1510 = vrot.lane.b32.xlu0 %v1477_v13, %s5463_s11  ;;  %v1481_v21 = vadd.f32 %v1477_v13, %v5810_v12 }
 0xd8d   :  { %v1539_v20 = vrot.slane %v1479_v19, 2 }
 0xd8e   :  { %v4419_v22 = vmul.f32 -1.442695, %v1481_v21 }
 0xd8f   :  { %1540 = vrot.lane.b32.xlu1 %v1539_v20, %s5463_s11 }
 0xd90   :  { %5068 = vpow2.f32 %v4419_v22 }
 0xd93   :  { %1489 = vrot.lane.b32.xlu1 %v1477_v13, %s5462_s13 }
 0xd9a   :  { %v5069_v32 = vpop.eup %5068 }
 0xd9b   :  { %v1485_v35 = vadd.f32 1.0, %v5069_v32 }
 0xd9d   :  { %5070 = vrcp.f32 %v1485_v35 }
 0xda7   :  { %v5071_v14 = vpop.eup %5070 }
 0xda8   :  { %v1499_v13 = vsub.f32 1.0, %v5071_v14 }
 0xdfe   :  { %v1511_v37 = vpop.permute.xlu0 %1510 }
 0xdff   :  { %v1513_v38 = vadd.f32 %v1511_v37, %v5815_v26 }
 0xe01   :  { %v4420_v39 = vmul.f32 -1.442695, %v1513_v38  ;;  %v1541_v40 = vpop.permute.xlu1 %1540 }
 0xe02   :  { %v1543_v41 = vadd.f32 %v1541_v40, %v5817_v28 }
 0xe03   :  { %5072 = vpow2.f32 %v4420_v39 }
 0xe04   :  { %v4421_v42 = vmul.f32 -1.442695, %v1543_v41 }
 0xe05   :  { %v1490_v43 = vpop.permute.xlu1 %1489 }
 0xe06   :  { %5074 = vpow2.f32 %v4421_v42  ;;  %v1492_v44 = vmul.f32 %v5071_v14, %v1490_v43 }
 0xe08   :  { %1494 = vrot.lane.b32.xlu1 %v1492_v44, %s5462_s13 }
 0xe0c   :  { %773 = vperm.xlu1 %4995, %v581_v45  }
 0xe0d   :  { %v5073_v46 = vpop.eup %5072 }
 0xe0e   :  { %v1517_v48 = vadd.f32 1.0, %v5073_v46 }
 0xe10   :  { %v5075_v47 = vpop.eup %5074  ;;  %1564 = vrot.lane.b32.xlu1 %v1405_v9, %s5460_s29 }
 0xe11   :  { %v1547_v49 = vadd.f32 1.0, %v5075_v47 }
 0xe13   :  { %5076 = vrcp.f32 %v1547_v49 }
 0xe14   :  { %1505 = vrot.lane.b32.xlu1 %v1407_v10, %s5463_s11  ;;  %5078 = vrcp.f32 %v1517_v48 }
 0xe18   :  { %1533 = vrot.lane.b32.xlu1 %v1407_v10, %s5465_s4 }
 0xe1d   :  { %v5077_v50 = vpop.eup %5076 }
 0xe1e   :  { %v1551_v51 = vmul.f32 %v5077_v50, %v1539_v20  ;;  %v5079_v53 = vpop.eup %5078  ;;  %v1558_v22 = vsub.f32 1.0, %v5077_v50 }
 0xe1f   :  { %v1520_v15 = vmul.f32 %v5079_v53, %v1479_v19  ;;  %v1527_v40 = vsub.f32 1.0, %v5079_v53 }
 0xe20   :  { %1553 = vrot.lane.b32.xlu0 %v1551_v51, %s5463_s11 }
 0xe24   :  { %1522 = vrot.lane.b32.xlu0 %v1520_v15, %s5463_s11 }
 0xe7a   :  { %v1495_v54 = vpop.permute.xlu1 %1494 }
 0xe7b   :  { %v1497_v56 = vadd.f32 %v1495_v54, %v5810_v12 }
 0xe7d   :  { %5080 = vtanh.f32 %v1497_v56 }
 0xe87   :  { %v5081_v57 = vpop.eup %5080 }
 0xe88   :  { %1501 = vrot.lane.b32.xlu0 %v5081_v57, %s5466_s26 }
 0xe8b   :  { %v6005_v9 = vpop.permute.xlu1 %773 }
 0xe8f   :  { %v1565_v10 = vpop.permute.xlu1 %1564 }
 0xe90   :  { %v1567_v35 = vmul.f32 %v5077_v50, %v1565_v10 }
 0xe92   :  { %v1554_v61 = vpop.permute.xlu0 %1553 }
 0xe93   :  { %v1556_v2 = vadd.f32 %v1554_v61, %v5817_v28  ;;  %v1506_v11 = vpop.permute.xlu1 %1505 }
 0xe94   :  { %v1508_v19 = vmul.f32 %v5071_v14, %v1506_v11 }
 0xe95   :  { %5082 = vtanh.f32 %v1556_v2 }
 0xe96   :  { %v1523_v5 = vpop.permute.xlu0 %1522 }
 0xe97   :  { %v1525_v6 = vadd.f32 %v1523_v5, %v5815_v26  ;;  %v1534_v38 = vpop.permute.xlu1 %1533 }
 0xe98   :  { %v1536_v42 = vmul.f32 %v5079_v53, %v1534_v38 }
 0xe99   :  { %5084 = vtanh.f32 %v1525_v6 }
 0xe9f   :  { %v5083_v7 = vpop.eup %5082 }
 0xea0   :  { %1560 = vrot.lane.b32.xlu0 %v5083_v7, %s5465_s4 }
 0xea3   :  { %v5085_v8 = vpop.eup %5084 }
 0xea4   :  { %1529 = vrot.lane.b32.xlu0 %v5085_v8, %s5465_s4 }
 0xefa   :  { %v1502_v16 = vpop.permute.xlu0 %1501 }
 0xefb   :  { %v1504_v20 = vmul.f32 %v1502_v16, %v1499_v13 }
 0xefd   :  { %v1509_v21 = vadd.f32 %v1508_v19, %v1504_v20 }
 0xeff   :  { %1584 = vrot.lane.b32.xlu0 %v1509_v21, %s5466_s26 }
 0xf12   :  { %v1561_v32 = vpop.permute.xlu0 %1560 }
 0xf13   :  { %v1563_v37 = vmul.f32 %v1561_v32, %v1558_v22 }
 0xf15   :  { %v1568_v39 = vadd.f32 %v1567_v35, %v1563_v37 }
 0xf16   :  { %v1530_v41 = vpop.permute.xlu0 %1529 }
 0xf17   :  { %v6009_v43 = vmul.f32 %v1568_v39, %v6005_v9  ;;  %v1532_v44 = vmul.f32 %v1530_v41, %v1527_v40 }
 0xf19   :  { %v1591_v45 = vrot.slane %v6009_v43, 6  ;;  %v6012_v14 = vadd.f32 %v1536_v42, %v1532_v44 }
 0xf1b   :  { %1592 = vrot.lane.b32.xlu0 %v1591_v45, %s5465_s4  ;;  %1588 = vrot.lane.b32.xlu1 %v6012_v14, %s5460_s29 }
 0xf71   :  { %v1585_v46 = vpop.permute.xlu0 %1584 }
 0xf8d   :  { %v1593_v47 = vpop.permute.xlu0 %1592  ;;  %v1589_v48 = vpop.permute.xlu1 %1588 }
 0xf8e   :  { %v1595_v49 = vsel %vm6723_vm8, %v1585_v46, %v1589_v48 }
 0xf8f   :  { %v1596_v50 = vsel %vm6722_vm10, %v1595_v49, %v1593_v47 }
 0xf90   :  { %4422 = vmatmul.mubr.msk.f32.vlgmr.msra.gmra.mrb[8].mxu1 %vm611_vm11, %v1596_v50  ;;  %v1759_v35 = vrot.slane %v1596_v50, 4  ;;  %v1697_v37 = vrot.slane %v1596_v50, 6 }
 0xf91   :  { %4870 = vmatpush1.bf16.msra.mxu1 %v5727_v17  ;;  %2057 = vmatprep.mubr.f32.mxu1 %v5461_v24 }
 0xf92   :  { %4872 = vmatprep.subr.bf16.mxu1 %v5729_v18 }
 0xf95   :  { %4874 = vmatpush1.bf16.msra.mxu1 %v5735_v23 }
 0xf96   :  { %4876 = vmatprep.subr.bf16.mxu1 %v5739_v25 }
 0xf99   :  { %4878 = vmatpush1.bf16.msra.mxu1 %v5742_v30 }
 0xf9a   :  { %4880 = vmatprep.subr.bf16.mxu1 %v5745_v31 }
 0xf9d   :  { %4882 = vmatpush1.bf16.msra.mxu1 %v5748_v34 }
0x1063   :  { %v1666_v51 = vpop.f32.mrb[8].mxu1 }
0x1064   :  { %v1667_v53 = vadd.f32 %v1666_v51, %v5794_v3  ;;  %v1668_v15 = vpop.f32.mrb[9].mxu1 }
0x1065   :  { %v1669_v17 = vadd.f32 %v1668_v15, %v5797_v4 }
0x1066   :  { %v1672_v54 = vrot.slane %v1667_v53, 6 }
0x1067   :  { %v1734_v56 = vrot.slane %v1669_v17, 4  ;;  %v1714_v22 = vrot.slane %v1669_v17, 6 }
0x1068   :  { %1703 = vrot.lane.b32.xlu0 %v1672_v54, %s5463_s11  ;;  %v1674_v18 = vadd.f32 %v1672_v54, %v5810_v12 }
0x1069   :  { %1735 = vrot.lane.b32.xlu1 %v1734_v56, %s5463_s11 }
0x106a   :  { %v4423_v23 = vmul.f32 -1.442695, %v1674_v18 }
0x106c   :  { %5086 = vpow2.f32 %v4423_v23 }
0x106d   :  { %1681 = vrot.lane.b32.xlu1 %v1672_v54, %s5462_s13 }
0x1076   :  { %v5087_v25 = vpop.eup %5086 }
0x1077   :  { %v1678_v30 = vadd.f32 1.0, %v5087_v25 }
0x1079   :  { %5088 = vrcp.f32 %v1678_v30 }
0x1083   :  { %v5089_v6 = vpop.eup %5088 }
0x1084   :  { %v1691_v50 = vsub.f32 1.0, %v5089_v6 }
0x10da   :  { %v1704_v31 = vpop.permute.xlu0 %1703 }
0x10db   :  { %v1706_v34 = vadd.f32 %v1704_v31, %v5815_v26  ;;  %v1736_v57 = vpop.permute.xlu1 %1735 }
0x10dc   :  { %v1738_v61 = vadd.f32 %v1736_v57, %v5817_v28 }
0x10dd   :  { %v4424_v2 = vmul.f32 -1.442695, %v1706_v34 }
0x10de   :  { %v4425_v5 = vmul.f32 -1.442695, %v1738_v61 }
0x10df   :  { %5090 = vpow2.f32 %v4424_v2  ;;  %v1682_v7 = vpop.permute.xlu1 %1681 }
0x10e0   :  { %5092 = vpow2.f32 %v4425_v5  ;;  %v1684_v8 = vmul.f32 %v5089_v6, %v1682_v7 }
0x10e2   :  { %1686 = vrot.lane.b32.xlu1 %v1684_v8, %s5462_s13 }
0x10e9   :  { %v5091_v10 = vpop.eup %5090 }
0x10ea   :  { %v5093_v11 = vpop.eup %5092  ;;  %v1710_v13 = vadd.f32 1.0, %v5091_v10 }
0x10eb   :  { %v1742_v16 = vadd.f32 1.0, %v5093_v11 }
0x10ed   :  { %5094 = vrcp.f32 %v1742_v16 }
0x10ee   :  { %5096 = vrcp.f32 %v1710_v13 }
0x10f7   :  { %v5095_v19 = vpop.eup %5094 }
0x10f8   :  { %v1746_v20 = vmul.f32 %v5095_v19, %v1734_v56  ;;  %v5097_v21 = vpop.eup %5096  ;;  %v1753_v54 = vsub.f32 1.0, %v5095_v19 }
0x10f9   :  { %v1716_v32 = vmul.f32 %v5097_v21, %v1714_v22  ;;  %v1723_v31 = vsub.f32 1.0, %v5097_v21 }
0x10fa   :  { %1748 = vrot.lane.b32.xlu0 %v1746_v20, %s5463_s11 }
0x10fe   :  { %1718 = vrot.lane.b32.xlu0 %v1716_v32, %s5463_s11 }
0x1102   :  { %1760 = vrot.lane.b32.xlu0 %v1759_v35, %s5460_s29 }
0x1106   :  { %1698 = vrot.lane.b32.xlu0 %v1697_v37, %s5463_s11 }
0x110a   :  { %1729 = vrot.lane.b32.xlu0 %v1697_v37, %s5465_s4 }
0x1154   :  { %v1687_v38 = vpop.permute.xlu1 %1686 }
0x1155   :  { %v1689_v39 = vadd.f32 %v1687_v38, %v5810_v12 }
0x1157   :  { %5098 = vtanh.f32 %v1689_v39 }
0x1161   :  { %v5099_v40 = vpop.eup %5098 }
0x1162   :  { %1693 = vrot.lane.b32.xlu1 %v5099_v40, %s5466_s26 }
0x116c   :  { %v1749_v41 = vpop.permute.xlu0 %1748 }
0x116d   :  { %v1751_v42 = vadd.f32 %v1749_v41, %v5817_v28 }
0x116f   :  { %5100 = vtanh.f32 %v1751_v42 }
0x1170   :  { %v1719_v44 = vpop.permute.xlu0 %1718 }
0x1171   :  { %v1721_v45 = vadd.f32 %v1719_v44, %v5815_v26 }
0x1173   :  { %5102 = vtanh.f32 %v1721_v45 }
0x1174   :  { %v1761_v48 = vpop.permute.xlu0 %1760 }
0x1175   :  { %v1763_v18 = vmul.f32 %v5095_v19, %v1761_v48 }
0x1178   :  { %v1699_v49 = vpop.permute.xlu0 %1698 }
0x1179   :  { %v5101_v46 = vpop.eup %5100  ;;  %v1701_v53 = vmul.f32 %v5089_v6, %v1699_v49 }
0x117a   :  { %1755 = vrot.lane.b32.xlu1 %v5101_v46, %s5465_s4 }
0x117c   :  { %v1730_v25 = vpop.permute.xlu0 %1729 }
0x117d   :  { %v5103_v47 = vpop.eup %5102  ;;  %v1732_v57 = vmul.f32 %v5097_v21, %v1730_v25 }
0x117e   :  { %1725 = vrot.lane.b32.xlu1 %v5103_v47, %s5465_s4 }
0x11d4   :  { %v1694_v51 = vpop.permute.xlu1 %1693 }
0x11d5   :  { %v1696_v15 = vmul.f32 %v1694_v51, %v1691_v50 }
0x11d7   :  { %v1702_v17 = vadd.f32 %v1701_v53, %v1696_v15 }
0x11d9   :  { %1780 = vrot.lane.b32.xlu1 %v1702_v17, %s5466_s26 }
0x11ec   :  { %v1756_v56 = vpop.permute.xlu1 %1755 }
0x11ed   :  { %v1758_v23 = vmul.f32 %v1756_v56, %v1753_v54 }
0x11ef   :  { %v1764_v30 = vadd.f32 %v1763_v18, %v1758_v23 }
0x11f0   :  { %v1726_v34 = vpop.permute.xlu1 %1725 }
0x11f1   :  { %v6050_v61 = vmul.f32 %v1764_v30, %v6005_v9  ;;  %v1728_v2 = vmul.f32 %v1726_v34, %v1723_v31 }
0x11f3   :  { %v1787_v5 = vrot.slane %v6050_v61, 2  ;;  %v6053_v6 = vadd.f32 %v1732_v57, %v1728_v2 }
0x11f5   :  { %1788 = vrot.lane.b32.xlu1 %v1787_v5, %s5465_s4  ;;  %1784 = vrot.lane.b32.xlu0 %v6053_v6, %s5460_s29 }
0x124b   :  { %v1781_v7 = vpop.permute.xlu1 %1780 }
0x1267   :  { %v1785_v8 = vpop.permute.xlu0 %1784  ;;  %v1789_v10 = vpop.permute.xlu1 %1788 }
0x1268   :  { %v1791_v11 = vsel %vm6723_vm8, %v1781_v7, %v1785_v8 }
0x1269   :  { %v1792_v13 = vsel %vm6722_vm10, %v1791_v11, %v1789_v10 }
0x126a   :  { %v1794_v16 = vrot.slane %v1792_v13, 2  ;;  %v1894_v30 = vrot.slane %v1792_v13, 6 }
0x126c   :  { %4426 = vmatmul.mubr.msk.f32.vlgmr.msra.gmra.mrb[10].mxu0 %vm611_vm11, %v1794_v16 }
0x133f   :  { %v1863_v19 = vpop.f32.mrb[10].mxu0 }
0x1340   :  { %v1864_v20 = vadd.f32 %v1863_v19, %v5794_v3  ;;  %v1865_v21 = vpop.f32.mrb[11].mxu0 }
0x1341   :  { %v1866_v22 = vadd.f32 %v1865_v21, %v5797_v4 }
0x1342   :  { %v1869_v32 = vrot.slane %v1864_v20, 4 }
0x1343   :  { %v1931_v35 = vrot.slane %v1866_v22, 6  ;;  %v1911_v23 = vrot.slane %v1866_v22, 4 }
0x1344   :  { %1900 = vrot.lane.b32.xlu1 %v1869_v32, %s5463_s11  ;;  %v1871_v37 = vadd.f32 %v1869_v32, %v5810_v12 }
0x1345   :  { %1932 = vrot.lane.b32.xlu0 %v1931_v35, %s5463_s11 }
0x1346   :  { %v4427_v38 = vmul.f32 -1.442695, %v1871_v37 }
0x1348   :  { %5104 = vpow2.f32 %v4427_v38 }
0x1349   :  { %1878 = vrot.lane.b32.xlu0 %v1869_v32, %s5462_s13 }
0x1352   :  { %v5105_v39 = vpop.eup %5104 }
0x1353   :  { %v1875_v40 = vadd.f32 1.0, %v5105_v39 }
0x1355   :  { %5106 = vrcp.f32 %v1875_v40 }
0x135f   :  { %v5107_v48 = vpop.eup %5106 }
0x1360   :  { %v1888_v19 = vsub.f32 1.0, %v5107_v48 }
0x13b6   :  { %v1901_v41 = vpop.permute.xlu1 %1900 }
0x13b7   :  { %v1903_v42 = vadd.f32 %v1901_v41, %v5815_v26  ;;  %v1933_v44 = vpop.permute.xlu0 %1932 }
0x13b8   :  { %v1935_v45 = vadd.f32 %v1933_v44, %v5817_v28 }
0x13b9   :  { %v4428_v46 = vmul.f32 -1.442695, %v1903_v42 }
0x13ba   :  { %v4429_v47 = vmul.f32 -1.442695, %v1935_v45 }
0x13bb   :  { %5108 = vpow2.f32 %v4428_v46  ;;  %v1879_v49 = vpop.permute.xlu0 %1878 }
0x13bc   :  { %5110 = vpow2.f32 %v4429_v47  ;;  %v1881_v50 = vmul.f32 %v5107_v48, %v1879_v49 }
0x13be   :  { %1883 = vrot.lane.b32.xlu0 %v1881_v50, %s5462_s13 }
0x13c5   :  { %v5109_v51 = vpop.eup %5108 }
0x13c6   :  { %v5111_v53 = vpop.eup %5110  ;;  %v1907_v15 = vadd.f32 1.0, %v5109_v51 }
0x13c7   :  { %v1939_v17 = vadd.f32 1.0, %v5111_v53 }
0x13c9   :  { %5112 = vrcp.f32 %v1939_v17 }
0x13ca   :  { %5114 = vrcp.f32 %v1907_v15 }
0x13d3   :  { %v5113_v54 = vpop.eup %5112 }
0x13d4   :  { %v1943_v56 = vmul.f32 %v5113_v54, %v1931_v35  ;;  %v5115_v18 = vpop.eup %5114  ;;  %v1950_v35 = vsub.f32 1.0, %v5113_v54 }
0x13d5   :  { %v1913_v25 = vmul.f32 %v5115_v18, %v1911_v23  ;;  %v1920_v42 = vsub.f32 1.0, %v5115_v18 }
0x13d6   :  { %1945 = vrot.lane.b32.xlu1 %v1943_v56, %s5463_s11 }
0x13da   :  { %1915 = vrot.lane.b32.xlu1 %v1913_v25, %s5463_s11 }
0x13de   :  { %1956 = vrot.lane.b32.xlu1 %v1792_v13, %s5460_s29 }
0x13e2   :  { %1895 = vrot.lane.b32.xlu1 %v1894_v30, %s5463_s11 }
0x13e6   :  { %1926 = vrot.lane.b32.xlu1 %v1894_v30, %s5465_s4 }
0x1430   :  { %v1884_v31 = vpop.permute.xlu0 %1883 }
0x1431   :  { %v1886_v34 = vadd.f32 %v1884_v31, %v5810_v12 }
0x1433   :  { %5116 = vtanh.f32 %v1886_v34 }
0x143d   :  { %v5117_v57 = vpop.eup %5116 }
0x143e   :  { %1890 = vrot.lane.b32.xlu0 %v5117_v57, %s5466_s26 }
0x1448   :  { %v1946_v2 = vpop.permute.xlu1 %1945 }
0x1449   :  { %v1948_v5 = vadd.f32 %v1946_v2, %v5817_v28 }
0x144b   :  { %5118 = vtanh.f32 %v1948_v5 }
0x144c   :  { %v1916_v7 = vpop.permute.xlu1 %1915 }
0x144d   :  { %v1918_v8 = vadd.f32 %v1916_v7, %v5815_v26 }
0x144f   :  { %5120 = vtanh.f32 %v1918_v8 }
0x1450   :  { %v1957_v13 = vpop.permute.xlu1 %1956 }
0x1451   :  { %v1959_v38 = vmul.f32 %v5113_v54, %v1957_v13 }
0x1454   :  { %v1896_v16 = vpop.permute.xlu1 %1895 }
0x1455   :  { %v5119_v10 = vpop.eup %5118  ;;  %v1898_v21 = vmul.f32 %v5107_v48, %v1896_v16 }
0x1456   :  { %1952 = vrot.lane.b32.xlu0 %v5119_v10, %s5465_s4 }
0x1458   :  { %v1927_v40 = vpop.permute.xlu1 %1926 }
0x1459   :  { %v5121_v11 = vpop.eup %5120  ;;  %v1929_v45 = vmul.f32 %v5115_v18, %v1927_v40 }
0x145a   :  { %1922 = vrot.lane.b32.xlu0 %v5121_v11, %s5465_s4 }
0x14b0   :  { %v1891_v20 = vpop.permute.xlu0 %1890 }
0x14b1   :  { %v1893_v22 = vmul.f32 %v1891_v20, %v1888_v19 }
0x14b3   :  { %v1899_v32 = vadd.f32 %v1898_v21, %v1893_v22 }
0x14b5   :  { %1976 = vrot.lane.b32.xlu0 %v1899_v32, %s5466_s26 }
0x14c8   :  { %v1953_v37 = vpop.permute.xlu0 %1952 }
0x14c9   :  { %v1955_v39 = vmul.f32 %v1953_v37, %v1950_v35 }
0x14cb   :  { %v1960_v41 = vadd.f32 %v1959_v38, %v1955_v39 }
0x14cc   :  { %v1923_v44 = vpop.permute.xlu0 %1922 }
0x14cd   :  { %v1961_v46 = vmul.f32 %v1960_v41, %v6005_v9  ;;  %v1925_v47 = vmul.f32 %v1923_v44, %v1920_v42 }
0x14cf   :  { %v6083_v49 = vadd.f32 %v1929_v45, %v1925_v47  ;;  %v1983_v50 = vrot.slane %v1961_v46, 6  ;;  %v776_v47 = vmul.f32 %v6005_v9, %v5835_v27 }
0x14d1   :  { %1984 = vrot.lane.b32.xlu0 %v1983_v50, %s5465_s4  ;;  %1980 = vrot.lane.b32.xlu1 %v6083_v49, %s5460_s29 }
0x1527   :  { %v1977_v48 = vpop.permute.xlu0 %1976 }
0x1543   :  { %v1981_v51 = vpop.permute.xlu1 %1980  ;;  %v1985_v53 = vpop.permute.xlu0 %1984 }
0x1544   :  { %v1987_v15 = vsel %vm6723_vm8, %v1977_v48, %v1981_v51  ;;  %v977_v48 = vmul.f32 %v5882_v55, %v6005_v9  ;;  %v1177_v51 = vmul.f32 %v5924_v36, %v6005_v9  ;;  %v1375_v55 = vmul.f32 %v5966_v60, %v6005_v9 }
0x1545   :  { %v1988_v17 = vsel %vm6722_vm10, %v1987_v15, %v1985_v53  ;;  %v1570_v53 = vmul.f32 %v6012_v14, %v5833_v63  ;;  %v1766_v15 = vmul.f32 %v6053_v6, %v5833_v63  ;;  %v1962_v36 = vmul.f32 %v6083_v49, %v5833_v63  ;;  %v2277_v14 = vld [vmem:[%s6703_s17] sm:$0xff]  ;;  %v2278_v6 = vld [vmem:[%s6703_s17 + $0x8] sm:$0xff] }
0x1546   :  { %v1990_v54 = vrot.slane %v1988_v17, 4  ;;  %v2090_v40 = vrot.slane %v1988_v17, 6  ;;  %v6175_v49 = vpack.c.bf16 %v2278_v6, %v2277_v14  ;;  %vm1380_vm10 = vcmask 129030  }
0x1547   :  { %vm1388_vm8 = vcmask 130055  }
0x1548   :  { %4430 = vmatmul.mubr.msk.f32.vlgmr.msra.gmra.mrb[10].mxu1 %vm611_vm11, %v1990_v54  ;;  %vm1182_vm11 = vcmask 126980  }
0x1549   :  { %4604 = vmatprep.mubr.msk.f32.mxu1 %vm6720_vm6, %v5461_v24  ;;  %vm1190_vm6 = vcmask 128005  }
0x161b   :  { %v2059_v56 = vpop.f32.mrb[10].mxu1 }
0x161c   :  { %v2060_v18 = vadd.f32 %v2059_v56, %v5794_v3  ;;  %v2061_v23 = vpop.f32.mrb[11].mxu1 }
0x161d   :  { %v2062_v25 = vadd.f32 %v2061_v23, %v5797_v4  ;;  %v2185_v23 = vld [vmem:[%s6704_s18] sm:$0xff] }
0x161e   :  { %v2065_v30 = vrot.slane %v2060_v18, 2  ;;  %v5468_v18 = vmov 0.0|0.0  }
0x161f   :  { %2127 = vrot.lane.b32.xlu1 %v2062_v25, %s5463_s11  ;;  %v2107_v21 = vrot.slane %v2062_v25, 2  ;;  %4891 = vmatprep.subr.bf16.mxu1 %v5468_v18 }
0x1620   :  { %2096 = vrot.lane.b32.xlu0 %v2065_v30, %s5463_s11  ;;  %v2067_v31 = vadd.f32 %v2065_v30, %v5810_v12  ;;  %4893 = vmatpush3.bf16.msra.mxu1 %v6175_v49 }
0x1621   :  { %4894 = vmatprep.subr.bf16.mxu1 %v5468_v18 }
0x1622   :  { %v4431_v34 = vmul.f32 -1.442695, %v2067_v31 }
0x1623   :  { %2074 = vrot.lane.b32.xlu1 %v2065_v30, %s5462_s13 }
0x1624   :  { %5122 = vpow2.f32 %v4431_v34 }
0x162e   :  { %v5123_v4 = vpop.eup %5122 }
0x162f   :  { %v2071_v19 = vadd.f32 1.0, %v5123_v4 }
0x1691   :  { %v2128_v57 = vpop.permute.xlu1 %2127 }
0x1692   :  { %v2130_v2 = vadd.f32 %v2128_v57, %v5817_v28  ;;  %v2097_v5 = vpop.permute.xlu0 %2096 }
0x1693   :  { %v2099_v7 = vadd.f32 %v2097_v5, %v5815_v26 }
0x1694   :  { %v4433_v3 = vmul.f32 -1.442695, %v2130_v2 }
0x1695   :  { %v4432_v8 = vmul.f32 -1.442695, %v2099_v7  ;;  %v2075_v35 = vpop.permute.xlu1 %2074 }
0x1696   :  { %5124 = vpow2.f32 %v4433_v3  ;;  %v2279_v3 = vld [vmem:[%s6703_s17 + $0x10] sm:$0xff] }
0x1697   :  { %5126 = vpow2.f32 %v4432_v8  ;;  %v2280_v8 = vld [vmem:[%s6703_s17 + $0x18] sm:$0xff] }
0x1698   :  { %v6193_v4 = vpack.c.bf16 %v2280_v8, %v2279_v3 }
0x169a   :  { %4896 = vmatpush3.bf16.msra.mxu1 %v6193_v4 }
0x169b   :  { %4903 = vmatprep.subr.bf16.mxu1 %v5468_v18 }
0x16a0   :  { %v5125_v10 = vpop.eup %5124 }
0x16a1   :  { %v5127_v11 = vpop.eup %5126  ;;  %v2134_v13 = vadd.f32 1.0, %v5125_v10  ;;  %v2187_v10 = vld [vmem:[%s6704_s18 + $0x10] sm:$0xff] }
0x16a2   :  { %v2103_v16 = vadd.f32 1.0, %v5127_v11 }
0x16a3   :  { %5128 = vrcp.f32 %v2134_v13 }
0x16a4   :  { %5130 = vrcp.f32 %v2103_v16 }
0x16a5   :  { %5132 = vrcp.f32 %v2071_v19 }
0x16ad   :  { %v6099_v20 = vpop.eup %5128 }
0x16ae   :  { %v6101_v22 = vpop.eup %5130  ;;  %v2137_v32 = vmul.f32 %v6099_v20, %v2062_v25  ;;  %v2144_v17 = vsub.f32 1.0, %v6099_v20  ;;  %v2186_v25 = vld [vmem:[%s6704_s18 + $0x8] sm:$0xff] }
0x16af   :  { %v2109_v37 = vmul.f32 %v6101_v22, %v2107_v21  ;;  %v6106_v38 = vpop.eup %5132  ;;  %v2116_v31 = vsub.f32 1.0, %v6101_v22  ;;  %v4883_v34 = vpack.c.bf16 %v2186_v25, %v2185_v23 }
0x16b0   :  { %2139 = vrot.lane.b32.xlu0 %v2137_v32, %s5463_s11  ;;  %v2077_v39 = vmul.f32 %v6106_v38, %v2075_v35  ;;  %v2084_v13 = vsub.f32 1.0, %v6106_v38 }
0x16b1   :  { %2111 = vrot.lane.b32.xlu1 %v2109_v37, %s5463_s11  ;;  %4884 = vmatprep.subr.bf16.mxu0 %v4883_v34 }
0x16b2   :  { %4886 = vmatpush3.bf16.msra.mxu0 %v4883_v34 }
0x16b4   :  { %2079 = vrot.lane.b32.xlu0 %v2077_v39, %s5462_s13 }
0x16b8   :  { %2150 = vrot.lane.b32.xlu0 %v1990_v54, %s5460_s29 }
0x16bc   :  { %2122 = vrot.lane.b32.xlu0 %v2090_v40, %s5465_s4 }
0x16c0   :  { %2091 = vrot.lane.b32.xlu0 %v2090_v40, %s5463_s11 }
0x16c4   :  { %784 = vrot.lane.b32.xlu0 %v5838_v29, %s5467_s27 }
0x16c8   :  { %985 = vrot.lane.b32.xlu0 %v5879_v52, %s5467_s27 }
0x16cc   :  { %1185 = vrot.lane.b32.xlu0 %v5921_v33, %s5467_s27 }
0x16d0   :  { %1383 = vrot.lane.b32.xlu0 %v5963_v59, %s5467_s27 }
0x16d4   :  { %1577 = vrot.lane.b32.xlu0 %v6009_v43, %s5467_s27 }
0x16d8   :  { %1773 = vrot.lane.b32.xlu0 %v6050_v61, %s5467_s27 }
0x16dc   :  { %1969 = vrot.lane.b32.xlu0 %v1961_v46, %s5467_s27 }
0x1722   :  { %v2140_v41 = vpop.permute.xlu0 %2139 }
0x1723   :  { %v2142_v29 = vadd.f32 %v2140_v41, %v5817_v28  ;;  %v2112_v42 = vpop.permute.xlu1 %2111 }
0x1724   :  { %v2114_v52 = vadd.f32 %v2112_v42, %v5815_v26 }
0x1725   :  { %5134 = vtanh.f32 %v2142_v29 }
0x1726   :  { %v2080_v44 = vpop.permute.xlu0 %2079  ;;  %5136 = vtanh.f32 %v2114_v52 }
0x1727   :  { %v2082_v33 = vadd.f32 %v2080_v44, %v5810_v12 }
0x1729   :  { %5138 = vtanh.f32 %v2082_v33 }
0x172a   :  { %v2151_v59 = vpop.permute.xlu0 %2150 }
0x172b   :  { %v2153_v54 = vmul.f32 %v6099_v20, %v2151_v59 }
0x172e   :  { %v6130_v45 = vpop.permute.xlu0 %2122 }
0x172f   :  { %v5135_v43 = vpop.eup %5134  ;;  %v2125_v11 = vmul.f32 %v6101_v22, %v6130_v45 }
0x1730   :  { %2146 = vrot.lane.b32.xlu1 %v5135_v43, %s5465_s4  ;;  %v5137_v46 = vpop.eup %5136 }
0x1732   :  { %v6133_v61 = vpop.permute.xlu0 %2091 }
0x1733   :  { %v5139_v26 = vpop.eup %5138  ;;  %v2094_v20 = vmul.f32 %v6106_v38, %v6133_v61 }
0x1734   :  { %2118 = vrot.lane.b32.xlu1 %v5137_v46, %s5465_s4 }
0x1736   :  { %v785_v28 = vpop.permute.xlu0 %784 }
0x1737   :  { %788 = vst.msk [vmem:[#allocation2 + $0x1] sm:$0x40] %vm787_vm12, %v785_v28 }
0x1738   :  { %792 = vst.msk [vmem:[#allocation2 + $0x8] sm:$0x80] %vm791_vm13, %v785_v28  ;;  %2086 = vrot.lane.b32.xlu1 %v5139_v26, %s5466_s26 }
0x173a   :  { %v986_v12 = vpop.permute.xlu0 %985 }
0x173b   :  { %989 = vst.msk [vmem:[#allocation2 + $0x2] sm:$0x10] %vm988_vm14, %v986_v12 }
0x173c   :  { %993 = vst.msk [vmem:[#allocation2 + $0x9] sm:$0x20] %vm992_vm15, %v986_v12  ;;  %778 = vrot.lane.b32.xlu1 %v776_v47, %s5465_s4 }
0x173e   :  { %v1186_v50 = vpop.permute.xlu0 %1185 }
0x173f   :  { %1189 = vst.msk [vmem:[#allocation2 + $0x3] sm:$0x4] %vm1188_vm0, %v1186_v50 }
0x1740   :  { %1193 = vst.msk [vmem:[#allocation2 + $0xa] sm:$0x8] %vm1192_vm1, %v1186_v50  ;;  %979 = vrot.lane.b32.xlu1 %v977_v48, %s5465_s4  ;;  %v5470_v50 = vmov 1966171168  }
0x1741   :  { %v2375_v48 = vunpack.c.l.s4 %v5470_v50 }
0x1742   :  { %v1384_v27 = vpop.permute.xlu0 %1383 }
0x1743   :  { %1387 = vst.msk [vmem:[#allocation2 + $0x4] sm:$0x1] %vm1386_vm2, %v1384_v27 }
0x1744   :  { %1391 = vst.msk [vmem:[#allocation2 + $0xb] sm:$0x2] %vm1390_vm3, %v1384_v27  ;;  %1179 = vrot.lane.b32.xlu1 %v1177_v51, %s5465_s4  ;;  %v2376_v27 = vunpack.c.0.s8 %v2375_v48 }
0x1746   :  { %v1578_v2 = vpop.permute.xlu0 %1577  ;;  %v6266_v51 = vsub.s32 %v2376_v27, %v5776_v62 }
0x1748   :  { %1377 = vrot.lane.b32.xlu1 %v1375_v55, %s5465_s4 }
0x174a   :  { %v1774_v22 = vpop.permute.xlu0 %1773 }
0x174c   :  { %1572 = vrot.lane.b32.xlu1 %v1570_v53, %s5465_s4 }
0x174e   :  { %v1970_v40 = vpop.permute.xlu0 %1969 }
0x1750   :  { %1768 = vrot.lane.b32.xlu1 %v1766_v15, %s5465_s4 }
0x1754   :  { %1964 = vrot.lane.b32.xlu1 %v1962_v36, %s5465_s4  ;;  %v4434_v36 = vld [vmem:[%s6705_s19] ss:$0 sm:$0xff] }
0x17a2   :  { %v2147_v60 = vpop.permute.xlu1 %2146 }
0x17a3   :  { %v2149_v56 = vmul.f32 %v2147_v60, %v2144_v17 }
0x17a5   :  { %v2154_v30 = vadd.f32 %v2153_v54, %v2149_v56 }
0x17a6   :  { %v2119_v57 = vpop.permute.xlu1 %2118 }
0x17a7   :  { %v2155_v5 = vmul.f32 %v2154_v30, %v6005_v9  ;;  %v2121_v7 = vmul.f32 %v2119_v57, %v2116_v31  ;;  %v2188_v9 = vld [vmem:[%s6704_s18 + $0x18] sm:$0xff]  ;;  %v6288_v57 = vld [vmem:[%s6706_s20] ss:$0 sm:$0xff] }
0x17a8   :  { %v4887_v16 = vpack.c.bf16 %v2188_v9, %v2187_v10  ;;  %v4440_v9 = vld [vmem:[#allocation4] ss:$0 sm:$0xff] }
0x17a9   :  { %2163 = vrot.lane.b32.xlu0 %v2155_v5, %s5467_s27  ;;  %v2126_v21 = vadd.f32 %v2125_v11, %v2121_v7  ;;  %v2177_v41 = vrot.slane %v2155_v5, 2  ;;  %v2438_v11 = vand.u32 127, %v601_v58 }
0x17aa   :  { %v2087_v19 = vpop.permute.xlu1 %2086  ;;  %4888 = vmatprep.subr.bf16.mxu0 %v4887_v16 }
0x17ab   :  { %v2089_v32 = vmul.f32 %v2087_v19, %v2084_v13  ;;  %4890 = vmatpush3.bf16.msra.mxu0 %v4887_v16  ;;  %v2156_v38 = vmul.f32 %v2126_v21, %v5833_v63  ;;  %v6296_v16 = vsub.s32 %v2438_v11, %v5776_v62  ;;  %v4441_v62 = vld [vmem:[%s6750_s3] ss:$0 sm:$0xff]  ;;  %s6784_s3 = sld [smem:[#allocation33_spill]] }
0x17ac   :  { %4897 = vmatprep.subr.bf16.mxu0 %v5468_v18 }
0x17ad   :  { %v2095_v35 = vadd.f32 %v2094_v20, %v2089_v32  ;;  %2174 = vrot.lane.b32.xlu0 %v2126_v21, %s5460_s29 }
0x17ae   :  { %v779_v37 = vpop.permute.xlu1 %778 }
0x17af   :  { %782 = vst.msk [vmem:[#allocation2] sm:$0x1] %vm781_vm4, %v779_v37  ;;  %2170 = vrot.lane.b32.xlu1 %v2095_v35, %s5466_s26 }
0x17b0   :  { %790 = vst.msk [vmem:[#allocation2 + $0x7] sm:$0x2] %vm789_vm5, %v779_v37 }
0x17b2   :  { %v980_v39 = vpop.permute.xlu1 %979 }
0x17b3   :  { %983 = vst.msk [vmem:[#allocation2 - $0x1] sm:$0x4] %vm982_vm7, %v980_v39  ;;  %2158 = vrot.lane.b32.xlu1 %v2156_v38, %s5465_s4 }
0x17b4   :  { %991 = vst.msk [vmem:[#allocation2 + $0x6] sm:$0x8] %vm990_vm9, %v980_v39 }
0x17b5   :  { %1972 = vst.msk [vmem:[#allocation2 - $0x1] sm:$0x4] %vm1188_vm0, %v1970_v40 }
0x17b6   :  { %1974 = vst.msk [vmem:[#allocation2 + $0x6] sm:$0x8] %vm1192_vm1, %v1970_v40  ;;  %v1180_v29 = vpop.permute.xlu1 %1179 }
0x17b7   :  { %1183 = vst.msk [vmem:[#allocation2 - $0x2] sm:$0x10] %vm1182_vm11, %v1180_v29  ;;  %2178 = vrot.lane.b32.xlu1 %v2177_v41, %s5465_s4 }
0x17b8   :  { %1191 = vst.msk [vmem:[#allocation2 + $0x5] sm:$0x20] %vm1190_vm6, %v1180_v29 }
0x17b9   :  { %1776 = vst.msk [vmem:[#allocation2 - $0x2] sm:$0x10] %vm988_vm14, %v1774_v22 }
0x17ba   :  { %1778 = vst.msk [vmem:[#allocation2 + $0x5] sm:$0x20] %vm992_vm15, %v1774_v22  ;;  %v1378_v63 = vpop.permute.xlu1 %1377  ;;  %vm6747_vm15 = vmmov 0  }
0x17bb   :  { %1381 = vst.msk [vmem:[#allocation2 - $0x3] sm:$0x40] %vm1380_vm10, %v1378_v63 }
0x17bc   :  { %1389 = vst.msk [vmem:[#allocation2 + $0x4] sm:$0x80] %vm1388_vm8, %v1378_v63 }
0x17bd   :  { %1580 = vst.msk [vmem:[#allocation2 - $0x3] sm:$0x40] %vm787_vm12, %v1578_v2  ;;  %vm6742_vm12 = vcmask 261120  }
0x17be   :  { %1582 = vst.msk [vmem:[#allocation2 + $0x4] sm:$0x80] %vm791_vm13, %v1578_v2  ;;  %v1573_v42 = vpop.permute.xlu1 %1572  ;;  %vm6743_vm13 = vcmask 392192   ;;  %vm6744_vm14 = vmmov %vm6742_vm12 }
0x17bf   :  { %1575 = vst.msk [vmem:[#allocation2 + $0x4] sm:$0x1] %vm781_vm4, %v1573_v42 }
0x17c0   :  { %1581 = vst.msk [vmem:[#allocation2 + $0xb] sm:$0x2] %vm789_vm5, %v1573_v42 }
0x17c2   :  { %v1769_v52 = vpop.permute.xlu1 %1768 }
0x17c3   :  { %1771 = vst.msk [vmem:[#allocation2 + $0x3] sm:$0x4] %vm982_vm7, %v1769_v52  ;;  %vm2660_vm7 = vcmask 254976  }
0x17c4   :  { %1777 = vst.msk [vmem:[#allocation2 + $0xa] sm:$0x8] %vm990_vm9, %v1769_v52 }
0x17c6   :  { %v1965_v44 = vpop.permute.xlu1 %1964 }
0x17c7   :  { %1967 = vst.msk [vmem:[#allocation2 + $0x2] sm:$0x10] %vm1182_vm11, %v1965_v44 }
0x17c8   :  { %1973 = vst.msk [vmem:[#allocation2 + $0x9] sm:$0x20] %vm1190_vm6, %v1965_v44 }
0x181b   :  { %v2164_v33 = vpop.permute.xlu0 %2163 }
0x181c   :  { %2166 = vst.msk [vmem:[#allocation2] sm:$0x1] %vm1386_vm2, %v2164_v33  ;;  %vm2447_vm2 = vcmask 1041409  }
0x181d   :  { %2168 = vst.msk [vmem:[#allocation2 + $0x7] sm:$0x2] %vm1390_vm3, %v2164_v33  ;;  %vm2450_vm3 = vcmask 58368  }
0x181f   :  { %v2175_v43 = vpop.permute.xlu0 %2174 }
0x1821   :  { %v2171_v59 = vpop.permute.xlu1 %2170 }
0x1822   :  { %v2181_v61 = vsel %vm6742_vm12, %v2171_v59, %v2175_v43 }
0x1825   :  { %v2159_v45 = vpop.permute.xlu1 %2158 }
0x1826   :  { %2161 = vst.msk [vmem:[#allocation2 + $0x1] sm:$0x40] %vm1380_vm10, %v2159_v45  ;;  %vm6745_vm10 = vmmov %vm6742_vm12 }
0x1827   :  { %2167 = vst.msk [vmem:[#allocation2 + $0x8] sm:$0x80] %vm1388_vm8, %v2159_v45  ;;  %vm6746_vm8 = vmmov %vm6745_vm10 }
0x1828   :  { %vm6748_vm0 = vmmov %vm6746_vm8 }
0x1829   :  { %v2179_v46 = vpop.permute.xlu1 %2178  ;;  %vm6749_vm1 = vmmov %vm6748_vm0 }
0x182a   :  { %v6243_v28 = vsel %vm6743_vm13, %v2181_v61, %v2179_v46  ;;  %vm6751_vm4 = vmmov %vm6748_vm0 }
0x182b   :  { %v2291_v26 = vrot.slane %v6243_v28, 6  ;;  %vm6752_vm5 = vmmov %vm6748_vm0 }
0x182c   :  { %vm6753_vm6 = vmmov %vm6748_vm0 }
0x182d   :  { %4605 = vmatmul.mubr.msk.f32.vlgmr.msra.gmra.mrb[12].mxu1 %vm6744_vm14, %v2291_v26  ;;  %v6249_v12 = vld [vmem:[#allocation2] sm:$0xff]  ;;  %vm6754_vm9 = vmmov %vm6748_vm0 }
0x182e   :  { %v6251_v47 = vld [vmem:[#allocation2 + $0x8] sm:$0xff]  ;;  %4593 = vmatprep.mubr.msk.f32.mxu0 %vm6745_vm10, %v6249_v12  ;;  %4905 = vmatpush3.bf16.msra.mxu1 %v6175_v49  ;;  %vm6755_vm11 = vmmov %vm6748_vm0 }
0x182f   :  { %4594 = vmatmul.mubr.msk.f32.vlgmr.msra.gmra.mrb[12].mxu0 %vm6746_vm8, %v6251_v47  ;;  %4906 = vmatprep.subr.bf16.mxu1 %v5468_v18  ;;  %vm6756_vm12 = vmmov %vm6748_vm0 }
0x1830   :  { %4615 = vmatprep.mubr.msk.f32.mxu0 %vm6747_vm15, %v5461_v24  ;;  %4626 = vmatprep.mubr.msk.f32.mxu1 %vm6747_vm15, %v5461_v24  ;;  %vm6757_vm13 = vmmov %vm6748_vm0 }
0x1831   :  { %vm6758_vm14 = vmmov %vm6748_vm0 }
0x1832   :  { %4908 = vmatpush3.bf16.msra.mxu1 %v6193_v4  ;;  %vm6759_vm10 = vmmov %vm6748_vm0 }
0x1833   :  { %4915 = vmatprep.subr.bf16.mxu1 %v5468_v18  ;;  %vm6760_vm8 = vmmov %vm6748_vm0 }
0x1900   :  { %v6268_v55 = vpop.f32.mrb[12].mxu1 }
0x1901   :  { %v2380_v53 = vrot.slane %v6268_v55, %v6266_v51  ;;  %v4606_v15 = vpop.f32.mrb[13].mxu1 }
0x1902   :  { %v4595_v17 = vpop.f32.mrb[12].mxu0 }
0x1903   :  { %v2381_v60 = vcombine.high %v2380_v53, %v2380_v53  ;;  %v2388_v54 = vrot.slane %v2380_v53, %v6266_v51  ;;  %v2268_v56 = vpop.f32.mrb[13].mxu0  ;;  %v6281_v30 = vadd.f32 %v4595_v17, %v4434_v36 }
0x1904   :  { %v6276_v14 = vadd.f32 %v4434_v36, %v2268_v56  ;;  %v4438_v56 = vld [vmem:[%s6702_s16] ss:$0 sm:$0xff] }
0x1905   :  { %v2395_v6 = vrot.slane %v2381_v60, %v6266_v51  ;;  %v2399_v23 = vrot.slane %v2388_v54, %v5782_v0 }
0x1907   :  { %v2403_v25 = vrot.slane %v2395_v6, %v5782_v0  ;;  %v2406_v31 = vadd.f32 %v2399_v23, %v6276_v14  ;;  %v2281_v6 = vld [vmem:[%s6700_s14] sm:$0xff]  ;;  %v2282_v23 = vld [vmem:[%s6700_s14 + $0x8] sm:$0xff] }
0x1909   :  { %5140 = vtanh.f32 %v2406_v31  ;;  %v2407_v34 = vadd.f32 %v2403_v25, %v6281_v30  ;;  %v6331_v25 = vpack.c.bf16 %v2282_v23, %v2281_v6  ;;  %v2283_v31 = vld [vmem:[%s6700_s14 + $0x10] sm:$0xff] }
0x190b   :  { %5142 = vtanh.f32 %v2407_v34  ;;  %4899 = vmatpush3.bf16.msra.mxu0 %v6331_v25  ;;  %v2284_v34 = vld [vmem:[%s6700_s14 + $0x18] sm:$0xff] }
0x190c   :  { %4900 = vmatprep.subr.bf16.mxu0 %v5468_v18 }
0x1913   :  { %v5141_v2 = vpop.eup %5140 }
0x1914   :  { %v2416_v5 = vmul.f32 %v5141_v2, %v6288_v57  ;;  %v6341_v2 = vpack.c.bf16 %v2284_v34, %v2283_v31 }
0x1915   :  { %v5143_v7 = vpop.eup %5142 }
0x1916   :  { %v2418_v3 = vsel %vm6748_vm0, %v2416_v5, 0.0  ;;  %v2417_v8 = vmul.f32 %v5143_v7, %v6288_v57  ;;  %4902 = vmatpush3.bf16.msra.mxu0 %v6341_v2 }
0x1917   :  { %2419 = vadd.xlane.f32.xlu0 %v2418_v3  ;;  %4909 = vmatprep.subr.bf16.mxu0 %v5468_v18 }
0x1918   :  { %v2421_v10 = vsel %vm6749_vm1, %v2417_v8, 0.0  ;;  %vm6761_vm1 = vmmov %vm6748_vm0 }
0x1919   :  { %2422 = vadd.xlane.f32.xlu1 %v2421_v10 }
0x192d   :  { %2430 = vperm.xlu0 %4994, %v4440_v9  }
0x19a4   :  { %v2420_v13 = vpop.xlane.xlu0 %2419 }
0x19a6   :  { %v2423_v19 = vpop.xlane.xlu1 %2422 }
0x19ac   :  { %v6298_v20 = vpop.permute.xlu0 %2430 }
0x19ad   :  { %v2433_v21 = vadd.f32 %v6298_v20, %v2420_v13  ;;  %v2434_v32 = vadd.f32 %v6298_v20, %v2423_v19 }
0x19af   :  { %v2442_v22 = vrot.slane %v2433_v21, %v6296_v16  ;;  %v2446_v35 = vrot.slane %v2434_v32, %v6296_v16 }
0x19b1   :  { %v2448_v37 = vsel %vm2447_vm2, %v2446_v35, %v2442_v22 }
0x19b2   :  { %v2451_v58 = vsel %vm2450_vm3, %v2448_v37, -inf }
0x19b3   :  { %2452 = vmax.xlane.f32.xlu1 %v2451_v58 }
0x19c4   :  { %2477 = vbcast.lane.b32.xlu1 %v4441_v62, 256 }
0x1a40   :  { %v2453_v38 = vpop.xlane.xlu1 %2452 }
0x1a41   :  { %v2458_v39 = vrot.slane %v2453_v38, %v5782_v0  ;;  %v2462_v40 = vrot.slane %v2453_v38, %v5785_v1 }
0x1a43   :  { %v2465_v41 = vsub.f32 %v2433_v21, %v2458_v39  ;;  %v2466_v29 = vsub.f32 %v2434_v32, %v2462_v40 }
0x1a44   :  { %v6311_v52 = vpop.permute.xlu1 %2477 }
0x1a45   :  { %v2467_v63 = vmul.f32 1.442695, %v2465_v41  ;;  %v2469_v42 = vmul.f32 1.442695, %v2466_v29 }
0x1a47   :  { %5144 = vpow2.f32 %v2467_v63 }
0x1a48   :  { %5146 = vpow2.f32 %v2469_v42 }
0x1a51   :  { %v5145_v44 = vpop.eup %5144 }
0x1a52   :  { %v2480_v33 = vmul.f32 %v5145_v44, %v6311_v52  ;;  %v5147_v59 = vpop.eup %5146 }
0x1a53   :  { %v2481_v45 = vmul.f32 %v5147_v59, %v6311_v52 }
0x1a54   :  { %2485 = vperm.xlu0 %4994, %v2480_v33  }
0x1a58   :  { %2488 = vperm.xlu0 %4994, %v2481_v45  }
0x1ad3   :  { %v2486_v43 = vpop.permute.xlu0 %2485 }
0x1ad4   :  { %v2493_v46 = vrot.slane %v2486_v43, %v6296_v16 }
0x1ad7   :  { %v2489_v61 = vpop.permute.xlu0 %2488 }
0x1ad8   :  { %v2497_v50 = vrot.slane %v2489_v61, %v6296_v16 }
0x1ada   :  { %v2498_v48 = vsel %vm2447_vm2, %v2497_v50, %v2493_v46 }
0x1adb   :  { %v2500_v27 = vsel %vm2450_vm3, %v2498_v48, 0.0 }
0x1adc   :  { %2501 = vadd.xlane.f32.xlu1 %v2500_v27 }
0x1b69   :  { %v2502_v53 = vpop.xlane.xlu1 %2501 }
0x1b6a   :  { %5148 = vrcp.f32 %v2502_v53 }
0x1b74   :  { %v5149_v15 = vpop.eup %5148 }
0x1b75   :  { %v2508_v36 = vrot.slane %v5149_v15, %v5782_v0  ;;  %v2512_v60 = vrot.slane %v5149_v15, %v5785_v1 }
0x1b77   :  { %v2515_v17 = vmul.f32 %v2508_v36, %v2480_v33  ;;  %v2516_v54 = vmul.f32 %v2512_v60, %v2481_v45 }
0x1b79   :  { %2519 = vperm.xlu0 %4994, %v2515_v17  }
0x1b7d   :  { %2524 = vperm.xlu0 %4994, %v2516_v54  }
0x1b81   :  { %2369 = vrot.lane.b32.xlu0 %v4438_v56, %s5463_s11 }
0x1bf8   :  { %v2520_v5 = vpop.permute.xlu0 %2519 }
0x1bf9   :  { %v2527_v7 = vmul.f32 %v2520_v5, %v6249_v12 }
0x1bfb   :  { %v2529_v3 = vsel %vm6751_vm4, %v2527_v7, 0.0  ;;  %vm6762_vm4 = vmmov %vm6748_vm0 }
0x1bfc   :  { %v2530_v8 = vrot.slane %v2529_v3, 4  ;;  %v2525_v10 = vpop.permute.xlu0 %2524 }
0x1bfd   :  { %v2528_v9 = vmul.f32 %v2525_v10, %v6251_v47 }
0x1bfe   :  { %v2531_v11 = vadd.f32 %v2530_v8, %v2529_v3 }
0x1bff   :  { %v2536_v13 = vsel %vm6752_vm5, %v2528_v9, 0.0  ;;  %vm6763_vm5 = vmmov %vm6748_vm0 }
0x1c00   :  { %v2532_v19 = vrot.slane %v2531_v11, 2  ;;  %v2537_v21 = vrot.slane %v2536_v13, 4  ;;  %v6349_v32 = vpop.permute.xlu0 %2369 }
0x1c01   :  { %v2372_v22 = vadd.f32 %v6349_v32, %v6268_v55  ;;  %v6366_v55 = vld [vmem:[%s6701_s15] ss:$0 sm:$0xff] }
0x1c02   :  { %v2533_v35 = vadd.f32 %v2532_v19, %v2531_v11  ;;  %v2538_v37 = vadd.f32 %v2537_v21, %v2536_v13 }
0x1c03   :  { %2625 = vrot.lane.b32.xlu0 %v2372_v22, %s5466_s26 }
0x1c04   :  { %v2539_v58 = vrot.slane %v2538_v37, 2  ;;  %v2534_v62 = vrot.slane %v2533_v35, 1 }
0x1c06   :  { %v2540_v38 = vadd.f32 %v2539_v58, %v2538_v37  ;;  %v2535_v40 = vadd.f32 %v2534_v62, %v2533_v35 }
0x1c07   :  { %2635 = vrot.lane.b32.xlu0 %v2372_v22, %s5463_s11 }
0x1c08   :  { %v2541_v39 = vrot.slane %v2540_v38, 1 }
0x1c0a   :  { %v2542_v41 = vadd.f32 %v2541_v39, %v2540_v38 }
0x1c0c   :  { %v2551_v29 = vsel %vm2447_vm2, %v2542_v41, %v2535_v40 }
0x1c0d   :  { %4616 = vmatmul.mubr.msk.f32.vlgmr.msra.gmra.mrb[14].mxu0 %vm6753_vm6, %v2551_v29  ;;  %vm6764_vm6 = vmmov %vm6748_vm0 }
0x1c0e   :  { %4911 = vmatpush3.bf16.msra.mxu0 %v6331_v25  ;;  %4637 = vmatprep.mubr.msk.f32.mxu0 %vm6747_vm15, %v5461_v24 }
0x1c0f   :  { %4912 = vmatprep.subr.bf16.mxu0 %v5468_v18 }
0x1c12   :  { %4914 = vmatpush3.bf16.msra.mxu0 %v6341_v2 }
0x1c13   :  { %4921 = vmatprep.subr.bf16.mxu0 %v5468_v18 }
0x1c75   :  { %v2626_v33 = vpop.permute.xlu0 %2625 }
0x1c79   :  { %v2636_v50 = vpop.permute.xlu0 %2635 }
0x1ce0   :  { %v2620_v63 = vpop.f32.mrb[14].mxu0 }
0x1ce1   :  { %v2621_v42 = vadd.f32 %v6366_v55, %v2620_v63  ;;  %v4617_v44 = vpop.f32.mrb[15].mxu0 }
0x1ce3   :  { %v2628_v59 = vadd.f32 %v2626_v33, %v2621_v42 }
0x1ce5   :  { %v4444_v45 = vmul.f32 -1.442695, %v2628_v59 }
0x1ce7   :  { %5150 = vpow2.f32 %v4444_v45 }
0x1cf1   :  { %v5151_v43 = vpop.eup %5150 }
0x1cf2   :  { %v2632_v61 = vadd.f32 1.0, %v5151_v43 }
0x1cf4   :  { %5152 = vrcp.f32 %v2632_v61 }
0x1cfe   :  { %v5153_v46 = vpop.eup %5152 }
0x1cff   :  { %v2638_v48 = vmul.f32 %v5153_v46, %v2636_v50  ;;  %v2645_v17 = vsub.f32 1.0, %v5153_v46 }
0x1d01   :  { %2640 = vrot.lane.b32.xlu0 %v2638_v48, %s5462_s13 }
0x1d73   :  { %v2641_v27 = vpop.permute.xlu0 %2640 }
0x1d74   :  { %v2643_v53 = vadd.f32 %v2641_v27, %v2621_v42 }
0x1d76   :  { %5154 = vtanh.f32 %v2643_v53 }
0x1d80   :  { %v5155_v15 = vpop.eup %5154 }
0x1d81   :  { %2647 = vrot.lane.b32.xlu0 %v5155_v15, %s5466_s26 }
0x1d85   :  { %2651 = vrot.lane.b32.xlu0 %v2291_v26, %s5463_s11 }
0x1df3   :  { %v2648_v36 = vpop.permute.xlu0 %2647 }
0x1df4   :  { %v2650_v54 = vmul.f32 %v2648_v36, %v2645_v17 }
0x1df7   :  { %v2652_v60 = vpop.permute.xlu0 %2651 }
0x1df8   :  { %v2654_v56 = vmul.f32 %v5153_v46, %v2652_v60 }
0x1dfa   :  { %v6374_v6 = vadd.f32 %v2654_v56, %v2650_v54 }
0x1dfc   :  { %2657 = vrot.lane.b32.xlu0 %v6374_v6, %s5466_s26 }
0x1e6e   :  { %v2658_v23 = vpop.permute.xlu0 %2657 }
0x1e6f   :  { %2661 = vst.msk [vmem:[#allocation3] sm:$0x3] %vm2660_vm7, %v2658_v23  ;;  %4627 = vmatmul.mubr.msk.f32.vlgmr.msra.gmra.mrb[14].mxu1 %vm6754_vm9, %v2658_v23  ;;  %vm6765_vm9 = vmmov %vm6748_vm0 }
0x1e70   :  { %4917 = vmatpush3.bf16.msra.mxu1 %v6175_v49  ;;  %4648 = vmatprep.mubr.msk.f32.mxu1 %vm6747_vm15, %v5461_v24 }
0x1e71   :  { %4918 = vmatprep.subr.bf16.mxu1 %v5468_v18 }
0x1e74   :  { %4920 = vmatpush3.bf16.msra.mxu1 %v6193_v4 }
0x1e75   :  { %4927 = vmatprep.subr.bf16.mxu1 %v5468_v18 }
0x1f42   :  { %v2730_v28 = vpop.f32.mrb[14].mxu1 }
0x1f43   :  { %v2742_v26 = vrot.slane %v2730_v28, %v6266_v51  ;;  %v4628_v31 = vpop.f32.mrb[15].mxu1 }
0x1f45   :  { %v2743_v34 = vcombine.high %v2742_v26, %v2742_v26  ;;  %v2750_v5 = vrot.slane %v2742_v26, %v6266_v51 }
0x1f47   :  { %v2757_v7 = vrot.slane %v2743_v34, %v6266_v51  ;;  %v2761_v3 = vrot.slane %v2750_v5, %v5782_v0  ;;  %v2734_v5 = vadd.f32 %v2730_v28, %v6349_v32 }
0x1f49   :  { %v2765_v8 = vrot.slane %v2757_v7, %v5782_v0  ;;  %v2768_v10 = vadd.f32 %v2761_v3, %v6276_v14 }
0x1f4b   :  { %v2769_v9 = vadd.f32 %v2765_v8, %v6281_v30  ;;  %5156 = vtanh.f32 %v2768_v10 }
0x1f4d   :  { %5158 = vtanh.f32 %v2769_v9 }
0x1f55   :  { %v5157_v11 = vpop.eup %5156 }
0x1f56   :  { %v2772_v13 = vmul.f32 %v5157_v11, %v6288_v57 }
0x1f57   :  { %v5159_v19 = vpop.eup %5158 }
0x1f58   :  { %v2774_v21 = vsel %vm6755_vm11, %v2772_v13, 0.0  ;;  %v2773_v22 = vmul.f32 %v5159_v19, %v6288_v57  ;;  %vm6766_vm11 = vmmov %vm6748_vm0 }
0x1f59   :  { %2775 = vadd.xlane.f32.xlu1 %v2774_v21 }
0x1f5a   :  { %v2777_v35 = vsel %vm6756_vm12, %v2773_v22, 0.0  ;;  %vm6767_vm12 = vmmov %vm6748_vm0 }
0x1f5b   :  { %2778 = vadd.xlane.f32.xlu0 %v2777_v35 }
0x1fe6   :  { %v2776_v37 = vpop.xlane.xlu1 %2775 }
0x1fe7   :  { %v2780_v58 = vadd.f32 %v2776_v37, %v6298_v20 }
0x1fe8   :  { %v2779_v62 = vpop.xlane.xlu0 %2778 }
0x1fe9   :  { %v2781_v38 = vadd.f32 %v2779_v62, %v6298_v20  ;;  %v2787_v39 = vrot.slane %v2780_v58, %v6296_v16 }
0x1feb   :  { %v2791_v40 = vrot.slane %v2781_v38, %v6296_v16 }
0x1fed   :  { %v2792_v41 = vsel %vm2447_vm2, %v2791_v40, %v2787_v39 }
0x1fee   :  { %v2794_v29 = vsel %vm2450_vm3, %v2792_v41, -inf }
0x1fef   :  { %2795 = vmax.xlane.f32.xlu1 %v2794_v29 }
0x207c   :  { %v2796_v63 = vpop.xlane.xlu1 %2795 }
0x207d   :  { %v2801_v42 = vrot.slane %v2796_v63, %v5782_v0  ;;  %v2805_v44 = vrot.slane %v2796_v63, %v5785_v1 }
0x207f   :  { %v2808_v33 = vsub.f32 %v2780_v58, %v2801_v42  ;;  %v2809_v59 = vsub.f32 %v2781_v38, %v2805_v44 }
0x2081   :  { %v2810_v45 = vmul.f32 1.442695, %v2808_v33  ;;  %v2812_v43 = vmul.f32 1.442695, %v2809_v59 }
0x2083   :  { %5160 = vpow2.f32 %v2810_v45 }
0x2084   :  { %5162 = vpow2.f32 %v2812_v43 }
0x208d   :  { %v5161_v61 = vpop.eup %5160 }
0x208e   :  { %v2814_v46 = vmul.f32 %v5161_v61, %v6311_v52  ;;  %v5163_v50 = vpop.eup %5162 }
0x208f   :  { %v2815_v48 = vmul.f32 %v5163_v50, %v6311_v52 }
0x2090   :  { %2819 = vperm.xlu1 %4995, %v2814_v46  }
0x2094   :  { %2822 = vperm.xlu1 %4995, %v2815_v48  }
0x210f   :  { %v2820_v27 = vpop.permute.xlu1 %2819 }
0x2110   :  { %v2827_v15 = vrot.slane %v2820_v27, %v6296_v16 }
0x2113   :  { %v2823_v53 = vpop.permute.xlu1 %2822 }
0x2114   :  { %v2831_v36 = vrot.slane %v2823_v53, %v6296_v16 }
0x2116   :  { %v2832_v17 = vsel %vm2447_vm2, %v2831_v36, %v2827_v15 }
0x2117   :  { %v2834_v60 = vsel %vm2450_vm3, %v2832_v17, 0.0 }
0x2118   :  { %2835 = vadd.xlane.f32.xlu1 %v2834_v60 }
0x21a5   :  { %v2836_v54 = vpop.xlane.xlu1 %2835 }
0x21a6   :  { %5164 = vrcp.f32 %v2836_v54 }
0x21b0   :  { %v5165_v56 = vpop.eup %5164 }
0x21b1   :  { %v2842_v23 = vrot.slane %v5165_v56, %v5782_v0  ;;  %v2846_v31 = vrot.slane %v5165_v56, %v5785_v1 }
0x21b3   :  { %v2849_v26 = vmul.f32 %v2842_v23, %v2814_v46  ;;  %v2850_v34 = vmul.f32 %v2846_v31, %v2815_v48 }
0x21b5   :  { %2853 = vperm.xlu0 %4994, %v2849_v26  }
0x21b9   :  { %2858 = vperm.xlu0 %4994, %v2850_v34  }
0x21bd   :  { %2953 = vrot.lane.b32.xlu0 %v2734_v5, %s5466_s26 }
0x21c1   :  { %2963 = vrot.lane.b32.xlu0 %v2734_v5, %s5463_s11 }
0x2234   :  { %v2854_v7 = vpop.permute.xlu0 %2853 }
0x2235   :  { %v2861_v3 = vmul.f32 %v2854_v7, %v6249_v12 }
0x2237   :  { %v2863_v8 = vsel %vm6757_vm13, %v2861_v3, 0.0  ;;  %vm6768_vm13 = vmmov %vm6748_vm0 }
0x2238   :  { %v2864_v10 = vrot.slane %v2863_v8, 4  ;;  %v2859_v9 = vpop.permute.xlu0 %2858 }
0x2239   :  { %v2862_v11 = vmul.f32 %v2859_v9, %v6251_v47 }
0x223a   :  { %v2865_v13 = vadd.f32 %v2864_v10, %v2863_v8 }
0x223b   :  { %v2870_v19 = vsel %vm6758_vm14, %v2862_v11, 0.0  ;;  %vm6769_vm14 = vmmov %vm6748_vm0 }
0x223c   :  { %v2866_v21 = vrot.slane %v2865_v13, 2  ;;  %v2871_v22 = vrot.slane %v2870_v19, 4  ;;  %v2954_v44 = vpop.permute.xlu0 %2953 }
0x223e   :  { %v2867_v35 = vadd.f32 %v2866_v21, %v2865_v13  ;;  %v2872_v28 = vadd.f32 %v2871_v22, %v2870_v19 }
0x2240   :  { %v2873_v37 = vrot.slane %v2872_v28, 2  ;;  %v2868_v58 = vrot.slane %v2867_v35, 1  ;;  %v2964_v46 = vpop.permute.xlu0 %2963 }
0x2242   :  { %v2874_v62 = vadd.f32 %v2873_v37, %v2872_v28  ;;  %v2869_v39 = vadd.f32 %v2868_v58, %v2867_v35 }
0x2244   :  { %v2875_v38 = vrot.slane %v2874_v62, 1 }
0x2246   :  { %v2876_v40 = vadd.f32 %v2875_v38, %v2874_v62 }
0x2248   :  { %v2879_v41 = vsel %vm2447_vm2, %v2876_v40, %v2869_v39 }
0x2249   :  { %4638 = vmatmul.mubr.msk.f32.vlgmr.msra.gmra.mrb[16].mxu0 %vm6759_vm10, %v2879_v41  ;;  %vm6770_vm10 = vmmov %vm6748_vm0 }
0x224a   :  { %4923 = vmatpush3.bf16.msra.mxu0 %v6331_v25  ;;  %4659 = vmatprep.mubr.msk.f32.mxu0 %vm6747_vm15, %v5461_v24 }
0x224b   :  { %4924 = vmatprep.subr.bf16.mxu0 %v5468_v18 }
0x224e   :  { %4926 = vmatpush3.bf16.msra.mxu0 %v6341_v2 }
0x224f   :  { %4933 = vmatprep.subr.bf16.mxu0 %v5468_v18 }
0x231c   :  { %v2948_v29 = vpop.f32.mrb[16].mxu0 }
0x231d   :  { %v2949_v63 = vadd.f32 %v6366_v55, %v2948_v29  ;;  %v4639_v42 = vpop.f32.mrb[17].mxu0 }
0x231f   :  { %v2956_v33 = vadd.f32 %v2954_v44, %v2949_v63 }
0x2321   :  { %v4447_v59 = vmul.f32 -1.442695, %v2956_v33 }
0x2323   :  { %5166 = vpow2.f32 %v4447_v59 }
0x232d   :  { %v5167_v45 = vpop.eup %5166 }
0x232e   :  { %v2960_v43 = vadd.f32 1.0, %v5167_v45 }
0x2330   :  { %5168 = vrcp.f32 %v2960_v43 }
0x233a   :  { %v5169_v61 = vpop.eup %5168 }
0x233b   :  { %v2966_v50 = vmul.f32 %v5169_v61, %v2964_v46  ;;  %v2973_v15 = vsub.f32 1.0, %v5169_v61  ;;  %v2979_v17 = vmul.f32 %v5169_v61, %v6374_v6 }
0x233d   :  { %2968 = vrot.lane.b32.xlu1 %v2966_v50, %s5462_s13 }
0x23af   :  { %v2969_v48 = vpop.permute.xlu1 %2968 }
0x23b0   :  { %v2971_v27 = vadd.f32 %v2969_v48, %v2949_v63 }
0x23b2   :  { %5170 = vtanh.f32 %v2971_v27 }
0x23bc   :  { %v5171_v53 = vpop.eup %5170 }
0x23bd   :  { %2975 = vrot.lane.b32.xlu0 %v5171_v53, %s5466_s26 }
0x242f   :  { %v2976_v36 = vpop.permute.xlu0 %2975 }
0x2430   :  { %v2978_v60 = vmul.f32 %v2976_v36, %v2973_v15 }
0x2432   :  { %v6432_v54 = vadd.f32 %v2979_v17, %v2978_v60 }
0x2434   :  { %2982 = vrot.lane.b32.xlu0 %v6432_v54, %s5466_s26 }
0x24a6   :  { %v2983_v56 = vpop.permute.xlu0 %2982 }
0x24a7   :  { %2985 = vst.msk [vmem:[#allocation3 + $0x2] sm:$0x3] %vm2660_vm7, %v2983_v56  ;;  %4649 = vmatmul.mubr.msk.f32.vlgmr.msra.gmra.mrb[16].mxu1 %vm6760_vm8, %v2983_v56  ;;  %vm6771_vm8 = vmmov %vm6748_vm0 }
0x24a8   :  { %4929 = vmatpush3.bf16.msra.mxu1 %v6175_v49  ;;  %4670 = vmatprep.mubr.msk.f32.mxu1 %vm6747_vm15, %v5461_v24 }
0x24a9   :  { %4930 = vmatprep.subr.bf16.mxu1 %v5468_v18 }
0x24ac   :  { %4932 = vmatpush3.bf16.msra.mxu1 %v6193_v4 }
0x24ad   :  { %4939 = vmatprep.subr.bf16.mxu1 %v5468_v18 }
0x257a   :  { %v3054_v6 = vpop.f32.mrb[16].mxu1 }
0x257b   :  { %v3066_v23 = vrot.slane %v3054_v6, %v6266_v51  ;;  %v4650_v26 = vpop.f32.mrb[17].mxu1 }
0x257d   :  { %v3067_v31 = vcombine.high %v3066_v23, %v3066_v23  ;;  %v3074_v34 = vrot.slane %v3066_v23, %v6266_v51 }
0x257f   :  { %v3081_v5 = vrot.slane %v3067_v31, %v6266_v51  ;;  %v3085_v7 = vrot.slane %v3074_v34, %v5782_v0  ;;  %v3058_v34 = vadd.f32 %v3054_v6, %v6349_v32 }
0x2581   :  { %v3089_v3 = vrot.slane %v3081_v5, %v5782_v0  ;;  %v3092_v8 = vadd.f32 %v3085_v7, %v6276_v14 }
0x2583   :  { %v3093_v10 = vadd.f32 %v3089_v3, %v6281_v30  ;;  %5172 = vtanh.f32 %v3092_v8 }
0x2585   :  { %5174 = vtanh.f32 %v3093_v10 }
0x258d   :  { %v5173_v9 = vpop.eup %5172 }
0x258e   :  { %v3096_v11 = vmul.f32 %v5173_v9, %v6288_v57 }
0x258f   :  { %v5175_v13 = vpop.eup %5174 }
0x2590   :  { %v3098_v19 = vsel %vm6748_vm0, %v3096_v11, 0.0  ;;  %v3097_v21 = vmul.f32 %v5175_v13, %v6288_v57 }
0x2591   :  { %3099 = vadd.xlane.f32.xlu0 %v3098_v19 }
0x2592   :  { %v3101_v22 = vsel %vm6761_vm1, %v3097_v21, 0.0  ;;  %vm6772_vm1 = vmmov %vm6748_vm0 }
0x2593   :  { %3102 = vadd.xlane.f32.xlu1 %v3101_v22 }
0x261e   :  { %v3100_v35 = vpop.xlane.xlu0 %3099 }
0x261f   :  { %v3104_v28 = vadd.f32 %v3100_v35, %v6298_v20 }
0x2620   :  { %v3103_v37 = vpop.xlane.xlu1 %3102 }
0x2621   :  { %v3105_v58 = vadd.f32 %v3103_v37, %v6298_v20  ;;  %v3111_v62 = vrot.slane %v3104_v28, %v6296_v16 }
0x2623   :  { %v3115_v38 = vrot.slane %v3105_v58, %v6296_v16 }
0x2625   :  { %v3116_v39 = vsel %vm2447_vm2, %v3115_v38, %v3111_v62 }
0x2626   :  { %v3118_v40 = vsel %vm2450_vm3, %v3116_v39, -inf }
0x2627   :  { %3119 = vmax.xlane.f32.xlu0 %v3118_v40 }
0x26b4   :  { %v3120_v41 = vpop.xlane.xlu0 %3119 }
0x26b5   :  { %v3125_v29 = vrot.slane %v3120_v41, %v5782_v0  ;;  %v3129_v63 = vrot.slane %v3120_v41, %v5785_v1 }
0x26b7   :  { %v3132_v42 = vsub.f32 %v3104_v28, %v3125_v29  ;;  %v3133_v44 = vsub.f32 %v3105_v58, %v3129_v63 }
0x26b9   :  { %v3134_v33 = vmul.f32 1.442695, %v3132_v42  ;;  %v3136_v59 = vmul.f32 1.442695, %v3133_v44 }
0x26bb   :  { %5176 = vpow2.f32 %v3134_v33 }
0x26bc   :  { %5178 = vpow2.f32 %v3136_v59 }
0x26c5   :  { %v5177_v45 = vpop.eup %5176 }
0x26c6   :  { %v5179_v43 = vpop.eup %5178  ;;  %v3138_v61 = vmul.f32 %v5177_v45, %v6311_v52 }
0x26c7   :  { %v3139_v46 = vmul.f32 %v5179_v43, %v6311_v52 }
0x26c8   :  { %3143 = vperm.xlu0 %4994, %v3138_v61  }
0x26c9   :  { %3146 = vperm.xlu1 %4995, %v3139_v46  }
0x2747   :  { %v3144_v50 = vpop.permute.xlu0 %3143 }
0x2748   :  { %v3147_v48 = vpop.permute.xlu1 %3146  ;;  %v3151_v27 = vrot.slane %v3144_v50, %v6296_v16 }
0x2749   :  { %v3155_v53 = vrot.slane %v3147_v48, %v6296_v16 }
0x274b   :  { %v3156_v15 = vsel %vm2447_vm2, %v3155_v53, %v3151_v27 }
0x274c   :  { %v3158_v36 = vsel %vm2450_vm3, %v3156_v15, 0.0 }
0x274d   :  { %3159 = vadd.xlane.f32.xlu0 %v3158_v36 }
0x27da   :  { %v3160_v17 = vpop.xlane.xlu0 %3159 }
0x27db   :  { %5180 = vrcp.f32 %v3160_v17 }
0x27e5   :  { %v5181_v60 = vpop.eup %5180 }
0x27e6   :  { %v3166_v56 = vrot.slane %v5181_v60, %v5782_v0  ;;  %v3170_v26 = vrot.slane %v5181_v60, %v5785_v1 }
0x27e8   :  { %v3173_v23 = vmul.f32 %v3166_v56, %v3138_v61  ;;  %v3174_v31 = vmul.f32 %v3170_v26, %v3139_v46 }
0x27ea   :  { %3177 = vperm.xlu1 %4995, %v3173_v23  }
0x27ee   :  { %3182 = vperm.xlu1 %4995, %v3174_v31  }
0x27f2   :  { %3277 = vrot.lane.b32.xlu1 %v3058_v34, %s5466_s26 }
0x27f6   :  { %3287 = vrot.lane.b32.xlu1 %v3058_v34, %s5463_s11 }
0x2869   :  { %v3178_v5 = vpop.permute.xlu1 %3177 }
0x286a   :  { %v3185_v7 = vmul.f32 %v3178_v5, %v6249_v12 }
0x286c   :  { %v3187_v3 = vsel %vm6762_vm4, %v3185_v7, 0.0  ;;  %vm6773_vm4 = vmmov %vm6748_vm0 }
0x286d   :  { %v3188_v8 = vrot.slane %v3187_v3, 4  ;;  %v3183_v10 = vpop.permute.xlu1 %3182 }
0x286e   :  { %v3186_v9 = vmul.f32 %v3183_v10, %v6251_v47 }
0x286f   :  { %v3189_v11 = vadd.f32 %v3188_v8, %v3187_v3 }
0x2870   :  { %v3194_v13 = vsel %vm6763_vm5, %v3186_v9, 0.0  ;;  %vm6774_vm5 = vmmov %vm6748_vm0 }
0x2871   :  { %v3190_v19 = vrot.slane %v3189_v11, 2  ;;  %v3195_v21 = vrot.slane %v3194_v13, 4  ;;  %v3278_v63 = vpop.permute.xlu1 %3277 }
0x2873   :  { %v3191_v22 = vadd.f32 %v3190_v19, %v3189_v11  ;;  %v3196_v6 = vadd.f32 %v3195_v21, %v3194_v13 }
0x2875   :  { %v3197_v35 = vrot.slane %v3196_v6, 2  ;;  %v3192_v28 = vrot.slane %v3191_v22, 1  ;;  %v3288_v43 = vpop.permute.xlu1 %3287 }
0x2877   :  { %v3198_v37 = vadd.f32 %v3197_v35, %v3196_v6  ;;  %v3193_v62 = vadd.f32 %v3192_v28, %v3191_v22 }
0x2879   :  { %v3199_v58 = vrot.slane %v3198_v37, 1 }
0x287b   :  { %v3200_v38 = vadd.f32 %v3199_v58, %v3198_v37 }
0x287d   :  { %v3203_v39 = vsel %vm2447_vm2, %v3200_v38, %v3193_v62 }
0x287e   :  { %4660 = vmatmul.mubr.msk.f32.vlgmr.msra.gmra.mrb[18].mxu0 %vm6764_vm6, %v3203_v39  ;;  %vm6775_vm6 = vmmov %vm6748_vm0 }
0x287f   :  { %4935 = vmatpush3.bf16.msra.mxu0 %v6331_v25  ;;  %4681 = vmatprep.mubr.msk.f32.mxu0 %vm6747_vm15, %v5461_v24 }
0x2880   :  { %4936 = vmatprep.subr.bf16.mxu0 %v5468_v18 }
0x2883   :  { %4938 = vmatpush3.bf16.msra.mxu0 %v6341_v2 }
0x2884   :  { %4945 = vmatprep.subr.bf16.mxu0 %v5468_v18 }
0x2951   :  { %v3272_v40 = vpop.f32.mrb[18].mxu0 }
0x2952   :  { %v3273_v41 = vadd.f32 %v6366_v55, %v3272_v40  ;;  %v4661_v29 = vpop.f32.mrb[19].mxu0 }
0x2954   :  { %v3280_v42 = vadd.f32 %v3278_v63, %v3273_v41 }
0x2956   :  { %v4450_v44 = vmul.f32 -1.442695, %v3280_v42 }
0x2958   :  { %5182 = vpow2.f32 %v4450_v44 }
0x2962   :  { %v5183_v33 = vpop.eup %5182 }
0x2963   :  { %v3284_v59 = vadd.f32 1.0, %v5183_v33 }
0x2965   :  { %5184 = vrcp.f32 %v3284_v59 }
0x296f   :  { %v5185_v45 = vpop.eup %5184 }
0x2970   :  { %v3290_v61 = vmul.f32 %v5185_v45, %v3288_v43  ;;  %v3297_v27 = vsub.f32 1.0, %v5185_v45  ;;  %v3303_v15 = vmul.f32 %v5185_v45, %v6432_v54 }
0x2972   :  { %3292 = vrot.lane.b32.xlu1 %v3290_v61, %s5462_s13 }
0x29e4   :  { %v3293_v46 = vpop.permute.xlu1 %3292 }
0x29e5   :  { %v3295_v50 = vadd.f32 %v3293_v46, %v3273_v41 }
0x29e7   :  { %5186 = vtanh.f32 %v3295_v50 }
0x29f1   :  { %v5187_v48 = vpop.eup %5186 }
0x29f2   :  { %3299 = vrot.lane.b32.xlu1 %v5187_v48, %s5466_s26 }
0x2a64   :  { %v3300_v53 = vpop.permute.xlu1 %3299 }
0x2a65   :  { %v3302_v36 = vmul.f32 %v3300_v53, %v3297_v27 }
0x2a67   :  { %v6490_v17 = vadd.f32 %v3303_v15, %v3302_v36 }
0x2a69   :  { %3306 = vrot.lane.b32.xlu1 %v6490_v17, %s5466_s26 }
0x2adb   :  { %v3307_v60 = vpop.permute.xlu1 %3306 }
0x2adc   :  { %3309 = vst.msk [vmem:[#allocation3 + $0x4] sm:$0x3] %vm2660_vm7, %v3307_v60  ;;  %4671 = vmatmul.mubr.msk.f32.vlgmr.msra.gmra.mrb[18].mxu1 %vm6765_vm9, %v3307_v60  ;;  %vm6777_vm9 = vmmov %vm6748_vm0 }
0x2add   :  { %4941 = vmatpush3.bf16.msra.mxu1 %v6175_v49  ;;  %4692 = vmatprep.mubr.msk.f32.mxu1 %vm6747_vm15, %v5461_v24 }
0x2ade   :  { %4942 = vmatprep.subr.bf16.mxu1 %v5468_v18 }
0x2ae1   :  { %4944 = vmatpush3.bf16.msra.mxu1 %v6193_v4 }
0x2ae2   :  { %4951 = vmatprep.subr.bf16.mxu1 %v5468_v18 }
0x2baf   :  { %v3378_v54 = vpop.f32.mrb[18].mxu1 }
0x2bb0   :  { %v3390_v56 = vrot.slane %v3378_v54, %v6266_v51  ;;  %v4672_v23 = vpop.f32.mrb[19].mxu1 }
0x2bb2   :  { %v3391_v26 = vcombine.high %v3390_v56, %v3390_v56  ;;  %v3398_v31 = vrot.slane %v3390_v56, %v6266_v51 }
0x2bb4   :  { %v3405_v34 = vrot.slane %v3391_v26, %v6266_v51  ;;  %v3409_v5 = vrot.slane %v3398_v31, %v5782_v0  ;;  %v3382_v26 = vadd.f32 %v3378_v54, %v6349_v32 }
0x2bb6   :  { %v3413_v7 = vrot.slane %v3405_v34, %v5782_v0  ;;  %v3416_v3 = vadd.f32 %v3409_v5, %v6276_v14 }
0x2bb8   :  { %v3417_v8 = vadd.f32 %v3413_v7, %v6281_v30  ;;  %5188 = vtanh.f32 %v3416_v3 }
0x2bba   :  { %5190 = vtanh.f32 %v3417_v8 }
0x2bc2   :  { %v5189_v10 = vpop.eup %5188 }
0x2bc3   :  { %v3420_v9 = vmul.f32 %v5189_v10, %v6288_v57 }
0x2bc4   :  { %v5191_v11 = vpop.eup %5190 }
0x2bc5   :  { %v3422_v13 = vsel %vm6766_vm11, %v3420_v9, 0.0  ;;  %v3421_v19 = vmul.f32 %v5191_v11, %v6288_v57  ;;  %vm6778_vm11 = vmmov %vm6748_vm0 }
0x2bc6   :  { %3423 = vadd.xlane.f32.xlu1 %v3422_v13 }
0x2bc7   :  { %v3425_v21 = vsel %vm6767_vm12, %v3421_v19, 0.0  ;;  %vm6779_vm12 = vmmov %vm6748_vm0 }
0x2bc8   :  { %3426 = vadd.xlane.f32.xlu0 %v3425_v21 }
0x2c53   :  { %v3424_v22 = vpop.xlane.xlu1 %3423 }
0x2c54   :  { %v3428_v6 = vadd.f32 %v3424_v22, %v6298_v20 }
0x2c55   :  { %v3427_v35 = vpop.xlane.xlu0 %3426 }
0x2c56   :  { %v3429_v28 = vadd.f32 %v3427_v35, %v6298_v20  ;;  %v3435_v37 = vrot.slane %v3428_v6, %v6296_v16 }
0x2c58   :  { %v3439_v58 = vrot.slane %v3429_v28, %v6296_v16 }
0x2c5a   :  { %v3440_v62 = vsel %vm2447_vm2, %v3439_v58, %v3435_v37 }
0x2c5b   :  { %v3442_v38 = vsel %vm2450_vm3, %v3440_v62, -inf }
0x2c5c   :  { %3443 = vmax.xlane.f32.xlu0 %v3442_v38 }
0x2ce9   :  { %v3444_v57 = vpop.xlane.xlu0 %3443 }
0x2cea   :  { %v3449_v39 = vrot.slane %v3444_v57, %v5782_v0  ;;  %v3453_v40 = vrot.slane %v3444_v57, %v5785_v1 }
0x2cec   :  { %v3456_v41 = vsub.f32 %v3428_v6, %v3449_v39  ;;  %v3457_v29 = vsub.f32 %v3429_v28, %v3453_v40 }
0x2cee   :  { %v3458_v63 = vmul.f32 1.442695, %v3456_v41  ;;  %v3460_v42 = vmul.f32 1.442695, %v3457_v29 }
0x2cf0   :  { %5192 = vpow2.f32 %v3458_v63 }
0x2cf1   :  { %5194 = vpow2.f32 %v3460_v42 }
0x2cfa   :  { %v5193_v44 = vpop.eup %5192 }
0x2cfb   :  { %v3462_v33 = vmul.f32 %v5193_v44, %v6311_v52  ;;  %v5195_v59 = vpop.eup %5194 }
0x2cfc   :  { %v3463_v45 = vmul.f32 %v5195_v59, %v6311_v52 }
0x2cfd   :  { %3467 = vperm.xlu0 %4994, %v3462_v33  }
0x2d01   :  { %3470 = vperm.xlu0 %4994, %v3463_v45  }
0x2d7c   :  { %v3468_v43 = vpop.permute.xlu0 %3467 }
0x2d7d   :  { %v3475_v46 = vrot.slane %v3468_v43, %v6296_v16 }
0x2d80   :  { %v3471_v61 = vpop.permute.xlu0 %3470 }
0x2d81   :  { %v3479_v50 = vrot.slane %v3471_v61, %v6296_v16 }
0x2d83   :  { %v3480_v48 = vsel %vm2447_vm2, %v3479_v50, %v3475_v46 }
0x2d84   :  { %v3482_v27 = vsel %vm2450_vm3, %v3480_v48, 0.0 }
0x2d85   :  { %3483 = vadd.xlane.f32.xlu0 %v3482_v27 }
0x2e12   :  { %v3484_v53 = vpop.xlane.xlu0 %3483 }
0x2e13   :  { %5196 = vrcp.f32 %v3484_v53 }
0x2e1d   :  { %v5197_v15 = vpop.eup %5196 }
0x2e1e   :  { %v3490_v36 = vrot.slane %v5197_v15, %v5782_v0  ;;  %v3494_v56 = vrot.slane %v5197_v15, %v5785_v1 }
0x2e20   :  { %v3497_v60 = vmul.f32 %v3490_v36, %v3462_v33  ;;  %v3498_v23 = vmul.f32 %v3494_v56, %v3463_v45 }
0x2e22   :  { %3501 = vperm.xlu1 %4995, %v3497_v60  }
0x2e26   :  { %3506 = vperm.xlu1 %4995, %v3498_v23  }
0x2e2a   :  { %3601 = vrot.lane.b32.xlu1 %v3382_v26, %s5466_s26 }
0x2e2e   :  { %3611 = vrot.lane.b32.xlu1 %v3382_v26, %s5463_s11 }
0x2ea1   :  { %v3502_v31 = vpop.permute.xlu1 %3501 }
0x2ea2   :  { %v3509_v34 = vmul.f32 %v3502_v31, %v6249_v12  ;;  %v6569_v31 = vld [vmem:[%s6706_s20] ss:$0 sm:$0xff] }
0x2ea4   :  { %v3511_v5 = vsel %vm6768_vm13, %v3509_v34, 0.0  ;;  %vm6781_vm13 = vmmov %vm6748_vm0 }
0x2ea5   :  { %v3512_v7 = vrot.slane %v3511_v5, 4  ;;  %v3507_v3 = vpop.permute.xlu1 %3506 }
0x2ea6   :  { %v3510_v8 = vmul.f32 %v3507_v3, %v6251_v47 }
0x2ea7   :  { %v3513_v10 = vadd.f32 %v3512_v7, %v3511_v5 }
0x2ea8   :  { %v3518_v9 = vsel %vm6769_vm14, %v3510_v8, 0.0  ;;  %vm6782_vm14 = vmmov %vm6748_vm0 }
0x2ea9   :  { %v3514_v11 = vrot.slane %v3513_v10, 2  ;;  %v3519_v13 = vrot.slane %v3518_v9, 4  ;;  %v3602_v38 = vpop.permute.xlu1 %3601 }
0x2eab   :  { %v3515_v19 = vadd.f32 %v3514_v11, %v3513_v10  ;;  %v3520_v54 = vadd.f32 %v3519_v13, %v3518_v9 }
0x2ead   :  { %v3521_v21 = vrot.slane %v3520_v54, 2  ;;  %v3516_v22 = vrot.slane %v3515_v19, 1  ;;  %v3612_v63 = vpop.permute.xlu1 %3611 }
0x2eaf   :  { %v3522_v6 = vadd.f32 %v3521_v21, %v3520_v54  ;;  %v3517_v28 = vadd.f32 %v3516_v22, %v3515_v19 }
0x2eb1   :  { %v3523_v35 = vrot.slane %v3522_v6, 1 }
0x2eb3   :  { %v3524_v37 = vadd.f32 %v3523_v35, %v3522_v6 }
0x2eb5   :  { %v3527_v12 = vsel %vm2447_vm2, %v3524_v37, %v3517_v28 }
0x2eb6   :  { %4682 = vmatmul.mubr.msk.f32.vlgmr.msra.gmra.mrb[20].mxu0 %vm6770_vm10, %v3527_v12  ;;  %vm4378_vm10 = vcmask 11264  }
0x2eb7   :  { %4947 = vmatpush3.bf16.msra.mxu0 %v6331_v25  ;;  %4703 = vmatprep.mubr.msk.f32.mxu0 %vm6747_vm15, %v5461_v24 }
0x2eb8   :  { %4948 = vmatprep.subr.bf16.mxu0 %v5468_v18 }
0x2ebb   :  { %4950 = vmatpush3.bf16.msra.mxu0 %v6341_v2 }
0x2ebc   :  { %4957 = vmatprep.subr.bf16.mxu0 %v5468_v18 }
0x2f89   :  { %v3596_v47 = vpop.f32.mrb[20].mxu0 }
0x2f8a   :  { %v3597_v58 = vadd.f32 %v6366_v55, %v3596_v47  ;;  %v4683_v62 = vpop.f32.mrb[21].mxu0 }
0x2f8c   :  { %v3604_v57 = vadd.f32 %v3602_v38, %v3597_v58 }
0x2f8e   :  { %v4453_v39 = vmul.f32 -1.442695, %v3604_v57 }
0x2f90   :  { %5198 = vpow2.f32 %v4453_v39 }
0x2f9a   :  { %v5199_v40 = vpop.eup %5198 }
0x2f9b   :  { %v3608_v41 = vadd.f32 1.0, %v5199_v40 }
0x2f9d   :  { %5200 = vrcp.f32 %v3608_v41 }
0x2fa7   :  { %v5201_v29 = vpop.eup %5200 }
0x2fa8   :  { %v3614_v42 = vmul.f32 %v5201_v29, %v3612_v63  ;;  %v3621_v45 = vsub.f32 1.0, %v5201_v29  ;;  %v3627_v61 = vmul.f32 %v5201_v29, %v6490_v17 }
0x2faa   :  { %3616 = vrot.lane.b32.xlu1 %v3614_v42, %s5462_s13 }
0x301c   :  { %v3617_v44 = vpop.permute.xlu1 %3616 }
0x301d   :  { %v3619_v33 = vadd.f32 %v3617_v44, %v3597_v58 }
0x301f   :  { %5202 = vtanh.f32 %v3619_v33 }
0x3029   :  { %v5203_v59 = vpop.eup %5202 }
0x302a   :  { %3623 = vrot.lane.b32.xlu0 %v5203_v59, %s5466_s26 }
0x309c   :  { %v3624_v43 = vpop.permute.xlu0 %3623 }
0x309d   :  { %v3626_v46 = vmul.f32 %v3624_v43, %v3621_v45 }
0x309f   :  { %v6548_v50 = vadd.f32 %v3627_v61, %v3626_v46 }
0x30a1   :  { %3630 = vrot.lane.b32.xlu1 %v6548_v50, %s5466_s26 }
0x3113   :  { %v3631_v48 = vpop.permute.xlu1 %3630 }
0x3114   :  { %3633 = vst.msk [vmem:[#allocation3 + $0x6] sm:$0x3] %vm2660_vm7, %v3631_v48  ;;  %4693 = vmatmul.mubr.msk.f32.vlgmr.msra.gmra.mrb[20].mxu1 %vm6771_vm8, %v3631_v48  ;;  %vm4376_vm8 = vcmask 15360  }
0x3115   :  { %4953 = vmatpush3.bf16.msra.mxu1 %v6175_v49  ;;  %4714 = vmatprep.mubr.msk.f32.mxu1 %vm6747_vm15, %v5461_v24 }
0x3116   :  { %4954 = vmatprep.subr.bf16.mxu1 %v5468_v18 }
0x3119   :  { %4956 = vmatpush3.bf16.msra.mxu1 %v6193_v4 }
0x31e7   :  { %v3702_v17 = vpop.f32.mrb[20].mxu1 }
0x31e8   :  { %v3714_v27 = vrot.slane %v3702_v17, %v6266_v51  ;;  %v4694_v53 = vpop.f32.mrb[21].mxu1  ;;  %v3706_v48 = vadd.f32 %v3702_v17, %v6349_v32 }
0x31e9   :  { %v6594_v53 = vld [vmem:[#allocation2] sm:$0xff] }
0x31ea   :  { %v3715_v15 = vcombine.high %v3714_v27, %v3714_v27  ;;  %v3722_v36 = vrot.slane %v3714_v27, %v6266_v51 }
0x31ec   :  { %v3729_v60 = vrot.slane %v3715_v15, %v6266_v51  ;;  %v3733_v56 = vrot.slane %v3722_v36, %v5782_v0 }
0x31ee   :  { %v3737_v49 = vrot.slane %v3729_v60, %v5782_v0  ;;  %v3740_v23 = vadd.f32 %v3733_v56, %v6276_v14 }
0x31f0   :  { %v3741_v26 = vadd.f32 %v3737_v49, %v6281_v30  ;;  %5204 = vtanh.f32 %v3740_v23  ;;  %v6598_v49 = vld [vmem:[#allocation2 + $0x8] sm:$0xff] }
0x31f2   :  { %5206 = vtanh.f32 %v3741_v26 }
0x31fa   :  { %v5205_v4 = vpop.eup %5204 }
0x31fb   :  { %v3744_v34 = vmul.f32 %v6569_v31, %v5205_v4 }
0x31fc   :  { %v5207_v5 = vpop.eup %5206 }
0x31fd   :  { %v3746_v7 = vsel %vm6748_vm0, %v3744_v34, 0.0  ;;  %v3745_v3 = vmul.f32 %v6569_v31, %v5207_v5 }
0x31fe   :  { %3747 = vadd.xlane.f32.xlu1 %v3746_v7 }
0x31ff   :  { %v3749_v8 = vsel %vm6772_vm1, %v3745_v3, 0.0 }
0x3200   :  { %3750 = vadd.xlane.f32.xlu0 %v3749_v8 }
0x328b   :  { %v3748_v10 = vpop.xlane.xlu1 %3747 }
0x328c   :  { %v3752_v9 = vadd.f32 %v3748_v10, %v6298_v20 }
0x328d   :  { %v3751_v11 = vpop.xlane.xlu0 %3750 }
0x328e   :  { %v3753_v13 = vadd.f32 %v3751_v11, %v6298_v20  ;;  %v3759_v19 = vrot.slane %v3752_v9, %v6296_v16 }
0x3290   :  { %v3763_v54 = vrot.slane %v3753_v13, %v6296_v16 }
0x3292   :  { %v3764_v21 = vsel %vm2447_vm2, %v3763_v54, %v3759_v19 }
0x3293   :  { %v3766_v22 = vsel %vm2450_vm3, %v3764_v21, -inf }
0x3294   :  { %3767 = vmax.xlane.f32.xlu1 %v3766_v22 }
0x3321   :  { %v3768_v6 = vpop.xlane.xlu1 %3767 }
0x3322   :  { %v3773_v35 = vrot.slane %v3768_v6, %v5782_v0  ;;  %v3777_v28 = vrot.slane %v3768_v6, %v5785_v1 }
0x3324   :  { %v3780_v37 = vsub.f32 %v3752_v9, %v3773_v35  ;;  %v3781_v12 = vsub.f32 %v3753_v13, %v3777_v28 }
0x3326   :  { %v3782_v47 = vmul.f32 1.442695, %v3780_v37  ;;  %v3784_v58 = vmul.f32 1.442695, %v3781_v12 }
0x3328   :  { %5208 = vpow2.f32 %v3782_v47 }
0x3329   :  { %5210 = vpow2.f32 %v3784_v58 }
0x3332   :  { %v5209_v62 = vpop.eup %5208 }
0x3333   :  { %v5211_v38 = vpop.eup %5210  ;;  %v3786_v57 = vmul.f32 %v5209_v62, %v6311_v52 }
0x3334   :  { %v3787_v39 = vmul.f32 %v5211_v38, %v6311_v52 }
0x3335   :  { %3791 = vperm.xlu1 %4995, %v3786_v57  }
0x3336   :  { %3794 = vperm.xlu0 %4994, %v3787_v39  }
0x33b4   :  { %v3792_v40 = vpop.permute.xlu1 %3791 }
0x33b5   :  { %v3795_v41 = vpop.permute.xlu0 %3794  ;;  %v3799_v29 = vrot.slane %v3792_v40, %v6296_v16 }
0x33b6   :  { %v3803_v63 = vrot.slane %v3795_v41, %v6296_v16  ;;  %v4282_v41 = vld [vmem:[#allocation3] sm:$0xff] }
0x33b8   :  { %v3804_v42 = vsel %vm2447_vm2, %v3803_v63, %v3799_v29 }
0x33b9   :  { %v3806_v44 = vsel %vm2450_vm3, %v3804_v42, 0.0 }
0x33ba   :  { %3807 = vadd.xlane.f32.xlu1 %v3806_v44 }
0x3447   :  { %v3808_v33 = vpop.xlane.xlu1 %3807 }
0x3448   :  { %5212 = vrcp.f32 %v3808_v33 }
0x3452   :  { %v5213_v59 = vpop.eup %5212 }
0x3453   :  { %v3814_v45 = vrot.slane %v5213_v59, %v5782_v0  ;;  %v3818_v61 = vrot.slane %v5213_v59, %v5785_v1 }
0x3455   :  { %v3821_v43 = vmul.f32 %v3814_v45, %v3786_v57  ;;  %v3822_v46 = vmul.f32 %v3818_v61, %v3787_v39 }
0x3457   :  { %3825 = vperm.xlu0 %4994, %v3821_v43  }
0x345b   :  { %3830 = vperm.xlu0 %4994, %v3822_v46  }
0x345f   :  { %3925 = vrot.lane.b32.xlu0 %v3706_v48, %s5466_s26 }
0x3463   :  { %3935 = vrot.lane.b32.xlu0 %v3706_v48, %s5463_s11 }
0x34d6   :  { %v3826_v27 = vpop.permute.xlu0 %3825 }
0x34d7   :  { %v3833_v15 = vmul.f32 %v6594_v53, %v3826_v27 }
0x34d9   :  { %v3835_v36 = vsel %vm6773_vm4, %v3833_v15, 0.0 }
0x34da   :  { %v3836_v60 = vrot.slane %v3835_v36, 4  ;;  %v3831_v56 = vpop.permute.xlu0 %3830 }
0x34db   :  { %v3834_v23 = vmul.f32 %v6598_v49, %v3831_v56 }
0x34dc   :  { %v3837_v26 = vadd.f32 %v3836_v60, %v3835_v36 }
0x34dd   :  { %v3842_v17 = vsel %vm6774_vm5, %v3834_v23, 0.0 }
0x34de   :  { %v3838_v4 = vrot.slane %v3837_v26, 2  ;;  %v3843_v34 = vrot.slane %v3842_v17, 4  ;;  %v3926_v6 = vpop.permute.xlu0 %3925 }
0x34e0   :  { %v3839_v5 = vadd.f32 %v3838_v4, %v3837_v26  ;;  %v3844_v7 = vadd.f32 %v3843_v34, %v3842_v17 }
0x34e2   :  { %v3845_v3 = vrot.slane %v3844_v7, 2  ;;  %v3840_v8 = vrot.slane %v3839_v5, 1 }
0x34e4   :  { %v3846_v10 = vadd.f32 %v3845_v3, %v3844_v7  ;;  %v3841_v11 = vadd.f32 %v3840_v8, %v3839_v5 }
0x34e6   :  { %v3847_v9 = vrot.slane %v3846_v10, 1 }
0x34e8   :  { %v3848_v13 = vadd.f32 %v3847_v9, %v3846_v10 }
0x34ea   :  { %v3851_v19 = vsel %vm2447_vm2, %v3848_v13, %v3841_v11 }
0x34eb   :  { %4704 = vmatmul.mubr.msk.f32.vlgmr.msra.gmra.mrb[22].mxu0 %vm6775_vm6, %v3851_v19 }
0x34ec   :  { %4959 = vmatpush3.bf16.msra.mxu0 %v6331_v25  ;;  %4725 = vmatprep.mubr.msk.f32.mxu0 %vm6747_vm15, %v5461_v24  ;;  %v3936_v25 = vpop.permute.xlu0 %3935  ;;  %vm6776_vm15 = vmmov %vm6748_vm0 }
0x34ed   :  { %4960 = vmatprep.subr.bf16.mxu0 %v5468_v18 }
0x34f0   :  { %4962 = vmatpush3.bf16.msra.mxu0 %v6341_v2 }
0x35be   :  { %v3920_v54 = vpop.f32.mrb[22].mxu0 }
0x35bf   :  { %v3921_v21 = vadd.f32 %v6366_v55, %v3920_v54  ;;  %v4705_v22 = vpop.f32.mrb[23].mxu0 }
0x35c1   :  { %v3928_v35 = vadd.f32 %v3926_v6, %v3921_v21 }
0x35c3   :  { %v4456_v28 = vmul.f32 -1.442695, %v3928_v35 }
0x35c5   :  { %5214 = vpow2.f32 %v4456_v28 }
0x35cf   :  { %v5215_v37 = vpop.eup %5214 }
0x35d0   :  { %v3932_v12 = vadd.f32 1.0, %v5215_v37 }
0x35d2   :  { %5216 = vrcp.f32 %v3932_v12 }
0x35dc   :  { %v5217_v47 = vpop.eup %5216 }
0x35dd   :  { %v3938_v58 = vmul.f32 %v5217_v47, %v3936_v25  ;;  %v3945_v55 = vsub.f32 1.0, %v5217_v47  ;;  %v3951_v38 = vmul.f32 %v5217_v47, %v6548_v50 }
0x35df   :  { %3940 = vrot.lane.b32.xlu0 %v3938_v58, %s5462_s13 }
0x3651   :  { %v3941_v24 = vpop.permute.xlu0 %3940 }
0x3652   :  { %v3943_v18 = vadd.f32 %v3941_v24, %v3921_v21 }
0x3654   :  { %5218 = vtanh.f32 %v3943_v18 }
0x365e   :  { %v5219_v2 = vpop.eup %5218 }
0x365f   :  { %3947 = vrot.lane.b32.xlu0 %v5219_v2, %s5466_s26 }
0x36d1   :  { %v3948_v62 = vpop.permute.xlu0 %3947 }
0x36d2   :  { %v3950_v57 = vmul.f32 %v3948_v62, %v3945_v55 }
0x36d4   :  { %v6613_v39 = vadd.f32 %v3951_v38, %v3950_v57 }
0x36d6   :  { %3954 = vrot.lane.b32.xlu0 %v6613_v39, %s5466_s26 }
0x3748   :  { %v3955_v40 = vpop.permute.xlu0 %3954 }
0x3749   :  { %3957 = vst.msk [vmem:[#allocation3 + $0x8] sm:$0x3] %vm2660_vm7, %v3955_v40  ;;  %4715 = vmatmul.mubr.msk.f32.vlgmr.msra.gmra.mrb[22].mxu1 %vm6776_vm15, %v3955_v40 }
0x374a   :  { %4736 = vmatprep.mubr.msk.f32.mxu1 %vm6777_vm9, %v4282_v41 }
0x381c   :  { %v4026_v29 = vpop.f32.mrb[22].mxu1 }
0x381d   :  { %v4038_v63 = vrot.slane %v4026_v29, %v6266_v51  ;;  %v4716_v42 = vpop.f32.mrb[23].mxu1  ;;  %v4030_v58 = vadd.f32 %v4026_v29, %v6349_v32 }
0x381f   :  { %v4039_v44 = vcombine.high %v4038_v63, %v4038_v63  ;;  %v4046_v50 = vrot.slane %v4038_v63, %v6266_v51 }
0x3821   :  { %v4053_v33 = vrot.slane %v4039_v44, %v6266_v51  ;;  %v4057_v59 = vrot.slane %v4046_v50, %v5782_v0 }
0x3823   :  { %v4061_v45 = vrot.slane %v4053_v33, %v5782_v0  ;;  %v4064_v43 = vadd.f32 %v4057_v59, %v6276_v14 }
0x3825   :  { %v4065_v61 = vadd.f32 %v4061_v45, %v6281_v30  ;;  %5220 = vtanh.f32 %v4064_v43 }
0x3827   :  { %5222 = vtanh.f32 %v4065_v61 }
0x382f   :  { %v5221_v46 = vpop.eup %5220 }
0x3830   :  { %v4068_v48 = vmul.f32 %v6569_v31, %v5221_v46 }
0x3831   :  { %v5223_v27 = vpop.eup %5222 }
0x3832   :  { %v4070_v15 = vsel %vm6778_vm11, %v4068_v48, 0.0  ;;  %v4069_v36 = vmul.f32 %v6569_v31, %v5223_v27 }
0x3833   :  { %4071 = vadd.xlane.f32.xlu1 %v4070_v15 }
0x3834   :  { %v4073_v51 = vsel %vm6779_vm12, %v4069_v36, 0.0 }
0x3835   :  { %4074 = vadd.xlane.f32.xlu0 %v4073_v51 }
0x38c0   :  { %v4072_v60 = vpop.xlane.xlu1 %4071 }
0x38c1   :  { %v4076_v56 = vadd.f32 %v4072_v60, %v6298_v20 }
0x38c2   :  { %v4075_v14 = vpop.xlane.xlu0 %4074 }
0x38c3   :  { %v4077_v30 = vadd.f32 %v4075_v14, %v6298_v20  ;;  %v4083_v23 = vrot.slane %v4076_v56, %v6296_v16 }
0x38c5   :  { %v4087_v26 = vrot.slane %v4077_v30, %v6296_v16 }
0x38c7   :  { %v4088_v17 = vsel %vm2447_vm2, %v4087_v26, %v4083_v23  ;;  %v4285_v23 = vld [vmem:[%s6708_s22 + $0x8] sm:$0xff] }
0x38c8   :  { %v4090_v4 = vsel %vm2450_vm3, %v4088_v17, -inf  ;;  %v4286_v17 = vld [vmem:[%s6708_s22 + $0x10] sm:$0xff] }
0x38c9   :  { %4091 = vmax.xlane.f32.xlu1 %v4090_v4  ;;  %v4287_v4 = vld [vmem:[%s6708_s22 + $0x18] sm:$0xff] }
0x3956   :  { %v4092_v31 = vpop.xlane.xlu1 %4091 }
0x3957   :  { %v4097_v34 = vrot.slane %v4092_v31, %v5782_v0  ;;  %v4101_v5 = vrot.slane %v4092_v31, %v5785_v1  ;;  %v4967_v31 = vpack.c.bf16 %v4287_v4, %v4286_v17 }
0x3959   :  { %v4104_v7 = vsub.f32 %v4076_v56, %v4097_v34  ;;  %v4105_v3 = vsub.f32 %v4077_v30, %v4101_v5  ;;  %v4284_v30 = vld [vmem:[%s6708_s22] sm:$0xff] }
0x395a   :  { %v4963_v26 = vpack.c.bf16 %v4285_v23, %v4284_v30 }
0x395b   :  { %v4106_v8 = vmul.f32 1.442695, %v4104_v7  ;;  %v4108_v10 = vmul.f32 1.442695, %v4105_v3 }
0x395c   :  { %4964 = vmatprep.subr.bf16.mxu1 %v4963_v26 }
0x395d   :  { %5224 = vpow2.f32 %v4106_v8  ;;  %4966 = vmatpush3.bf16.msra.mxu1 %v4963_v26 }
0x395e   :  { %5226 = vpow2.f32 %v4108_v10  ;;  %4968 = vmatprep.subr.bf16.mxu1 %v4967_v31 }
0x3961   :  { %4970 = vmatpush3.bf16.msra.mxu1 %v4967_v31 }
0x3967   :  { %v5225_v20 = vpop.eup %5224 }
0x3968   :  { %v4110_v9 = vmul.f32 %v5225_v20, %v6311_v52  ;;  %v5227_v11 = vpop.eup %5226 }
0x3969   :  { %v4111_v13 = vmul.f32 %v5227_v11, %v6311_v52 }
0x396a   :  { %4115 = vperm.xlu1 %4995, %v4110_v9  }
0x396e   :  { %4118 = vperm.xlu1 %4995, %v4111_v13  }
0x39e9   :  { %v4116_v19 = vpop.permute.xlu1 %4115 }
0x39ea   :  { %v4123_v21 = vrot.slane %v4116_v19, %v6296_v16 }
0x39ed   :  { %v4119_v54 = vpop.permute.xlu1 %4118 }
0x39ee   :  { %v4127_v22 = vrot.slane %v4119_v54, %v6296_v16 }
0x39f0   :  { %v4128_v6 = vsel %vm2447_vm2, %v4127_v22, %v4123_v21 }
0x39f1   :  { %v4130_v35 = vsel %vm2450_vm3, %v4128_v6, 0.0  ;;  %vm6780_vm3 = vmmov %vm6748_vm0 }
0x39f2   :  { %4131 = vadd.xlane.f32.xlu1 %v4130_v35 }
0x3a7f   :  { %v4132_v28 = vpop.xlane.xlu1 %4131 }
0x3a80   :  { %5228 = vrcp.f32 %v4132_v28 }
0x3a8a   :  { %v5229_v37 = vpop.eup %5228 }
0x3a8b   :  { %v4138_v12 = vrot.slane %v5229_v37, %v5782_v0  ;;  %v4142_v52 = vrot.slane %v5229_v37, %v5785_v1 }
0x3a8d   :  { %v4145_v47 = vmul.f32 %v4138_v12, %v4110_v9  ;;  %v4146_v25 = vmul.f32 %v4142_v52, %v4111_v13  ;;  %v4460_v9 = vld [vmem:[%s6709_s23] ss:$0 sm:$0xff] }
0x3a8f   :  { %4149 = vperm.xlu0 %4994, %v4145_v47  }
0x3a93   :  { %4154 = vperm.xlu0 %4994, %v4146_v25  }
0x3a97   :  { %4249 = vrot.lane.b32.xlu0 %v4030_v58, %s5466_s26 }
0x3a9b   :  { %4259 = vrot.lane.b32.xlu0 %v4030_v58, %s5463_s11 }
0x3b0e   :  { %v4150_v16 = vpop.permute.xlu0 %4149 }
0x3b0f   :  { %v4157_v24 = vmul.f32 %v6594_v53, %v4150_v16 }
0x3b11   :  { %v4159_v18 = vsel %vm6780_vm3, %v4157_v24, 0.0 }
0x3b12   :  { %v4160_v2 = vrot.slane %v4159_v18, 4  ;;  %v4155_v55 = vpop.permute.xlu0 %4154 }
0x3b13   :  { %v4158_v0 = vmul.f32 %v6598_v49, %v4155_v55  ;;  %v5239_v49 = vld [vmem:[%s6701_s15] ss:$0 sm:$0xff] }
0x3b14   :  { %v4161_v62 = vadd.f32 %v4160_v2, %v4159_v18 }
0x3b15   :  { %v4166_v1 = vsel %vm6781_vm13, %v4158_v0, 0.0 }
0x3b16   :  { %v4162_v38 = vrot.slane %v4161_v62, 2  ;;  %v4167_v57 = vrot.slane %v4166_v1, 4  ;;  %v4250_v43 = vpop.permute.xlu0 %4249 }
0x3b18   :  { %v4163_v40 = vadd.f32 %v4162_v38, %v4161_v62  ;;  %v4168_v32 = vadd.f32 %v4167_v57, %v4166_v1 }
0x3b1a   :  { %v4169_v41 = vrot.slane %v4168_v32, 2  ;;  %v4164_v29 = vrot.slane %v4163_v40, 1  ;;  %v4260_v36 = vpop.permute.xlu0 %4259 }
0x3b1c   :  { %v4170_v63 = vadd.f32 %v4169_v41, %v4168_v32  ;;  %v4165_v44 = vadd.f32 %v4164_v29, %v4163_v40 }
0x3b1e   :  { %v4171_v42 = vrot.slane %v4170_v63, 1 }
0x3b20   :  { %v4172_v50 = vadd.f32 %v4171_v42, %v4170_v63 }
0x3b22   :  { %v4175_v53 = vsel %vm2447_vm2, %v4172_v50, %v4165_v44  ;;  %vm6783_vm2 = vmmov %vm6748_vm0 }
0x3b23   :  { %4726 = vmatmul.mubr.msk.f32.vlgmr.msra.gmra.mrb[24].mxu0 %vm6782_vm14, %v4175_v53 }
0x3bf6   :  { %v4244_v33 = vpop.f32.mrb[24].mxu0 }
0x3bf7   :  { %v4245_v59 = vadd.f32 %v5239_v49, %v4244_v33  ;;  %v4727_v45 = vpop.f32.mrb[25].mxu0 }
0x3bf9   :  { %v4252_v61 = vadd.f32 %v4250_v43, %v4245_v59 }
0x3bfb   :  { %v4459_v46 = vmul.f32 -1.442695, %v4252_v61 }
0x3bfd   :  { %5230 = vpow2.f32 %v4459_v46 }
0x3c07   :  { %v5231_v48 = vpop.eup %5230 }
0x3c08   :  { %v4256_v27 = vadd.f32 1.0, %v5231_v48 }
0x3c0a   :  { %5232 = vrcp.f32 %v4256_v27 }
0x3c14   :  { %v5233_v15 = vpop.eup %5232 }
0x3c15   :  { %v4262_v51 = vmul.f32 %v5233_v15, %v4260_v36  ;;  %v4269_v34 = vsub.f32 1.0, %v5233_v15  ;;  %v4275_v7 = vmul.f32 %v5233_v15, %v6613_v39 }
0x3c17   :  { %4264 = vrot.lane.b32.xlu1 %v4262_v51, %s5462_s13 }
0x3c89   :  { %v4265_v60 = vpop.permute.xlu1 %4264 }
0x3c8a   :  { %v4267_v56 = vadd.f32 %v4265_v60, %v4245_v59 }
0x3c8c   :  { %5234 = vtanh.f32 %v4267_v56 }
0x3c96   :  { %v5235_v14 = vpop.eup %5234 }
0x3c97   :  { %4271 = vrot.lane.b32.xlu0 %v5235_v14, %s5466_s26 }
0x3d09   :  { %v4272_v5 = vpop.permute.xlu0 %4271 }
0x3d0a   :  { %v4274_v3 = vmul.f32 %v4272_v5, %v4269_v34 }
0x3d0c   :  { %v4276_v8 = vadd.f32 %v4275_v7, %v4274_v3 }
0x3d0e   :  { %4278 = vrot.lane.b32.xlu0 %v4276_v8, %s5466_s26 }
0x3d80   :  { %v4279_v10 = vpop.permute.xlu0 %4278 }
0x3d81   :  { %4281 = vst.msk [vmem:[#allocation3 + $0xa] sm:$0x3] %vm2660_vm7, %v4279_v10 }
0x3d88   :  { %v4283_v20 = vld [vmem:[#allocation3 + $0x8] sm:$0xf] }
0x3d89   :  { %4737 = vmatmul.mubr.msk.f32.vlgmr.msra.gmra.mrb[24].mxu1 %vm6783_vm2, %v4283_v20 }
0x3e5c   :  { %v4738_v11 = vpop.f32.mrb[24].mxu1 }
0x3e5d   :  { %v4373_v13 = vadd.f32 %v4738_v11, %v4460_v9  ;;  %v4367_v19 = vpop.f32.mrb[25].mxu1 }
0x3e5e   :  { %v4368_v39 = vadd.f32 %v4460_v9, %v4367_v19 }
0x3e5f   :  { %4379 = vst.msk [vmem:[%s6784_s3 + $0x8] sm:$0xf] %vm4378_vm10, %v4373_v13 }
0x3e60   :  { %4377 = vst.msk [vmem:[%s6784_s3] sm:$0xff] %vm4376_vm8, %v4368_v39 }
0x3e61   :  { %4384 = vsyncpa [#allocation6], 1 }
0x3e62   :  { %4385 = vsyncpa [#allocation8], 1 }
0x3e63   :  { %4386 = vsyncpa [#allocation11], 1 }
0x3e64   :  { %4387 = vsyncpa [#allocation14], 1 }
0x3e65   :  { %4388 = vsyncpa [#allocation17], 1 }

</bundles_post_ra>
